<compile_context>
chip_gen: v5e
topology: v5e:2x2
jax: 0.10.0
libtpu: 0.0.40
codegen_flags: <defaults>
</compile_context>

<pallas_src>
import math

import jax
import jax.numpy as jnp
import numpy as np
from jax.experimental import pallas as pl
from jax.experimental.pallas import tpu as pltpu

BIG = 1e30    # "+inf" sentinel for padding (never < any threshold; NaN inputs
              # compare false everywhere and silently drop from the count)
LANE = 128


def _round_up(n, m):
    return ((n + m - 1) // m) * m


def _cdiv(a, b):
    return (a + b - 1) // b


# --------------------------------------------------------------------------
# Glue: cell filtration values of the cubical complex (T-construction),
# already split into +1 cells (vertices, faces) and -1 cells (edges).
# --------------------------------------------------------------------------
def cubical_cell_values(x):
    """x: [B, C, H, W] -> (pos [B, C, Npos], neg [B, C, Nneg])."""
    B, C, H, W = x.shape
    xp = jnp.pad(x, ((0, 0), (0, 0), (1, 1), (1, 1)), constant_values=BIG)
    # vertices (0-cells): min over up to 4 incident pixels        [B,C,H+1,W+1]
    V = jnp.minimum(
        jnp.minimum(xp[:, :, :-1, :-1], xp[:, :, :-1, 1:]),
        jnp.minimum(xp[:, :, 1:, :-1], xp[:, :, 1:, 1:]),
    )
    # vertical edges (between horizontally adjacent pixels)       [B,C,H,W+1]
    Ev = jnp.minimum(xp[:, :, 1:-1, :-1], xp[:, :, 1:-1, 1:])
    # horizontal edges (between vertically adjacent pixels)       [B,C,H+1,W]
    Eh = jnp.minimum(xp[:, :, :-1, 1:-1], xp[:, :, 1:, 1:-1])
    # faces (2-cells) = pixels                                    [B,C,H,W]
    F = x

    flat = lambda a: a.reshape(B, C, -1)
    pos = jnp.concatenate([flat(V), flat(F)], axis=-1)     # +1 cells
    neg = jnp.concatenate([flat(Ev), flat(Eh)], axis=-1)   # -1 cells
    return pos.astype(jnp.float32), neg.astype(jnp.float32)


# --------------------------------------------------------------------------
# Tiling heuristics (generation-safe VMEM budgets).
# --------------------------------------------------------------------------
def _row_tiling(B, C):
    """Rows per tile are RB whole batch elements x C channels (R = RB*C)."""
    rb = 8 // math.gcd(C, 8)                     # minimal RB with R % 8 == 0
    if B > rb:
        # multiple row tiles -> the (RB, H2p) out block must be sublane-aligned
        rb = rb * (8 // math.gcd(rb, 8))         # lcm(rb, 8)
    # Grow RB to amortize per-grid-step overhead and feed the MXU epilogue a
    # bigger M, but cap R at 64 rows and never collapse the "parallel" row
    # axis below 2 tiles (v7x: 2 TensorCores share it).
    while True:
        nxt = 2 * rb
        if nxt * C > 64:
            break
        if _cdiv(B, nxt) < 2:
            break
        rb = nxt
    return rb


def _cell_chunking(n_cells, R):
    """Adaptive cell-chunk width: big tiles, small sentinel padding."""
    # ~8 MiB for the double-buffered pos+neg streams (2 tensors x 2 buffers),
    # comfortably inside v7x's 64 MiB physical VMEM and v5e's 16 MiB default.
    ch_cap = (8 * 1024 * 1024) // (2 * 2 * R * 4)
    ch_cap = max(LANE, min(32768, (ch_cap // LANE) * LANE))
    n_chunks = max(1, _cdiv(n_cells, ch_cap))
    CH = _round_up(_cdiv(n_cells, n_chunks), LANE)
    NPc = _round_up(n_cells, CH)
    return CH, NPc, NPc // CH


# --------------------------------------------------------------------------
# Fused Pallas kernel: EC-curve reduction + gtheta MLP epilogue.
#   grid = (row_tiles [parallel], cell_chunks [arbitrary/reduction])
# --------------------------------------------------------------------------
def _make_kernel(thresholds, C, RB):
    R = RB * C

    def kernel(pos_ref, neg_ref, w1_ref, b1_ref, w2_ref, b2_ref,
               ec_ref, out_ref):
        j = pl.program_id(1)

        @pl.when(j == 0)
        def _init():
            ec_ref[...] = jnp.zeros_like(ec_ref)     # ec block is the accumulator

        # ---- signed strict-sublevel cell counting for this chunk ----
        vp = pos_ref[...]                            # (R, CH)  +1 cells (V, F)
        vn = neg_ref[...]                            # (R, CH)  -1 cells (edges)
        one = jnp.float32(1.0)
        zero = jnp.float32(0.0)
        for k, tk in enumerate(thresholds):          # static unroll, T thresholds
            cp = jnp.sum(jnp.where(vp < tk, one, zero), axis=1, keepdims=True)
            cn = jnp.sum(jnp.where(vn < tk, one, zero), axis=1, keepdims=True)
            # static single-lane RMW into the resident ec block (ld/st slots),
            # replacing the old per-threshold (R, 128) broadcast-select.
            ec_ref[:, k:k + 1] += cp - cn

        # ---- finalize once per row tile: fused, batched gtheta MLP ----
        @pl.when(j == pl.num_programs(1) - 1)
        def _fin():
            # Rows inside the tile are channel-major (c*RB + rb), so each
            # channel is one contiguous (RB, T) sublane block: C matmuls with
            # M=RB (a single dot when num_channels == 1), then one ReLU, one
            # (RB, H1p) @ (H1p, H2p) dot and a single (RB, H2p) store.
            h = None
            for c in range(C):
                rows = ec_ref[c * RB:(c + 1) * RB, :]                   # (RB, T)
                d = jnp.dot(rows, w1_ref[c],
                            preferred_element_type=jnp.float32)        # (RB, H1p)
                h = d if h is None else h + d
            h = jnp.maximum(h + b1_ref[...], 0.0)
            out_ref[...] = (jnp.dot(h, w2_ref[...],
                                    preferred_element_type=jnp.float32)
                            + b2_ref[...])

    return kernel


def ec_layer_forward(x, params, *, start=0.0, end=7.0, T=32):
    """EC_Layer forward (+ the eclay.py gtheta MLP head, fused).

    Returns (ec [B, C, T], out [B, H2])."""
    B, C, H, W = x.shape
    x = x.astype(jnp.float32)
    pos, neg = cubical_cell_values(x)                 # [B,C,Npos], [B,C,Nneg]
    Npos, Nneg = pos.shape[-1], neg.shape[-1]

    # --- row tiling: R = RB*C rows (whole batch elements), R % 8 == 0 ---
    RB = _row_tiling(B, C)
    R = RB * C
    Bp = _round_up(B, RB)
    row_tiles = Bp // RB

    # --- adaptive cell-axis chunking (VMEM-budgeted, low sentinel padding) ---
    n_cells = max(Npos, Nneg)
    CH, NPc, n_chunks = _cell_chunking(n_cells, R)

    def to_rows(v, n):
        v = jnp.pad(v, ((0, Bp - B), (0, 0), (0, NPc - n)), constant_values=BIG)
        # channel-major row order inside each row tile: (tile, c, rb) so the
        # gtheta epilogue slices one contiguous (RB, T) block per channel.
        v = v.reshape(row_tiles, RB, C, NPc).transpose(0, 2, 1, 3)
        return v.reshape(Bp * C, NPc)

    pos2, neg2 = to_rows(pos, Npos), to_rows(neg, Nneg)

    # --- thresholds (torch.linspace(start, end, T)) baked as constants ---
    dt = (end - start) / max(T - 1, 1)
    thresholds = [float(start + k * dt) for k in range(T)]

    # --- gtheta weights: feature dims zero-padded to 128 lanes ---
    w1, b1, w2, b2 = params["w1"], params["b1"], params["w2"], params["b2"]
    Din, H1 = w1.shape
    H2 = w2.shape[1]
    assert Din == C * T, (Din, C, T)
    H1p, H2p = _round_up(H1, LANE), _round_up(H2, LANE)
    w1r = jnp.pad(w1.astype(jnp.float32).reshape(C, T, H1),
                  ((0, 0), (0, 0), (0, H1p - H1)))              # (C, T, H1p)
    b1p = jnp.pad(b1.astype(jnp.float32), (0, H1p - H1)).reshape(1, H1p)
    w2p = jnp.pad(w2.astype(jnp.float32), ((0, H1p - H1), (0, H2p - H2)))
    b2p = jnp.pad(b2.astype(jnp.float32), (0, H2p - H2)).reshape(1, H2p)

    kernel = _make_kernel(thresholds, C, RB)
    grid = (row_tiles, n_chunks)   # (parallel row tiles, reduction over cells)

    ec_pad, out_pad = pl.pallas_call(
        kernel,
        out_shape=(
            jax.ShapeDtypeStruct((Bp * C, T), jnp.float32),
            jax.ShapeDtypeStruct((Bp, H2p), jnp.float32),
        ),
        grid_spec=pltpu.PrefetchScalarGridSpec(
            num_scalar_prefetch=0,
            grid=grid,
            in_specs=[
                pl.BlockSpec((R, CH), lambda i, j: (i, j)),          # pos cells
                pl.BlockSpec((R, CH), lambda i, j: (i, j)),          # neg cells
                pl.BlockSpec((C, T, H1p), lambda i, j: (0, 0, 0)),   # w1
                pl.BlockSpec((1, H1p), lambda i, j: (0, 0)),         # b1
                pl.BlockSpec((H1p, H2p), lambda i, j: (0, 0)),       # w2
                pl.BlockSpec((1, H2p), lambda i, j: (0, 0)),         # b2
            ],
            out_specs=[
                pl.BlockSpec((R, T), lambda i, j: (i, 0)),           # ec curves
                pl.BlockSpec((RB, H2p), lambda i, j: (i, 0)),        # gtheta out
            ],
        ),
        compiler_params=pltpu.CompilerParams(
            dimension_semantics=("parallel", "arbitrary"),
            vmem_limit_bytes=32 * 1024 * 1024),
    )(pos2, neg2, w1r, b1p, w2p, b2p)

    # undo the channel-major row permutation; strip batch / lane padding
    ec = (ec_pad.reshape(row_tiles, C, RB, T)
          .transpose(0, 2, 1, 3).reshape(Bp, C, T)[:B])
    out = out_pad[:B, :H2]
    return ec, out


# --------------------------------------------------------------------------
# Pure-JAX reference (same math, no Pallas) for a sanity check.
# --------------------------------------------------------------------------
def reference_forward(x, params, *, start=0.0, end=7.0, T=32):
    B, C = x.shape[0], x.shape[1]
    pos, neg = cubical_cell_values(x.astype(jnp.float32))
    dt = (end - start) / max(T - 1, 1)
    tseq = jnp.asarray([float(start + k * dt) for k in range(T)], jnp.float32)
    cp = jnp.sum((pos[..., None] < tseq).astype(jnp.float32), axis=2)
    cn = jnp.sum((neg[..., None] < tseq).astype(jnp.float32), axis=2)
    ec = cp - cn                                       # [B, C, T]
    h = jnp.maximum(ec.reshape(B, C * T) @ params["w1"] + params["b1"], 0.0)
    return ec, h @ params["w2"] + params["b2"]


def init_params(key, in_features, hidden_features=(64, 32)):
    """Deterministic PyTorch-Linear-style init: U(-1/sqrt(fan_in), 1/sqrt(fan_in))."""
    feats = [in_features] + list(hidden_features)
    ks = jax.random.split(key, 2 * len(hidden_features))
    params = {}
    for i in range(len(hidden_features)):
        bound = 1.0 / np.sqrt(feats[i])
        params[f"w{i + 1}"] = jax.random.uniform(
            ks[2 * i], (feats[i], feats[i + 1]), jnp.float32, -bound, bound)
        params[f"b{i + 1}"] = jax.random.uniform(
            ks[2 * i + 1], (feats[i + 1],), jnp.float32, -bound, bound)
    return params


if __name__ == "__main__":
    key = jax.random.PRNGKey(0)
    kx, kp = jax.random.split(key)

    B, C, H, W, T = 2, 4, 16, 16, 32
    x = jax.random.uniform(kx, (B, C, H, W), jnp.float32, minval=0.0, maxval=7.0)
    params = init_params(kp, C * T, hidden_features=(64, 32))

    fwd = jax.jit(lambda a: ec_layer_forward(a, params, start=0.0, end=7.0, T=T))
    ec, out = fwd(x)
    ec = jax.block_until_ready(ec)
    out = jax.block_until_ready(out)

    ref_ec, ref_out = reference_forward(x, params, start=0.0, end=7.0, T=T)
    assert ec.shape == (B, C, T), ec.shape
    assert out.shape == (B, 32), out.shape
    np.testing.assert_allclose(np.asarray(ec), np.asarray(ref_ec),
                               rtol=0.0, atol=1e-3)
    np.testing.assert_allclose(np.asarray(out), np.asarray(ref_out),
                               rtol=2e-3, atol=2e-3)

    print("KERNEL_OK")
</pallas_src>

<mosaic_0001>
module attributes {stable_mosaic.version = 11 : i64} {
  func.func @kernel(%arg0: i32, %arg1: i32, %arg2: memref<8x640xf32, #tpu.memory_space<vmem>>, %arg3: memref<8x640xf32, #tpu.memory_space<vmem>>, %arg4: memref<4x32x128xf32, #tpu.memory_space<vmem>>, %arg5: memref<1x128xf32, #tpu.memory_space<vmem>>, %arg6: memref<128x128xf32, #tpu.memory_space<vmem>>, %arg7: memref<1x128xf32, #tpu.memory_space<vmem>>, %arg8: memref<8x32xf32, #tpu.memory_space<vmem>>, %arg9: memref<2x128xf32, #tpu.memory_space<vmem>>) attributes {dimension_semantics = [#tpu.dimension_semantics<parallel>, #tpu.dimension_semantics<arbitrary>], iteration_bounds = array<i64: 1, 1>, scalar_prefetch = 0 : i64, scratch_operands = 0 : i64, tpu.core_type = #tpu.core_type<tc>, window_params = [{transform_indices = @transform_0, window_bounds = array<i64: 8, 640>}, {transform_indices = @transform_1, window_bounds = array<i64: 8, 640>}, {pipeline_mode = #tpu.pipeline_mode<synchronous>, transform_indices = @transform_2, window_bounds = array<i64: 4, 32, 128>}, {pipeline_mode = #tpu.pipeline_mode<synchronous>, transform_indices = @transform_3, window_bounds = array<i64: 1, 128>}, {pipeline_mode = #tpu.pipeline_mode<synchronous>, transform_indices = @transform_4, window_bounds = array<i64: 128, 128>}, {pipeline_mode = #tpu.pipeline_mode<synchronous>, transform_indices = @transform_5, window_bounds = array<i64: 1, 128>}, {transform_indices = @transform_6, window_bounds = array<i64: 8, 32>}, {transform_indices = @transform_7, window_bounds = array<i64: 2, 128>}]} {
    %c0_i32 = arith.constant 0 : i32
    %0 = arith.cmpi eq, %arg1, %c0_i32 : i32
    %1 = arith.extui %0 : i1 to i32
    %c0_i32_0 = arith.constant 0 : i32
    %2 = arith.cmpi ne, %1, %c0_i32_0 : i32
    scf.if %2 {
      %cst_358 = arith.constant 0.000000e+00 : f32
      %584 = vector.broadcast %cst_358 : f32 to vector<8x32xf32>
      %c0_359 = arith.constant 0 : index
      %c0_360 = arith.constant 0 : index
      %585 = vector.load %arg8[%c0_359, %c0_360] : memref<8x32xf32, #tpu.memory_space<vmem>>, vector<8x32xf32>
      tpu.vector_store %arg8[%c0_359, %c0_360], %584 {strides = array<i32>} : memref<8x32xf32, #tpu.memory_space<vmem>>, vector<8x32xf32>,
    } else {
    }
    %c0 = arith.constant 0 : index
    %c0_1 = arith.constant 0 : index
    %3 = vector.load %arg2[%c0, %c0_1] : memref<8x640xf32, #tpu.memory_space<vmem>>, vector<8x640xf32>
    %c0_2 = arith.constant 0 : index
    %c0_3 = arith.constant 0 : index
    %4 = vector.load %arg3[%c0_2, %c0_3] : memref<8x640xf32, #tpu.memory_space<vmem>>, vector<8x640xf32>
    %cst = arith.constant 0.000000e+00 : f32
    %5 = vector.broadcast %cst : f32 to vector<8x640xf32>
    %6 = arith.cmpf olt, %3, %5 : vector<8x640xf32>
    %cst_4 = arith.constant 1.000000e+00 : f32
    %cst_5 = arith.constant 0.000000e+00 : f32
    %7 = vector.broadcast %cst_4 : f32 to vector<8x640xf32>
    %8 = vector.broadcast %cst_5 : f32 to vector<8x640xf32>
    %9 = arith.select %6, %7, %8 : vector<8x640xi1>, vector<8x640xf32>
    %cst_6 = arith.constant dense<0.000000e+00> : vector<8xf32>
    %10 = vector.multi_reduction <add>, %9, %cst_6 [1] : vector<8x640xf32> to vector<8xf32>
    %11 = vector.shape_cast %10 : vector<8xf32> to vector<8x1xf32>
    %cst_7 = arith.constant 0.000000e+00 : f32
    %12 = vector.broadcast %cst_7 : f32 to vector<8x640xf32>
    %13 = arith.cmpf olt, %4, %12 : vector<8x640xf32>
    %cst_8 = arith.constant 1.000000e+00 : f32
    %cst_9 = arith.constant 0.000000e+00 : f32
    %14 = vector.broadcast %cst_8 : f32 to vector<8x640xf32>
    %15 = vector.broadcast %cst_9 : f32 to vector<8x640xf32>
    %16 = arith.select %13, %14, %15 : vector<8x640xi1>, vector<8x640xf32>
    %cst_10 = arith.constant dense<0.000000e+00> : vector<8xf32>
    %17 = vector.multi_reduction <add>, %16, %cst_10 [1] : vector<8x640xf32> to vector<8xf32>
    %18 = vector.shape_cast %17 : vector<8xf32> to vector<8x1xf32>
    %c0_11 = arith.constant 0 : index
    %c0_12 = arith.constant 0 : index
    %19 = vector.load %arg8[%c0_11, %c0_12] : memref<8x32xf32, #tpu.memory_space<vmem>>, vector<8x1xf32>
    %20 = arith.subf %11, %18 : vector<8x1xf32>
    %21 = arith.addf %19, %20 : vector<8x1xf32>
    %c0_13 = arith.constant 0 : index
    %c0_14 = arith.constant 0 : index
    %22 = vector.load %arg8[%c0_13, %c0_14] : memref<8x32xf32, #tpu.memory_space<vmem>>, vector<8x1xf32>
    tpu.vector_store %arg8[%c0_13, %c0_14], %21 {strides = array<i32>} : memref<8x32xf32, #tpu.memory_space<vmem>>, vector<8x1xf32>,
    %cst_15 = arith.constant 0.225806445 : f32
    %23 = vector.broadcast %cst_15 : f32 to vector<8x640xf32>
    %24 = arith.cmpf olt, %3, %23 : vector<8x640xf32>
    %cst_16 = arith.constant 1.000000e+00 : f32
    %cst_17 = arith.constant 0.000000e+00 : f32
    %25 = vector.broadcast %cst_16 : f32 to vector<8x640xf32>
    %26 = vector.broadcast %cst_17 : f32 to vector<8x640xf32>
    %27 = arith.select %24, %25, %26 : vector<8x640xi1>, vector<8x640xf32>
    %cst_18 = arith.constant dense<0.000000e+00> : vector<8xf32>
    %28 = vector.multi_reduction <add>, %27, %cst_18 [1] : vector<8x640xf32> to vector<8xf32>
    %29 = vector.shape_cast %28 : vector<8xf32> to vector<8x1xf32>
    %cst_19 = arith.constant 0.225806445 : f32
    %30 = vector.broadcast %cst_19 : f32 to vector<8x640xf32>
    %31 = arith.cmpf olt, %4, %30 : vector<8x640xf32>
    %cst_20 = arith.constant 1.000000e+00 : f32
    %cst_21 = arith.constant 0.000000e+00 : f32
    %32 = vector.broadcast %cst_20 : f32 to vector<8x640xf32>
    %33 = vector.broadcast %cst_21 : f32 to vector<8x640xf32>
    %34 = arith.select %31, %32, %33 : vector<8x640xi1>, vector<8x640xf32>
    %cst_22 = arith.constant dense<0.000000e+00> : vector<8xf32>
    %35 = vector.multi_reduction <add>, %34, %cst_22 [1] : vector<8x640xf32> to vector<8xf32>
    %36 = vector.shape_cast %35 : vector<8xf32> to vector<8x1xf32>
    %c0_23 = arith.constant 0 : index
    %c1 = arith.constant 1 : index
    %37 = vector.load %arg8[%c0_23, %c1] : memref<8x32xf32, #tpu.memory_space<vmem>>, vector<8x1xf32>
    %38 = arith.subf %29, %36 : vector<8x1xf32>
    %39 = arith.addf %37, %38 : vector<8x1xf32>
    %c0_24 = arith.constant 0 : index
    %c1_25 = arith.constant 1 : index
    %40 = vector.load %arg8[%c0_24, %c1_25] : memref<8x32xf32, #tpu.memory_space<vmem>>, vector<8x1xf32>
    tpu.vector_store %arg8[%c0_24, %c1_25], %39 {strides = array<i32>} : memref<8x32xf32, #tpu.memory_space<vmem>>, vector<8x1xf32>,
    %cst_26 = arith.constant 0.45161289 : f32
    %41 = vector.broadcast %cst_26 : f32 to vector<8x640xf32>
    %42 = arith.cmpf olt, %3, %41 : vector<8x640xf32>
    %cst_27 = arith.constant 1.000000e+00 : f32
    %cst_28 = arith.constant 0.000000e+00 : f32
    %43 = vector.broadcast %cst_27 : f32 to vector<8x640xf32>
    %44 = vector.broadcast %cst_28 : f32 to vector<8x640xf32>
    %45 = arith.select %42, %43, %44 : vector<8x640xi1>, vector<8x640xf32>
    %cst_29 = arith.constant dense<0.000000e+00> : vector<8xf32>
    %46 = vector.multi_reduction <add>, %45, %cst_29 [1] : vector<8x640xf32> to vector<8xf32>
    %47 = vector.shape_cast %46 : vector<8xf32> to vector<8x1xf32>
    %cst_30 = arith.constant 0.45161289 : f32
    %48 = vector.broadcast %cst_30 : f32 to vector<8x640xf32>
    %49 = arith.cmpf olt, %4, %48 : vector<8x640xf32>
    %cst_31 = arith.constant 1.000000e+00 : f32
    %cst_32 = arith.constant 0.000000e+00 : f32
    %50 = vector.broadcast %cst_31 : f32 to vector<8x640xf32>
    %51 = vector.broadcast %cst_32 : f32 to vector<8x640xf32>
    %52 = arith.select %49, %50, %51 : vector<8x640xi1>, vector<8x640xf32>
    %cst_33 = arith.constant dense<0.000000e+00> : vector<8xf32>
    %53 = vector.multi_reduction <add>, %52, %cst_33 [1] : vector<8x640xf32> to vector<8xf32>
    %54 = vector.shape_cast %53 : vector<8xf32> to vector<8x1xf32>
    %c0_34 = arith.constant 0 : index
    %c2 = arith.constant 2 : index
    %55 = vector.load %arg8[%c0_34, %c2] : memref<8x32xf32, #tpu.memory_space<vmem>>, vector<8x1xf32>
    %56 = arith.subf %47, %54 : vector<8x1xf32>
    %57 = arith.addf %55, %56 : vector<8x1xf32>
    %c0_35 = arith.constant 0 : index
    %c2_36 = arith.constant 2 : index
    %58 = vector.load %arg8[%c0_35, %c2_36] : memref<8x32xf32, #tpu.memory_space<vmem>>, vector<8x1xf32>
    tpu.vector_store %arg8[%c0_35, %c2_36], %57 {strides = array<i32>} : memref<8x32xf32, #tpu.memory_space<vmem>>, vector<8x1xf32>,
    %cst_37 = arith.constant 0.677419364 : f32
    %59 = vector.broadcast %cst_37 : f32 to vector<8x640xf32>
    %60 = arith.cmpf olt, %3, %59 : vector<8x640xf32>
    %cst_38 = arith.constant 1.000000e+00 : f32
    %cst_39 = arith.constant 0.000000e+00 : f32
    %61 = vector.broadcast %cst_38 : f32 to vector<8x640xf32>
    %62 = vector.broadcast %cst_39 : f32 to vector<8x640xf32>
    %63 = arith.select %60, %61, %62 : vector<8x640xi1>, vector<8x640xf32>
    %cst_40 = arith.constant dense<0.000000e+00> : vector<8xf32>
    %64 = vector.multi_reduction <add>, %63, %cst_40 [1] : vector<8x640xf32> to vector<8xf32>
    %65 = vector.shape_cast %64 : vector<8xf32> to vector<8x1xf32>
    %cst_41 = arith.constant 0.677419364 : f32
    %66 = vector.broadcast %cst_41 : f32 to vector<8x640xf32>
    %67 = arith.cmpf olt, %4, %66 : vector<8x640xf32>
    %cst_42 = arith.constant 1.000000e+00 : f32
    %cst_43 = arith.constant 0.000000e+00 : f32
    %68 = vector.broadcast %cst_42 : f32 to vector<8x640xf32>
    %69 = vector.broadcast %cst_43 : f32 to vector<8x640xf32>
    %70 = arith.select %67, %68, %69 : vector<8x640xi1>, vector<8x640xf32>
    %cst_44 = arith.constant dense<0.000000e+00> : vector<8xf32>
    %71 = vector.multi_reduction <add>, %70, %cst_44 [1] : vector<8x640xf32> to vector<8xf32>
    %72 = vector.shape_cast %71 : vector<8xf32> to vector<8x1xf32>
    %c0_45 = arith.constant 0 : index
    %c3 = arith.constant 3 : index
    %73 = vector.load %arg8[%c0_45, %c3] : memref<8x32xf32, #tpu.memory_space<vmem>>, vector<8x1xf32>
    %74 = arith.subf %65, %72 : vector<8x1xf32>
    %75 = arith.addf %73, %74 : vector<8x1xf32>
    %c0_46 = arith.constant 0 : index
    %c3_47 = arith.constant 3 : index
    %76 = vector.load %arg8[%c0_46, %c3_47] : memref<8x32xf32, #tpu.memory_space<vmem>>, vector<8x1xf32>
    tpu.vector_store %arg8[%c0_46, %c3_47], %75 {strides = array<i32>} : memref<8x32xf32, #tpu.memory_space<vmem>>, vector<8x1xf32>,
    %cst_48 = arith.constant 0.903225779 : f32
    %77 = vector.broadcast %cst_48 : f32 to vector<8x640xf32>
    %78 = arith.cmpf olt, %3, %77 : vector<8x640xf32>
    %cst_49 = arith.constant 1.000000e+00 : f32
    %cst_50 = arith.constant 0.000000e+00 : f32
    %79 = vector.broadcast %cst_49 : f32 to vector<8x640xf32>
    %80 = vector.broadcast %cst_50 : f32 to vector<8x640xf32>
    %81 = arith.select %78, %79, %80 : vector<8x640xi1>, vector<8x640xf32>
    %cst_51 = arith.constant dense<0.000000e+00> : vector<8xf32>
    %82 = vector.multi_reduction <add>, %81, %cst_51 [1] : vector<8x640xf32> to vector<8xf32>
    %83 = vector.shape_cast %82 : vector<8xf32> to vector<8x1xf32>
    %cst_52 = arith.constant 0.903225779 : f32
    %84 = vector.broadcast %cst_52 : f32 to vector<8x640xf32>
    %85 = arith.cmpf olt, %4, %84 : vector<8x640xf32>
    %cst_53 = arith.constant 1.000000e+00 : f32
    %cst_54 = arith.constant 0.000000e+00 : f32
    %86 = vector.broadcast %cst_53 : f32 to vector<8x640xf32>
    %87 = vector.broadcast %cst_54 : f32 to vector<8x640xf32>
    %88 = arith.select %85, %86, %87 : vector<8x640xi1>, vector<8x640xf32>
    %cst_55 = arith.constant dense<0.000000e+00> : vector<8xf32>
    %89 = vector.multi_reduction <add>, %88, %cst_55 [1] : vector<8x640xf32> to vector<8xf32>
    %90 = vector.shape_cast %89 : vector<8xf32> to vector<8x1xf32>
    %c0_56 = arith.constant 0 : index
    %c4 = arith.constant 4 : index
    %91 = vector.load %arg8[%c0_56, %c4] : memref<8x32xf32, #tpu.memory_space<vmem>>, vector<8x1xf32>
    %92 = arith.subf %83, %90 : vector<8x1xf32>
    %93 = arith.addf %91, %92 : vector<8x1xf32>
    %c0_57 = arith.constant 0 : index
    %c4_58 = arith.constant 4 : index
    %94 = vector.load %arg8[%c0_57, %c4_58] : memref<8x32xf32, #tpu.memory_space<vmem>>, vector<8x1xf32>
    tpu.vector_store %arg8[%c0_57, %c4_58], %93 {strides = array<i32>} : memref<8x32xf32, #tpu.memory_space<vmem>>, vector<8x1xf32>,
    %cst_59 = arith.constant 1.12903225 : f32
    %95 = vector.broadcast %cst_59 : f32 to vector<8x640xf32>
    %96 = arith.cmpf olt, %3, %95 : vector<8x640xf32>
    %cst_60 = arith.constant 1.000000e+00 : f32
    %cst_61 = arith.constant 0.000000e+00 : f32
    %97 = vector.broadcast %cst_60 : f32 to vector<8x640xf32>
    %98 = vector.broadcast %cst_61 : f32 to vector<8x640xf32>
    %99 = arith.select %96, %97, %98 : vector<8x640xi1>, vector<8x640xf32>
    %cst_62 = arith.constant dense<0.000000e+00> : vector<8xf32>
    %100 = vector.multi_reduction <add>, %99, %cst_62 [1] : vector<8x640xf32> to vector<8xf32>
    %101 = vector.shape_cast %100 : vector<8xf32> to vector<8x1xf32>
    %cst_63 = arith.constant 1.12903225 : f32
    %102 = vector.broadcast %cst_63 : f32 to vector<8x640xf32>
    %103 = arith.cmpf olt, %4, %102 : vector<8x640xf32>
    %cst_64 = arith.constant 1.000000e+00 : f32
    %cst_65 = arith.constant 0.000000e+00 : f32
    %104 = vector.broadcast %cst_64 : f32 to vector<8x640xf32>
    %105 = vector.broadcast %cst_65 : f32 to vector<8x640xf32>
    %106 = arith.select %103, %104, %105 : vector<8x640xi1>, vector<8x640xf32>
    %cst_66 = arith.constant dense<0.000000e+00> : vector<8xf32>
    %107 = vector.multi_reduction <add>, %106, %cst_66 [1] : vector<8x640xf32> to vector<8xf32>
    %108 = vector.shape_cast %107 : vector<8xf32> to vector<8x1xf32>
    %c0_67 = arith.constant 0 : index
    %c5 = arith.constant 5 : index
    %109 = vector.load %arg8[%c0_67, %c5] : memref<8x32xf32, #tpu.memory_space<vmem>>, vector<8x1xf32>
    %110 = arith.subf %101, %108 : vector<8x1xf32>
    %111 = arith.addf %109, %110 : vector<8x1xf32>
    %c0_68 = arith.constant 0 : index
    %c5_69 = arith.constant 5 : index
    %112 = vector.load %arg8[%c0_68, %c5_69] : memref<8x32xf32, #tpu.memory_space<vmem>>, vector<8x1xf32>
    tpu.vector_store %arg8[%c0_68, %c5_69], %111 {strides = array<i32>} : memref<8x32xf32, #tpu.memory_space<vmem>>, vector<8x1xf32>,
    %cst_70 = arith.constant 1.35483873 : f32
    %113 = vector.broadcast %cst_70 : f32 to vector<8x640xf32>
    %114 = arith.cmpf olt, %3, %113 : vector<8x640xf32>
    %cst_71 = arith.constant 1.000000e+00 : f32
    %cst_72 = arith.constant 0.000000e+00 : f32
    %115 = vector.broadcast %cst_71 : f32 to vector<8x640xf32>
    %116 = vector.broadcast %cst_72 : f32 to vector<8x640xf32>
    %117 = arith.select %114, %115, %116 : vector<8x640xi1>, vector<8x640xf32>
    %cst_73 = arith.constant dense<0.000000e+00> : vector<8xf32>
    %118 = vector.multi_reduction <add>, %117, %cst_73 [1] : vector<8x640xf32> to vector<8xf32>
    %119 = vector.shape_cast %118 : vector<8xf32> to vector<8x1xf32>
    %cst_74 = arith.constant 1.35483873 : f32
    %120 = vector.broadcast %cst_74 : f32 to vector<8x640xf32>
    %121 = arith.cmpf olt, %4, %120 : vector<8x640xf32>
    %cst_75 = arith.constant 1.000000e+00 : f32
    %cst_76 = arith.constant 0.000000e+00 : f32
    %122 = vector.broadcast %cst_75 : f32 to vector<8x640xf32>
    %123 = vector.broadcast %cst_76 : f32 to vector<8x640xf32>
    %124 = arith.select %121, %122, %123 : vector<8x640xi1>, vector<8x640xf32>
    %cst_77 = arith.constant dense<0.000000e+00> : vector<8xf32>
    %125 = vector.multi_reduction <add>, %124, %cst_77 [1] : vector<8x640xf32> to vector<8xf32>
    %126 = vector.shape_cast %125 : vector<8xf32> to vector<8x1xf32>
    %c0_78 = arith.constant 0 : index
    %c6 = arith.constant 6 : index
    %127 = vector.load %arg8[%c0_78, %c6] : memref<8x32xf32, #tpu.memory_space<vmem>>, vector<8x1xf32>
    %128 = arith.subf %119, %126 : vector<8x1xf32>
    %129 = arith.addf %127, %128 : vector<8x1xf32>
    %c0_79 = arith.constant 0 : index
    %c6_80 = arith.constant 6 : index
    %130 = vector.load %arg8[%c0_79, %c6_80] : memref<8x32xf32, #tpu.memory_space<vmem>>, vector<8x1xf32>
    tpu.vector_store %arg8[%c0_79, %c6_80], %129 {strides = array<i32>} : memref<8x32xf32, #tpu.memory_space<vmem>>, vector<8x1xf32>,
    %cst_81 = arith.constant 1.5806452 : f32
    %131 = vector.broadcast %cst_81 : f32 to vector<8x640xf32>
    %132 = arith.cmpf olt, %3, %131 : vector<8x640xf32>
    %cst_82 = arith.constant 1.000000e+00 : f32
    %cst_83 = arith.constant 0.000000e+00 : f32
    %133 = vector.broadcast %cst_82 : f32 to vector<8x640xf32>
    %134 = vector.broadcast %cst_83 : f32 to vector<8x640xf32>
    %135 = arith.select %132, %133, %134 : vector<8x640xi1>, vector<8x640xf32>
    %cst_84 = arith.constant dense<0.000000e+00> : vector<8xf32>
    %136 = vector.multi_reduction <add>, %135, %cst_84 [1] : vector<8x640xf32> to vector<8xf32>
    %137 = vector.shape_cast %136 : vector<8xf32> to vector<8x1xf32>
    %cst_85 = arith.constant 1.5806452 : f32
    %138 = vector.broadcast %cst_85 : f32 to vector<8x640xf32>
    %139 = arith.cmpf olt, %4, %138 : vector<8x640xf32>
    %cst_86 = arith.constant 1.000000e+00 : f32
    %cst_87 = arith.constant 0.000000e+00 : f32
    %140 = vector.broadcast %cst_86 : f32 to vector<8x640xf32>
    %141 = vector.broadcast %cst_87 : f32 to vector<8x640xf32>
    %142 = arith.select %139, %140, %141 : vector<8x640xi1>, vector<8x640xf32>
    %cst_88 = arith.constant dense<0.000000e+00> : vector<8xf32>
    %143 = vector.multi_reduction <add>, %142, %cst_88 [1] : vector<8x640xf32> to vector<8xf32>
    %144 = vector.shape_cast %143 : vector<8xf32> to vector<8x1xf32>
    %c0_89 = arith.constant 0 : index
    %c7 = arith.constant 7 : index
    %145 = vector.load %arg8[%c0_89, %c7] : memref<8x32xf32, #tpu.memory_space<vmem>>, vector<8x1xf32>
    %146 = arith.subf %137, %144 : vector<8x1xf32>
    %147 = arith.addf %145, %146 : vector<8x1xf32>
    %c0_90 = arith.constant 0 : index
    %c7_91 = arith.constant 7 : index
    %148 = vector.load %arg8[%c0_90, %c7_91] : memref<8x32xf32, #tpu.memory_space<vmem>>, vector<8x1xf32>
    tpu.vector_store %arg8[%c0_90, %c7_91], %147 {strides = array<i32>} : memref<8x32xf32, #tpu.memory_space<vmem>>, vector<8x1xf32>,
    %cst_92 = arith.constant 1.80645156 : f32
    %149 = vector.broadcast %cst_92 : f32 to vector<8x640xf32>
    %150 = arith.cmpf olt, %3, %149 : vector<8x640xf32>
    %cst_93 = arith.constant 1.000000e+00 : f32
    %cst_94 = arith.constant 0.000000e+00 : f32
    %151 = vector.broadcast %cst_93 : f32 to vector<8x640xf32>
    %152 = vector.broadcast %cst_94 : f32 to vector<8x640xf32>
    %153 = arith.select %150, %151, %152 : vector<8x640xi1>, vector<8x640xf32>
    %cst_95 = arith.constant dense<0.000000e+00> : vector<8xf32>
    %154 = vector.multi_reduction <add>, %153, %cst_95 [1] : vector<8x640xf32> to vector<8xf32>
    %155 = vector.shape_cast %154 : vector<8xf32> to vector<8x1xf32>
    %cst_96 = arith.constant 1.80645156 : f32
    %156 = vector.broadcast %cst_96 : f32 to vector<8x640xf32>
    %157 = arith.cmpf olt, %4, %156 : vector<8x640xf32>
    %cst_97 = arith.constant 1.000000e+00 : f32
    %cst_98 = arith.constant 0.000000e+00 : f32
    %158 = vector.broadcast %cst_97 : f32 to vector<8x640xf32>
    %159 = vector.broadcast %cst_98 : f32 to vector<8x640xf32>
    %160 = arith.select %157, %158, %159 : vector<8x640xi1>, vector<8x640xf32>
    %cst_99 = arith.constant dense<0.000000e+00> : vector<8xf32>
    %161 = vector.multi_reduction <add>, %160, %cst_99 [1] : vector<8x640xf32> to vector<8xf32>
    %162 = vector.shape_cast %161 : vector<8xf32> to vector<8x1xf32>
    %c0_100 = arith.constant 0 : index
    %c8 = arith.constant 8 : index
    %163 = vector.load %arg8[%c0_100, %c8] : memref<8x32xf32, #tpu.memory_space<vmem>>, vector<8x1xf32>
    %164 = arith.subf %155, %162 : vector<8x1xf32>
    %165 = arith.addf %163, %164 : vector<8x1xf32>
    %c0_101 = arith.constant 0 : index
    %c8_102 = arith.constant 8 : index
    %166 = vector.load %arg8[%c0_101, %c8_102] : memref<8x32xf32, #tpu.memory_space<vmem>>, vector<8x1xf32>
    tpu.vector_store %arg8[%c0_101, %c8_102], %165 {strides = array<i32>} : memref<8x32xf32, #tpu.memory_space<vmem>>, vector<8x1xf32>,
    %cst_103 = arith.constant 2.03225803 : f32
    %167 = vector.broadcast %cst_103 : f32 to vector<8x640xf32>
    %168 = arith.cmpf olt, %3, %167 : vector<8x640xf32>
    %cst_104 = arith.constant 1.000000e+00 : f32
    %cst_105 = arith.constant 0.000000e+00 : f32
    %169 = vector.broadcast %cst_104 : f32 to vector<8x640xf32>
    %170 = vector.broadcast %cst_105 : f32 to vector<8x640xf32>
    %171 = arith.select %168, %169, %170 : vector<8x640xi1>, vector<8x640xf32>
    %cst_106 = arith.constant dense<0.000000e+00> : vector<8xf32>
    %172 = vector.multi_reduction <add>, %171, %cst_106 [1] : vector<8x640xf32> to vector<8xf32>
    %173 = vector.shape_cast %172 : vector<8xf32> to vector<8x1xf32>
    %cst_107 = arith.constant 2.03225803 : f32
    %174 = vector.broadcast %cst_107 : f32 to vector<8x640xf32>
    %175 = arith.cmpf olt, %4, %174 : vector<8x640xf32>
    %cst_108 = arith.constant 1.000000e+00 : f32
    %cst_109 = arith.constant 0.000000e+00 : f32
    %176 = vector.broadcast %cst_108 : f32 to vector<8x640xf32>
    %177 = vector.broadcast %cst_109 : f32 to vector<8x640xf32>
    %178 = arith.select %175, %176, %177 : vector<8x640xi1>, vector<8x640xf32>
    %cst_110 = arith.constant dense<0.000000e+00> : vector<8xf32>
    %179 = vector.multi_reduction <add>, %178, %cst_110 [1] : vector<8x640xf32> to vector<8xf32>
    %180 = vector.shape_cast %179 : vector<8xf32> to vector<8x1xf32>
    %c0_111 = arith.constant 0 : index
    %c9 = arith.constant 9 : index
    %181 = vector.load %arg8[%c0_111, %c9] : memref<8x32xf32, #tpu.memory_space<vmem>>, vector<8x1xf32>
    %182 = arith.subf %173, %180 : vector<8x1xf32>
    %183 = arith.addf %181, %182 : vector<8x1xf32>
    %c0_112 = arith.constant 0 : index
    %c9_113 = arith.constant 9 : index
    %184 = vector.load %arg8[%c0_112, %c9_113] : memref<8x32xf32, #tpu.memory_space<vmem>>, vector<8x1xf32>
    tpu.vector_store %arg8[%c0_112, %c9_113], %183 {strides = array<i32>} : memref<8x32xf32, #tpu.memory_space<vmem>>, vector<8x1xf32>,
    %cst_114 = arith.constant 2.25806451 : f32
    %185 = vector.broadcast %cst_114 : f32 to vector<8x640xf32>
    %186 = arith.cmpf olt, %3, %185 : vector<8x640xf32>
    %cst_115 = arith.constant 1.000000e+00 : f32
    %cst_116 = arith.constant 0.000000e+00 : f32
    %187 = vector.broadcast %cst_115 : f32 to vector<8x640xf32>
    %188 = vector.broadcast %cst_116 : f32 to vector<8x640xf32>
    %189 = arith.select %186, %187, %188 : vector<8x640xi1>, vector<8x640xf32>
    %cst_117 = arith.constant dense<0.000000e+00> : vector<8xf32>
    %190 = vector.multi_reduction <add>, %189, %cst_117 [1] : vector<8x640xf32> to vector<8xf32>
    %191 = vector.shape_cast %190 : vector<8xf32> to vector<8x1xf32>
    %cst_118 = arith.constant 2.25806451 : f32
    %192 = vector.broadcast %cst_118 : f32 to vector<8x640xf32>
    %193 = arith.cmpf olt, %4, %192 : vector<8x640xf32>
    %cst_119 = arith.constant 1.000000e+00 : f32
    %cst_120 = arith.constant 0.000000e+00 : f32
    %194 = vector.broadcast %cst_119 : f32 to vector<8x640xf32>
    %195 = vector.broadcast %cst_120 : f32 to vector<8x640xf32>
    %196 = arith.select %193, %194, %195 : vector<8x640xi1>, vector<8x640xf32>
    %cst_121 = arith.constant dense<0.000000e+00> : vector<8xf32>
    %197 = vector.multi_reduction <add>, %196, %cst_121 [1] : vector<8x640xf32> to vector<8xf32>
    %198 = vector.shape_cast %197 : vector<8xf32> to vector<8x1xf32>
    %c0_122 = arith.constant 0 : index
    %c10 = arith.constant 10 : index
    %199 = vector.load %arg8[%c0_122, %c10] : memref<8x32xf32, #tpu.memory_space<vmem>>, vector<8x1xf32>
    %200 = arith.subf %191, %198 : vector<8x1xf32>
    %201 = arith.addf %199, %200 : vector<8x1xf32>
    %c0_123 = arith.constant 0 : index
    %c10_124 = arith.constant 10 : index
    %202 = vector.load %arg8[%c0_123, %c10_124] : memref<8x32xf32, #tpu.memory_space<vmem>>, vector<8x1xf32>
    tpu.vector_store %arg8[%c0_123, %c10_124], %201 {strides = array<i32>} : memref<8x32xf32, #tpu.memory_space<vmem>>, vector<8x1xf32>,
    %cst_125 = arith.constant 2.48387098 : f32
    %203 = vector.broadcast %cst_125 : f32 to vector<8x640xf32>
    %204 = arith.cmpf olt, %3, %203 : vector<8x640xf32>
    %cst_126 = arith.constant 1.000000e+00 : f32
    %cst_127 = arith.constant 0.000000e+00 : f32
    %205 = vector.broadcast %cst_126 : f32 to vector<8x640xf32>
    %206 = vector.broadcast %cst_127 : f32 to vector<8x640xf32>
    %207 = arith.select %204, %205, %206 : vector<8x640xi1>, vector<8x640xf32>
    %cst_128 = arith.constant dense<0.000000e+00> : vector<8xf32>
    %208 = vector.multi_reduction <add>, %207, %cst_128 [1] : vector<8x640xf32> to vector<8xf32>
    %209 = vector.shape_cast %208 : vector<8xf32> to vector<8x1xf32>
    %cst_129 = arith.constant 2.48387098 : f32
    %210 = vector.broadcast %cst_129 : f32 to vector<8x640xf32>
    %211 = arith.cmpf olt, %4, %210 : vector<8x640xf32>
    %cst_130 = arith.constant 1.000000e+00 : f32
    %cst_131 = arith.constant 0.000000e+00 : f32
    %212 = vector.broadcast %cst_130 : f32 to vector<8x640xf32>
    %213 = vector.broadcast %cst_131 : f32 to vector<8x640xf32>
    %214 = arith.select %211, %212, %213 : vector<8x640xi1>, vector<8x640xf32>
    %cst_132 = arith.constant dense<0.000000e+00> : vector<8xf32>
    %215 = vector.multi_reduction <add>, %214, %cst_132 [1] : vector<8x640xf32> to vector<8xf32>
    %216 = vector.shape_cast %215 : vector<8xf32> to vector<8x1xf32>
    %c0_133 = arith.constant 0 : index
    %c11 = arith.constant 11 : index
    %217 = vector.load %arg8[%c0_133, %c11] : memref<8x32xf32, #tpu.memory_space<vmem>>, vector<8x1xf32>
    %218 = arith.subf %209, %216 : vector<8x1xf32>
    %219 = arith.addf %217, %218 : vector<8x1xf32>
    %c0_134 = arith.constant 0 : index
    %c11_135 = arith.constant 11 : index
    %220 = vector.load %arg8[%c0_134, %c11_135] : memref<8x32xf32, #tpu.memory_space<vmem>>, vector<8x1xf32>
    tpu.vector_store %arg8[%c0_134, %c11_135], %219 {strides = array<i32>} : memref<8x32xf32, #tpu.memory_space<vmem>>, vector<8x1xf32>,
    %cst_136 = arith.constant 2.70967746 : f32
    %221 = vector.broadcast %cst_136 : f32 to vector<8x640xf32>
    %222 = arith.cmpf olt, %3, %221 : vector<8x640xf32>
    %cst_137 = arith.constant 1.000000e+00 : f32
    %cst_138 = arith.constant 0.000000e+00 : f32
    %223 = vector.broadcast %cst_137 : f32 to vector<8x640xf32>
    %224 = vector.broadcast %cst_138 : f32 to vector<8x640xf32>
    %225 = arith.select %222, %223, %224 : vector<8x640xi1>, vector<8x640xf32>
    %cst_139 = arith.constant dense<0.000000e+00> : vector<8xf32>
    %226 = vector.multi_reduction <add>, %225, %cst_139 [1] : vector<8x640xf32> to vector<8xf32>
    %227 = vector.shape_cast %226 : vector<8xf32> to vector<8x1xf32>
    %cst_140 = arith.constant 2.70967746 : f32
    %228 = vector.broadcast %cst_140 : f32 to vector<8x640xf32>
    %229 = arith.cmpf olt, %4, %228 : vector<8x640xf32>
    %cst_141 = arith.constant 1.000000e+00 : f32
    %cst_142 = arith.constant 0.000000e+00 : f32
    %230 = vector.broadcast %cst_141 : f32 to vector<8x640xf32>
    %231 = vector.broadcast %cst_142 : f32 to vector<8x640xf32>
    %232 = arith.select %229, %230, %231 : vector<8x640xi1>, vector<8x640xf32>
    %cst_143 = arith.constant dense<0.000000e+00> : vector<8xf32>
    %233 = vector.multi_reduction <add>, %232, %cst_143 [1] : vector<8x640xf32> to vector<8xf32>
    %234 = vector.shape_cast %233 : vector<8xf32> to vector<8x1xf32>
    %c0_144 = arith.constant 0 : index
    %c12 = arith.constant 12 : index
    %235 = vector.load %arg8[%c0_144, %c12] : memref<8x32xf32, #tpu.memory_space<vmem>>, vector<8x1xf32>
    %236 = arith.subf %227, %234 : vector<8x1xf32>
    %237 = arith.addf %235, %236 : vector<8x1xf32>
    %c0_145 = arith.constant 0 : index
    %c12_146 = arith.constant 12 : index
    %238 = vector.load %arg8[%c0_145, %c12_146] : memref<8x32xf32, #tpu.memory_space<vmem>>, vector<8x1xf32>
    tpu.vector_store %arg8[%c0_145, %c12_146], %237 {strides = array<i32>} : memref<8x32xf32, #tpu.memory_space<vmem>>, vector<8x1xf32>,
    %cst_147 = arith.constant 2.93548393 : f32
    %239 = vector.broadcast %cst_147 : f32 to vector<8x640xf32>
    %240 = arith.cmpf olt, %3, %239 : vector<8x640xf32>
    %cst_148 = arith.constant 1.000000e+00 : f32
    %cst_149 = arith.constant 0.000000e+00 : f32
    %241 = vector.broadcast %cst_148 : f32 to vector<8x640xf32>
    %242 = vector.broadcast %cst_149 : f32 to vector<8x640xf32>
    %243 = arith.select %240, %241, %242 : vector<8x640xi1>, vector<8x640xf32>
    %cst_150 = arith.constant dense<0.000000e+00> : vector<8xf32>
    %244 = vector.multi_reduction <add>, %243, %cst_150 [1] : vector<8x640xf32> to vector<8xf32>
    %245 = vector.shape_cast %244 : vector<8xf32> to vector<8x1xf32>
    %cst_151 = arith.constant 2.93548393 : f32
    %246 = vector.broadcast %cst_151 : f32 to vector<8x640xf32>
    %247 = arith.cmpf olt, %4, %246 : vector<8x640xf32>
    %cst_152 = arith.constant 1.000000e+00 : f32
    %cst_153 = arith.constant 0.000000e+00 : f32
    %248 = vector.broadcast %cst_152 : f32 to vector<8x640xf32>
    %249 = vector.broadcast %cst_153 : f32 to vector<8x640xf32>
    %250 = arith.select %247, %248, %249 : vector<8x640xi1>, vector<8x640xf32>
    %cst_154 = arith.constant dense<0.000000e+00> : vector<8xf32>
    %251 = vector.multi_reduction <add>, %250, %cst_154 [1] : vector<8x640xf32> to vector<8xf32>
    %252 = vector.shape_cast %251 : vector<8xf32> to vector<8x1xf32>
    %c0_155 = arith.constant 0 : index
    %c13 = arith.constant 13 : index
    %253 = vector.load %arg8[%c0_155, %c13] : memref<8x32xf32, #tpu.memory_space<vmem>>, vector<8x1xf32>
    %254 = arith.subf %245, %252 : vector<8x1xf32>
    %255 = arith.addf %253, %254 : vector<8x1xf32>
    %c0_156 = arith.constant 0 : index
    %c13_157 = arith.constant 13 : index
    %256 = vector.load %arg8[%c0_156, %c13_157] : memref<8x32xf32, #tpu.memory_space<vmem>>, vector<8x1xf32>
    tpu.vector_store %arg8[%c0_156, %c13_157], %255 {strides = array<i32>} : memref<8x32xf32, #tpu.memory_space<vmem>>, vector<8x1xf32>,
    %cst_158 = arith.constant 3.16129041 : f32
    %257 = vector.broadcast %cst_158 : f32 to vector<8x640xf32>
    %258 = arith.cmpf olt, %3, %257 : vector<8x640xf32>
    %cst_159 = arith.constant 1.000000e+00 : f32
    %cst_160 = arith.constant 0.000000e+00 : f32
    %259 = vector.broadcast %cst_159 : f32 to vector<8x640xf32>
    %260 = vector.broadcast %cst_160 : f32 to vector<8x640xf32>
    %261 = arith.select %258, %259, %260 : vector<8x640xi1>, vector<8x640xf32>
    %cst_161 = arith.constant dense<0.000000e+00> : vector<8xf32>
    %262 = vector.multi_reduction <add>, %261, %cst_161 [1] : vector<8x640xf32> to vector<8xf32>
    %263 = vector.shape_cast %262 : vector<8xf32> to vector<8x1xf32>
    %cst_162 = arith.constant 3.16129041 : f32
    %264 = vector.broadcast %cst_162 : f32 to vector<8x640xf32>
    %265 = arith.cmpf olt, %4, %264 : vector<8x640xf32>
    %cst_163 = arith.constant 1.000000e+00 : f32
    %cst_164 = arith.constant 0.000000e+00 : f32
    %266 = vector.broadcast %cst_163 : f32 to vector<8x640xf32>
    %267 = vector.broadcast %cst_164 : f32 to vector<8x640xf32>
    %268 = arith.select %265, %266, %267 : vector<8x640xi1>, vector<8x640xf32>
    %cst_165 = arith.constant dense<0.000000e+00> : vector<8xf32>
    %269 = vector.multi_reduction <add>, %268, %cst_165 [1] : vector<8x640xf32> to vector<8xf32>
    %270 = vector.shape_cast %269 : vector<8xf32> to vector<8x1xf32>
    %c0_166 = arith.constant 0 : index
    %c14 = arith.constant 14 : index
    %271 = vector.load %arg8[%c0_166, %c14] : memref<8x32xf32, #tpu.memory_space<vmem>>, vector<8x1xf32>
    %272 = arith.subf %263, %270 : vector<8x1xf32>
    %273 = arith.addf %271, %272 : vector<8x1xf32>
    %c0_167 = arith.constant 0 : index
    %c14_168 = arith.constant 14 : index
    %274 = vector.load %arg8[%c0_167, %c14_168] : memref<8x32xf32, #tpu.memory_space<vmem>>, vector<8x1xf32>
    tpu.vector_store %arg8[%c0_167, %c14_168], %273 {strides = array<i32>} : memref<8x32xf32, #tpu.memory_space<vmem>>, vector<8x1xf32>,
    %cst_169 = arith.constant 3.38709688 : f32
    %275 = vector.broadcast %cst_169 : f32 to vector<8x640xf32>
    %276 = arith.cmpf olt, %3, %275 : vector<8x640xf32>
    %cst_170 = arith.constant 1.000000e+00 : f32
    %cst_171 = arith.constant 0.000000e+00 : f32
    %277 = vector.broadcast %cst_170 : f32 to vector<8x640xf32>
    %278 = vector.broadcast %cst_171 : f32 to vector<8x640xf32>
    %279 = arith.select %276, %277, %278 : vector<8x640xi1>, vector<8x640xf32>
    %cst_172 = arith.constant dense<0.000000e+00> : vector<8xf32>
    %280 = vector.multi_reduction <add>, %279, %cst_172 [1] : vector<8x640xf32> to vector<8xf32>
    %281 = vector.shape_cast %280 : vector<8xf32> to vector<8x1xf32>
    %cst_173 = arith.constant 3.38709688 : f32
    %282 = vector.broadcast %cst_173 : f32 to vector<8x640xf32>
    %283 = arith.cmpf olt, %4, %282 : vector<8x640xf32>
    %cst_174 = arith.constant 1.000000e+00 : f32
    %cst_175 = arith.constant 0.000000e+00 : f32
    %284 = vector.broadcast %cst_174 : f32 to vector<8x640xf32>
    %285 = vector.broadcast %cst_175 : f32 to vector<8x640xf32>
    %286 = arith.select %283, %284, %285 : vector<8x640xi1>, vector<8x640xf32>
    %cst_176 = arith.constant dense<0.000000e+00> : vector<8xf32>
    %287 = vector.multi_reduction <add>, %286, %cst_176 [1] : vector<8x640xf32> to vector<8xf32>
    %288 = vector.shape_cast %287 : vector<8xf32> to vector<8x1xf32>
    %c0_177 = arith.constant 0 : index
    %c15 = arith.constant 15 : index
    %289 = vector.load %arg8[%c0_177, %c15] : memref<8x32xf32, #tpu.memory_space<vmem>>, vector<8x1xf32>
    %290 = arith.subf %281, %288 : vector<8x1xf32>
    %291 = arith.addf %289, %290 : vector<8x1xf32>
    %c0_178 = arith.constant 0 : index
    %c15_179 = arith.constant 15 : index
    %292 = vector.load %arg8[%c0_178, %c15_179] : memref<8x32xf32, #tpu.memory_space<vmem>>, vector<8x1xf32>
    tpu.vector_store %arg8[%c0_178, %c15_179], %291 {strides = array<i32>} : memref<8x32xf32, #tpu.memory_space<vmem>>, vector<8x1xf32>,
    %cst_180 = arith.constant 3.61290312 : f32
    %293 = vector.broadcast %cst_180 : f32 to vector<8x640xf32>
    %294 = arith.cmpf olt, %3, %293 : vector<8x640xf32>
    %cst_181 = arith.constant 1.000000e+00 : f32
    %cst_182 = arith.constant 0.000000e+00 : f32
    %295 = vector.broadcast %cst_181 : f32 to vector<8x640xf32>
    %296 = vector.broadcast %cst_182 : f32 to vector<8x640xf32>
    %297 = arith.select %294, %295, %296 : vector<8x640xi1>, vector<8x640xf32>
    %cst_183 = arith.constant dense<0.000000e+00> : vector<8xf32>
    %298 = vector.multi_reduction <add>, %297, %cst_183 [1] : vector<8x640xf32> to vector<8xf32>
    %299 = vector.shape_cast %298 : vector<8xf32> to vector<8x1xf32>
    %cst_184 = arith.constant 3.61290312 : f32
    %300 = vector.broadcast %cst_184 : f32 to vector<8x640xf32>
    %301 = arith.cmpf olt, %4, %300 : vector<8x640xf32>
    %cst_185 = arith.constant 1.000000e+00 : f32
    %cst_186 = arith.constant 0.000000e+00 : f32
    %302 = vector.broadcast %cst_185 : f32 to vector<8x640xf32>
    %303 = vector.broadcast %cst_186 : f32 to vector<8x640xf32>
    %304 = arith.select %301, %302, %303 : vector<8x640xi1>, vector<8x640xf32>
    %cst_187 = arith.constant dense<0.000000e+00> : vector<8xf32>
    %305 = vector.multi_reduction <add>, %304, %cst_187 [1] : vector<8x640xf32> to vector<8xf32>
    %306 = vector.shape_cast %305 : vector<8xf32> to vector<8x1xf32>
    %c0_188 = arith.constant 0 : index
    %c16 = arith.constant 16 : index
    %307 = vector.load %arg8[%c0_188, %c16] : memref<8x32xf32, #tpu.memory_space<vmem>>, vector<8x1xf32>
    %308 = arith.subf %299, %306 : vector<8x1xf32>
    %309 = arith.addf %307, %308 : vector<8x1xf32>
    %c0_189 = arith.constant 0 : index
    %c16_190 = arith.constant 16 : index
    %310 = vector.load %arg8[%c0_189, %c16_190] : memref<8x32xf32, #tpu.memory_space<vmem>>, vector<8x1xf32>
    tpu.vector_store %arg8[%c0_189, %c16_190], %309 {strides = array<i32>} : memref<8x32xf32, #tpu.memory_space<vmem>>, vector<8x1xf32>,
    %cst_191 = arith.constant 3.83870959 : f32
    %311 = vector.broadcast %cst_191 : f32 to vector<8x640xf32>
    %312 = arith.cmpf olt, %3, %311 : vector<8x640xf32>
    %cst_192 = arith.constant 1.000000e+00 : f32
    %cst_193 = arith.constant 0.000000e+00 : f32
    %313 = vector.broadcast %cst_192 : f32 to vector<8x640xf32>
    %314 = vector.broadcast %cst_193 : f32 to vector<8x640xf32>
    %315 = arith.select %312, %313, %314 : vector<8x640xi1>, vector<8x640xf32>
    %cst_194 = arith.constant dense<0.000000e+00> : vector<8xf32>
    %316 = vector.multi_reduction <add>, %315, %cst_194 [1] : vector<8x640xf32> to vector<8xf32>
    %317 = vector.shape_cast %316 : vector<8xf32> to vector<8x1xf32>
    %cst_195 = arith.constant 3.83870959 : f32
    %318 = vector.broadcast %cst_195 : f32 to vector<8x640xf32>
    %319 = arith.cmpf olt, %4, %318 : vector<8x640xf32>
    %cst_196 = arith.constant 1.000000e+00 : f32
    %cst_197 = arith.constant 0.000000e+00 : f32
    %320 = vector.broadcast %cst_196 : f32 to vector<8x640xf32>
    %321 = vector.broadcast %cst_197 : f32 to vector<8x640xf32>
    %322 = arith.select %319, %320, %321 : vector<8x640xi1>, vector<8x640xf32>
    %cst_198 = arith.constant dense<0.000000e+00> : vector<8xf32>
    %323 = vector.multi_reduction <add>, %322, %cst_198 [1] : vector<8x640xf32> to vector<8xf32>
    %324 = vector.shape_cast %323 : vector<8xf32> to vector<8x1xf32>
    %c0_199 = arith.constant 0 : index
    %c17 = arith.constant 17 : index
    %325 = vector.load %arg8[%c0_199, %c17] : memref<8x32xf32, #tpu.memory_space<vmem>>, vector<8x1xf32>
    %326 = arith.subf %317, %324 : vector<8x1xf32>
    %327 = arith.addf %325, %326 : vector<8x1xf32>
    %c0_200 = arith.constant 0 : index
    %c17_201 = arith.constant 17 : index
    %328 = vector.load %arg8[%c0_200, %c17_201] : memref<8x32xf32, #tpu.memory_space<vmem>>, vector<8x1xf32>
    tpu.vector_store %arg8[%c0_200, %c17_201], %327 {strides = array<i32>} : memref<8x32xf32, #tpu.memory_space<vmem>>, vector<8x1xf32>,
    %cst_202 = arith.constant 4.06451607 : f32
    %329 = vector.broadcast %cst_202 : f32 to vector<8x640xf32>
    %330 = arith.cmpf olt, %3, %329 : vector<8x640xf32>
    %cst_203 = arith.constant 1.000000e+00 : f32
    %cst_204 = arith.constant 0.000000e+00 : f32
    %331 = vector.broadcast %cst_203 : f32 to vector<8x640xf32>
    %332 = vector.broadcast %cst_204 : f32 to vector<8x640xf32>
    %333 = arith.select %330, %331, %332 : vector<8x640xi1>, vector<8x640xf32>
    %cst_205 = arith.constant dense<0.000000e+00> : vector<8xf32>
    %334 = vector.multi_reduction <add>, %333, %cst_205 [1] : vector<8x640xf32> to vector<8xf32>
    %335 = vector.shape_cast %334 : vector<8xf32> to vector<8x1xf32>
    %cst_206 = arith.constant 4.06451607 : f32
    %336 = vector.broadcast %cst_206 : f32 to vector<8x640xf32>
    %337 = arith.cmpf olt, %4, %336 : vector<8x640xf32>
    %cst_207 = arith.constant 1.000000e+00 : f32
    %cst_208 = arith.constant 0.000000e+00 : f32
    %338 = vector.broadcast %cst_207 : f32 to vector<8x640xf32>
    %339 = vector.broadcast %cst_208 : f32 to vector<8x640xf32>
    %340 = arith.select %337, %338, %339 : vector<8x640xi1>, vector<8x640xf32>
    %cst_209 = arith.constant dense<0.000000e+00> : vector<8xf32>
    %341 = vector.multi_reduction <add>, %340, %cst_209 [1] : vector<8x640xf32> to vector<8xf32>
    %342 = vector.shape_cast %341 : vector<8xf32> to vector<8x1xf32>
    %c0_210 = arith.constant 0 : index
    %c18 = arith.constant 18 : index
    %343 = vector.load %arg8[%c0_210, %c18] : memref<8x32xf32, #tpu.memory_space<vmem>>, vector<8x1xf32>
    %344 = arith.subf %335, %342 : vector<8x1xf32>
    %345 = arith.addf %343, %344 : vector<8x1xf32>
    %c0_211 = arith.constant 0 : index
    %c18_212 = arith.constant 18 : index
    %346 = vector.load %arg8[%c0_211, %c18_212] : memref<8x32xf32, #tpu.memory_space<vmem>>, vector<8x1xf32>
    tpu.vector_store %arg8[%c0_211, %c18_212], %345 {strides = array<i32>} : memref<8x32xf32, #tpu.memory_space<vmem>>, vector<8x1xf32>,
    %cst_213 = arith.constant 4.29032278 : f32
    %347 = vector.broadcast %cst_213 : f32 to vector<8x640xf32>
    %348 = arith.cmpf olt, %3, %347 : vector<8x640xf32>
    %cst_214 = arith.constant 1.000000e+00 : f32
    %cst_215 = arith.constant 0.000000e+00 : f32
    %349 = vector.broadcast %cst_214 : f32 to vector<8x640xf32>
    %350 = vector.broadcast %cst_215 : f32 to vector<8x640xf32>
    %351 = arith.select %348, %349, %350 : vector<8x640xi1>, vector<8x640xf32>
    %cst_216 = arith.constant dense<0.000000e+00> : vector<8xf32>
    %352 = vector.multi_reduction <add>, %351, %cst_216 [1] : vector<8x640xf32> to vector<8xf32>
    %353 = vector.shape_cast %352 : vector<8xf32> to vector<8x1xf32>
    %cst_217 = arith.constant 4.29032278 : f32
    %354 = vector.broadcast %cst_217 : f32 to vector<8x640xf32>
    %355 = arith.cmpf olt, %4, %354 : vector<8x640xf32>
    %cst_218 = arith.constant 1.000000e+00 : f32
    %cst_219 = arith.constant 0.000000e+00 : f32
    %356 = vector.broadcast %cst_218 : f32 to vector<8x640xf32>
    %357 = vector.broadcast %cst_219 : f32 to vector<8x640xf32>
    %358 = arith.select %355, %356, %357 : vector<8x640xi1>, vector<8x640xf32>
    %cst_220 = arith.constant dense<0.000000e+00> : vector<8xf32>
    %359 = vector.multi_reduction <add>, %358, %cst_220 [1] : vector<8x640xf32> to vector<8xf32>
    %360 = vector.shape_cast %359 : vector<8xf32> to vector<8x1xf32>
    %c0_221 = arith.constant 0 : index
    %c19 = arith.constant 19 : index
    %361 = vector.load %arg8[%c0_221, %c19] : memref<8x32xf32, #tpu.memory_space<vmem>>, vector<8x1xf32>
    %362 = arith.subf %353, %360 : vector<8x1xf32>
    %363 = arith.addf %361, %362 : vector<8x1xf32>
    %c0_222 = arith.constant 0 : index
    %c19_223 = arith.constant 19 : index
    %364 = vector.load %arg8[%c0_222, %c19_223] : memref<8x32xf32, #tpu.memory_space<vmem>>, vector<8x1xf32>
    tpu.vector_store %arg8[%c0_222, %c19_223], %363 {strides = array<i32>} : memref<8x32xf32, #tpu.memory_space<vmem>>, vector<8x1xf32>,
    %cst_224 = arith.constant 4.51612902 : f32
    %365 = vector.broadcast %cst_224 : f32 to vector<8x640xf32>
    %366 = arith.cmpf olt, %3, %365 : vector<8x640xf32>
    %cst_225 = arith.constant 1.000000e+00 : f32
    %cst_226 = arith.constant 0.000000e+00 : f32
    %367 = vector.broadcast %cst_225 : f32 to vector<8x640xf32>
    %368 = vector.broadcast %cst_226 : f32 to vector<8x640xf32>
    %369 = arith.select %366, %367, %368 : vector<8x640xi1>, vector<8x640xf32>
    %cst_227 = arith.constant dense<0.000000e+00> : vector<8xf32>
    %370 = vector.multi_reduction <add>, %369, %cst_227 [1] : vector<8x640xf32> to vector<8xf32>
    %371 = vector.shape_cast %370 : vector<8xf32> to vector<8x1xf32>
    %cst_228 = arith.constant 4.51612902 : f32
    %372 = vector.broadcast %cst_228 : f32 to vector<8x640xf32>
    %373 = arith.cmpf olt, %4, %372 : vector<8x640xf32>
    %cst_229 = arith.constant 1.000000e+00 : f32
    %cst_230 = arith.constant 0.000000e+00 : f32
    %374 = vector.broadcast %cst_229 : f32 to vector<8x640xf32>
    %375 = vector.broadcast %cst_230 : f32 to vector<8x640xf32>
    %376 = arith.select %373, %374, %375 : vector<8x640xi1>, vector<8x640xf32>
    %cst_231 = arith.constant dense<0.000000e+00> : vector<8xf32>
    %377 = vector.multi_reduction <add>, %376, %cst_231 [1] : vector<8x640xf32> to vector<8xf32>
    %378 = vector.shape_cast %377 : vector<8xf32> to vector<8x1xf32>
    %c0_232 = arith.constant 0 : index
    %c20 = arith.constant 20 : index
    %379 = vector.load %arg8[%c0_232, %c20] : memref<8x32xf32, #tpu.memory_space<vmem>>, vector<8x1xf32>
    %380 = arith.subf %371, %378 : vector<8x1xf32>
    %381 = arith.addf %379, %380 : vector<8x1xf32>
    %c0_233 = arith.constant 0 : index
    %c20_234 = arith.constant 20 : index
    %382 = vector.load %arg8[%c0_233, %c20_234] : memref<8x32xf32, #tpu.memory_space<vmem>>, vector<8x1xf32>
    tpu.vector_store %arg8[%c0_233, %c20_234], %381 {strides = array<i32>} : memref<8x32xf32, #tpu.memory_space<vmem>>, vector<8x1xf32>,
    %cst_235 = arith.constant 4.74193525 : f32
    %383 = vector.broadcast %cst_235 : f32 to vector<8x640xf32>
    %384 = arith.cmpf olt, %3, %383 : vector<8x640xf32>
    %cst_236 = arith.constant 1.000000e+00 : f32
    %cst_237 = arith.constant 0.000000e+00 : f32
    %385 = vector.broadcast %cst_236 : f32 to vector<8x640xf32>
    %386 = vector.broadcast %cst_237 : f32 to vector<8x640xf32>
    %387 = arith.select %384, %385, %386 : vector<8x640xi1>, vector<8x640xf32>
    %cst_238 = arith.constant dense<0.000000e+00> : vector<8xf32>
    %388 = vector.multi_reduction <add>, %387, %cst_238 [1] : vector<8x640xf32> to vector<8xf32>
    %389 = vector.shape_cast %388 : vector<8xf32> to vector<8x1xf32>
    %cst_239 = arith.constant 4.74193525 : f32
    %390 = vector.broadcast %cst_239 : f32 to vector<8x640xf32>
    %391 = arith.cmpf olt, %4, %390 : vector<8x640xf32>
    %cst_240 = arith.constant 1.000000e+00 : f32
    %cst_241 = arith.constant 0.000000e+00 : f32
    %392 = vector.broadcast %cst_240 : f32 to vector<8x640xf32>
    %393 = vector.broadcast %cst_241 : f32 to vector<8x640xf32>
    %394 = arith.select %391, %392, %393 : vector<8x640xi1>, vector<8x640xf32>
    %cst_242 = arith.constant dense<0.000000e+00> : vector<8xf32>
    %395 = vector.multi_reduction <add>, %394, %cst_242 [1] : vector<8x640xf32> to vector<8xf32>
    %396 = vector.shape_cast %395 : vector<8xf32> to vector<8x1xf32>
    %c0_243 = arith.constant 0 : index
    %c21 = arith.constant 21 : index
    %397 = vector.load %arg8[%c0_243, %c21] : memref<8x32xf32, #tpu.memory_space<vmem>>, vector<8x1xf32>
    %398 = arith.subf %389, %396 : vector<8x1xf32>
    %399 = arith.addf %397, %398 : vector<8x1xf32>
    %c0_244 = arith.constant 0 : index
    %c21_245 = arith.constant 21 : index
    %400 = vector.load %arg8[%c0_244, %c21_245] : memref<8x32xf32, #tpu.memory_space<vmem>>, vector<8x1xf32>
    tpu.vector_store %arg8[%c0_244, %c21_245], %399 {strides = array<i32>} : memref<8x32xf32, #tpu.memory_space<vmem>>, vector<8x1xf32>,
    %cst_246 = arith.constant 4.96774197 : f32
    %401 = vector.broadcast %cst_246 : f32 to vector<8x640xf32>
    %402 = arith.cmpf olt, %3, %401 : vector<8x640xf32>
    %cst_247 = arith.constant 1.000000e+00 : f32
    %cst_248 = arith.constant 0.000000e+00 : f32
    %403 = vector.broadcast %cst_247 : f32 to vector<8x640xf32>
    %404 = vector.broadcast %cst_248 : f32 to vector<8x640xf32>
    %405 = arith.select %402, %403, %404 : vector<8x640xi1>, vector<8x640xf32>
    %cst_249 = arith.constant dense<0.000000e+00> : vector<8xf32>
    %406 = vector.multi_reduction <add>, %405, %cst_249 [1] : vector<8x640xf32> to vector<8xf32>
    %407 = vector.shape_cast %406 : vector<8xf32> to vector<8x1xf32>
    %cst_250 = arith.constant 4.96774197 : f32
    %408 = vector.broadcast %cst_250 : f32 to vector<8x640xf32>
    %409 = arith.cmpf olt, %4, %408 : vector<8x640xf32>
    %cst_251 = arith.constant 1.000000e+00 : f32
    %cst_252 = arith.constant 0.000000e+00 : f32
    %410 = vector.broadcast %cst_251 : f32 to vector<8x640xf32>
    %411 = vector.broadcast %cst_252 : f32 to vector<8x640xf32>
    %412 = arith.select %409, %410, %411 : vector<8x640xi1>, vector<8x640xf32>
    %cst_253 = arith.constant dense<0.000000e+00> : vector<8xf32>
    %413 = vector.multi_reduction <add>, %412, %cst_253 [1] : vector<8x640xf32> to vector<8xf32>
    %414 = vector.shape_cast %413 : vector<8xf32> to vector<8x1xf32>
    %c0_254 = arith.constant 0 : index
    %c22 = arith.constant 22 : index
    %415 = vector.load %arg8[%c0_254, %c22] : memref<8x32xf32, #tpu.memory_space<vmem>>, vector<8x1xf32>
    %416 = arith.subf %407, %414 : vector<8x1xf32>
    %417 = arith.addf %415, %416 : vector<8x1xf32>
    %c0_255 = arith.constant 0 : index
    %c22_256 = arith.constant 22 : index
    %418 = vector.load %arg8[%c0_255, %c22_256] : memref<8x32xf32, #tpu.memory_space<vmem>>, vector<8x1xf32>
    tpu.vector_store %arg8[%c0_255, %c22_256], %417 {strides = array<i32>} : memref<8x32xf32, #tpu.memory_space<vmem>>, vector<8x1xf32>,
    %cst_257 = arith.constant 5.1935482 : f32
    %419 = vector.broadcast %cst_257 : f32 to vector<8x640xf32>
    %420 = arith.cmpf olt, %3, %419 : vector<8x640xf32>
    %cst_258 = arith.constant 1.000000e+00 : f32
    %cst_259 = arith.constant 0.000000e+00 : f32
    %421 = vector.broadcast %cst_258 : f32 to vector<8x640xf32>
    %422 = vector.broadcast %cst_259 : f32 to vector<8x640xf32>
    %423 = arith.select %420, %421, %422 : vector<8x640xi1>, vector<8x640xf32>
    %cst_260 = arith.constant dense<0.000000e+00> : vector<8xf32>
    %424 = vector.multi_reduction <add>, %423, %cst_260 [1] : vector<8x640xf32> to vector<8xf32>
    %425 = vector.shape_cast %424 : vector<8xf32> to vector<8x1xf32>
    %cst_261 = arith.constant 5.1935482 : f32
    %426 = vector.broadcast %cst_261 : f32 to vector<8x640xf32>
    %427 = arith.cmpf olt, %4, %426 : vector<8x640xf32>
    %cst_262 = arith.constant 1.000000e+00 : f32
    %cst_263 = arith.constant 0.000000e+00 : f32
    %428 = vector.broadcast %cst_262 : f32 to vector<8x640xf32>
    %429 = vector.broadcast %cst_263 : f32 to vector<8x640xf32>
    %430 = arith.select %427, %428, %429 : vector<8x640xi1>, vector<8x640xf32>
    %cst_264 = arith.constant dense<0.000000e+00> : vector<8xf32>
    %431 = vector.multi_reduction <add>, %430, %cst_264 [1] : vector<8x640xf32> to vector<8xf32>
    %432 = vector.shape_cast %431 : vector<8xf32> to vector<8x1xf32>
    %c0_265 = arith.constant 0 : index
    %c23 = arith.constant 23 : index
    %433 = vector.load %arg8[%c0_265, %c23] : memref<8x32xf32, #tpu.memory_space<vmem>>, vector<8x1xf32>
    %434 = arith.subf %425, %432 : vector<8x1xf32>
    %435 = arith.addf %433, %434 : vector<8x1xf32>
    %c0_266 = arith.constant 0 : index
    %c23_267 = arith.constant 23 : index
    %436 = vector.load %arg8[%c0_266, %c23_267] : memref<8x32xf32, #tpu.memory_space<vmem>>, vector<8x1xf32>
    tpu.vector_store %arg8[%c0_266, %c23_267], %435 {strides = array<i32>} : memref<8x32xf32, #tpu.memory_space<vmem>>, vector<8x1xf32>,
    %cst_268 = arith.constant 5.41935492 : f32
    %437 = vector.broadcast %cst_268 : f32 to vector<8x640xf32>
    %438 = arith.cmpf olt, %3, %437 : vector<8x640xf32>
    %cst_269 = arith.constant 1.000000e+00 : f32
    %cst_270 = arith.constant 0.000000e+00 : f32
    %439 = vector.broadcast %cst_269 : f32 to vector<8x640xf32>
    %440 = vector.broadcast %cst_270 : f32 to vector<8x640xf32>
    %441 = arith.select %438, %439, %440 : vector<8x640xi1>, vector<8x640xf32>
    %cst_271 = arith.constant dense<0.000000e+00> : vector<8xf32>
    %442 = vector.multi_reduction <add>, %441, %cst_271 [1] : vector<8x640xf32> to vector<8xf32>
    %443 = vector.shape_cast %442 : vector<8xf32> to vector<8x1xf32>
    %cst_272 = arith.constant 5.41935492 : f32
    %444 = vector.broadcast %cst_272 : f32 to vector<8x640xf32>
    %445 = arith.cmpf olt, %4, %444 : vector<8x640xf32>
    %cst_273 = arith.constant 1.000000e+00 : f32
    %cst_274 = arith.constant 0.000000e+00 : f32
    %446 = vector.broadcast %cst_273 : f32 to vector<8x640xf32>
    %447 = vector.broadcast %cst_274 : f32 to vector<8x640xf32>
    %448 = arith.select %445, %446, %447 : vector<8x640xi1>, vector<8x640xf32>
    %cst_275 = arith.constant dense<0.000000e+00> : vector<8xf32>
    %449 = vector.multi_reduction <add>, %448, %cst_275 [1] : vector<8x640xf32> to vector<8xf32>
    %450 = vector.shape_cast %449 : vector<8xf32> to vector<8x1xf32>
    %c0_276 = arith.constant 0 : index
    %c24 = arith.constant 24 : index
    %451 = vector.load %arg8[%c0_276, %c24] : memref<8x32xf32, #tpu.memory_space<vmem>>, vector<8x1xf32>
    %452 = arith.subf %443, %450 : vector<8x1xf32>
    %453 = arith.addf %451, %452 : vector<8x1xf32>
    %c0_277 = arith.constant 0 : index
    %c24_278 = arith.constant 24 : index
    %454 = vector.load %arg8[%c0_277, %c24_278] : memref<8x32xf32, #tpu.memory_space<vmem>>, vector<8x1xf32>
    tpu.vector_store %arg8[%c0_277, %c24_278], %453 {strides = array<i32>} : memref<8x32xf32, #tpu.memory_space<vmem>>, vector<8x1xf32>,
    %cst_279 = arith.constant 5.64516115 : f32
    %455 = vector.broadcast %cst_279 : f32 to vector<8x640xf32>
    %456 = arith.cmpf olt, %3, %455 : vector<8x640xf32>
    %cst_280 = arith.constant 1.000000e+00 : f32
    %cst_281 = arith.constant 0.000000e+00 : f32
    %457 = vector.broadcast %cst_280 : f32 to vector<8x640xf32>
    %458 = vector.broadcast %cst_281 : f32 to vector<8x640xf32>
    %459 = arith.select %456, %457, %458 : vector<8x640xi1>, vector<8x640xf32>
    %cst_282 = arith.constant dense<0.000000e+00> : vector<8xf32>
    %460 = vector.multi_reduction <add>, %459, %cst_282 [1] : vector<8x640xf32> to vector<8xf32>
    %461 = vector.shape_cast %460 : vector<8xf32> to vector<8x1xf32>
    %cst_283 = arith.constant 5.64516115 : f32
    %462 = vector.broadcast %cst_283 : f32 to vector<8x640xf32>
    %463 = arith.cmpf olt, %4, %462 : vector<8x640xf32>
    %cst_284 = arith.constant 1.000000e+00 : f32
    %cst_285 = arith.constant 0.000000e+00 : f32
    %464 = vector.broadcast %cst_284 : f32 to vector<8x640xf32>
    %465 = vector.broadcast %cst_285 : f32 to vector<8x640xf32>
    %466 = arith.select %463, %464, %465 : vector<8x640xi1>, vector<8x640xf32>
    %cst_286 = arith.constant dense<0.000000e+00> : vector<8xf32>
    %467 = vector.multi_reduction <add>, %466, %cst_286 [1] : vector<8x640xf32> to vector<8xf32>
    %468 = vector.shape_cast %467 : vector<8xf32> to vector<8x1xf32>
    %c0_287 = arith.constant 0 : index
    %c25 = arith.constant 25 : index
    %469 = vector.load %arg8[%c0_287, %c25] : memref<8x32xf32, #tpu.memory_space<vmem>>, vector<8x1xf32>
    %470 = arith.subf %461, %468 : vector<8x1xf32>
    %471 = arith.addf %469, %470 : vector<8x1xf32>
    %c0_288 = arith.constant 0 : index
    %c25_289 = arith.constant 25 : index
    %472 = vector.load %arg8[%c0_288, %c25_289] : memref<8x32xf32, #tpu.memory_space<vmem>>, vector<8x1xf32>
    tpu.vector_store %arg8[%c0_288, %c25_289], %471 {strides = array<i32>} : memref<8x32xf32, #tpu.memory_space<vmem>>, vector<8x1xf32>,
    %cst_290 = arith.constant 5.87096786 : f32
    %473 = vector.broadcast %cst_290 : f32 to vector<8x640xf32>
    %474 = arith.cmpf olt, %3, %473 : vector<8x640xf32>
    %cst_291 = arith.constant 1.000000e+00 : f32
    %cst_292 = arith.constant 0.000000e+00 : f32
    %475 = vector.broadcast %cst_291 : f32 to vector<8x640xf32>
    %476 = vector.broadcast %cst_292 : f32 to vector<8x640xf32>
    %477 = arith.select %474, %475, %476 : vector<8x640xi1>, vector<8x640xf32>
    %cst_293 = arith.constant dense<0.000000e+00> : vector<8xf32>
    %478 = vector.multi_reduction <add>, %477, %cst_293 [1] : vector<8x640xf32> to vector<8xf32>
    %479 = vector.shape_cast %478 : vector<8xf32> to vector<8x1xf32>
    %cst_294 = arith.constant 5.87096786 : f32
    %480 = vector.broadcast %cst_294 : f32 to vector<8x640xf32>
    %481 = arith.cmpf olt, %4, %480 : vector<8x640xf32>
    %cst_295 = arith.constant 1.000000e+00 : f32
    %cst_296 = arith.constant 0.000000e+00 : f32
    %482 = vector.broadcast %cst_295 : f32 to vector<8x640xf32>
    %483 = vector.broadcast %cst_296 : f32 to vector<8x640xf32>
    %484 = arith.select %481, %482, %483 : vector<8x640xi1>, vector<8x640xf32>
    %cst_297 = arith.constant dense<0.000000e+00> : vector<8xf32>
    %485 = vector.multi_reduction <add>, %484, %cst_297 [1] : vector<8x640xf32> to vector<8xf32>
    %486 = vector.shape_cast %485 : vector<8xf32> to vector<8x1xf32>
    %c0_298 = arith.constant 0 : index
    %c26 = arith.constant 26 : index
    %487 = vector.load %arg8[%c0_298, %c26] : memref<8x32xf32, #tpu.memory_space<vmem>>, vector<8x1xf32>
    %488 = arith.subf %479, %486 : vector<8x1xf32>
    %489 = arith.addf %487, %488 : vector<8x1xf32>
    %c0_299 = arith.constant 0 : index
    %c26_300 = arith.constant 26 : index
    %490 = vector.load %arg8[%c0_299, %c26_300] : memref<8x32xf32, #tpu.memory_space<vmem>>, vector<8x1xf32>
    tpu.vector_store %arg8[%c0_299, %c26_300], %489 {strides = array<i32>} : memref<8x32xf32, #tpu.memory_space<vmem>>, vector<8x1xf32>,
    %cst_301 = arith.constant 6.0967741 : f32
    %491 = vector.broadcast %cst_301 : f32 to vector<8x640xf32>
    %492 = arith.cmpf olt, %3, %491 : vector<8x640xf32>
    %cst_302 = arith.constant 1.000000e+00 : f32
    %cst_303 = arith.constant 0.000000e+00 : f32
    %493 = vector.broadcast %cst_302 : f32 to vector<8x640xf32>
    %494 = vector.broadcast %cst_303 : f32 to vector<8x640xf32>
    %495 = arith.select %492, %493, %494 : vector<8x640xi1>, vector<8x640xf32>
    %cst_304 = arith.constant dense<0.000000e+00> : vector<8xf32>
    %496 = vector.multi_reduction <add>, %495, %cst_304 [1] : vector<8x640xf32> to vector<8xf32>
    %497 = vector.shape_cast %496 : vector<8xf32> to vector<8x1xf32>
    %cst_305 = arith.constant 6.0967741 : f32
    %498 = vector.broadcast %cst_305 : f32 to vector<8x640xf32>
    %499 = arith.cmpf olt, %4, %498 : vector<8x640xf32>
    %cst_306 = arith.constant 1.000000e+00 : f32
    %cst_307 = arith.constant 0.000000e+00 : f32
    %500 = vector.broadcast %cst_306 : f32 to vector<8x640xf32>
    %501 = vector.broadcast %cst_307 : f32 to vector<8x640xf32>
    %502 = arith.select %499, %500, %501 : vector<8x640xi1>, vector<8x640xf32>
    %cst_308 = arith.constant dense<0.000000e+00> : vector<8xf32>
    %503 = vector.multi_reduction <add>, %502, %cst_308 [1] : vector<8x640xf32> to vector<8xf32>
    %504 = vector.shape_cast %503 : vector<8xf32> to vector<8x1xf32>
    %c0_309 = arith.constant 0 : index
    %c27 = arith.constant 27 : index
    %505 = vector.load %arg8[%c0_309, %c27] : memref<8x32xf32, #tpu.memory_space<vmem>>, vector<8x1xf32>
    %506 = arith.subf %497, %504 : vector<8x1xf32>
    %507 = arith.addf %505, %506 : vector<8x1xf32>
    %c0_310 = arith.constant 0 : index
    %c27_311 = arith.constant 27 : index
    %508 = vector.load %arg8[%c0_310, %c27_311] : memref<8x32xf32, #tpu.memory_space<vmem>>, vector<8x1xf32>
    tpu.vector_store %arg8[%c0_310, %c27_311], %507 {strides = array<i32>} : memref<8x32xf32, #tpu.memory_space<vmem>>, vector<8x1xf32>,
    %cst_312 = arith.constant 6.32258081 : f32
    %509 = vector.broadcast %cst_312 : f32 to vector<8x640xf32>
    %510 = arith.cmpf olt, %3, %509 : vector<8x640xf32>
    %cst_313 = arith.constant 1.000000e+00 : f32
    %cst_314 = arith.constant 0.000000e+00 : f32
    %511 = vector.broadcast %cst_313 : f32 to vector<8x640xf32>
    %512 = vector.broadcast %cst_314 : f32 to vector<8x640xf32>
    %513 = arith.select %510, %511, %512 : vector<8x640xi1>, vector<8x640xf32>
    %cst_315 = arith.constant dense<0.000000e+00> : vector<8xf32>
    %514 = vector.multi_reduction <add>, %513, %cst_315 [1] : vector<8x640xf32> to vector<8xf32>
    %515 = vector.shape_cast %514 : vector<8xf32> to vector<8x1xf32>
    %cst_316 = arith.constant 6.32258081 : f32
    %516 = vector.broadcast %cst_316 : f32 to vector<8x640xf32>
    %517 = arith.cmpf olt, %4, %516 : vector<8x640xf32>
    %cst_317 = arith.constant 1.000000e+00 : f32
    %cst_318 = arith.constant 0.000000e+00 : f32
    %518 = vector.broadcast %cst_317 : f32 to vector<8x640xf32>
    %519 = vector.broadcast %cst_318 : f32 to vector<8x640xf32>
    %520 = arith.select %517, %518, %519 : vector<8x640xi1>, vector<8x640xf32>
    %cst_319 = arith.constant dense<0.000000e+00> : vector<8xf32>
    %521 = vector.multi_reduction <add>, %520, %cst_319 [1] : vector<8x640xf32> to vector<8xf32>
    %522 = vector.shape_cast %521 : vector<8xf32> to vector<8x1xf32>
    %c0_320 = arith.constant 0 : index
    %c28 = arith.constant 28 : index
    %523 = vector.load %arg8[%c0_320, %c28] : memref<8x32xf32, #tpu.memory_space<vmem>>, vector<8x1xf32>
    %524 = arith.subf %515, %522 : vector<8x1xf32>
    %525 = arith.addf %523, %524 : vector<8x1xf32>
    %c0_321 = arith.constant 0 : index
    %c28_322 = arith.constant 28 : index
    %526 = vector.load %arg8[%c0_321, %c28_322] : memref<8x32xf32, #tpu.memory_space<vmem>>, vector<8x1xf32>
    tpu.vector_store %arg8[%c0_321, %c28_322], %525 {strides = array<i32>} : memref<8x32xf32, #tpu.memory_space<vmem>>, vector<8x1xf32>,
    %cst_323 = arith.constant 6.54838705 : f32
    %527 = vector.broadcast %cst_323 : f32 to vector<8x640xf32>
    %528 = arith.cmpf olt, %3, %527 : vector<8x640xf32>
    %cst_324 = arith.constant 1.000000e+00 : f32
    %cst_325 = arith.constant 0.000000e+00 : f32
    %529 = vector.broadcast %cst_324 : f32 to vector<8x640xf32>
    %530 = vector.broadcast %cst_325 : f32 to vector<8x640xf32>
    %531 = arith.select %528, %529, %530 : vector<8x640xi1>, vector<8x640xf32>
    %cst_326 = arith.constant dense<0.000000e+00> : vector<8xf32>
    %532 = vector.multi_reduction <add>, %531, %cst_326 [1] : vector<8x640xf32> to vector<8xf32>
    %533 = vector.shape_cast %532 : vector<8xf32> to vector<8x1xf32>
    %cst_327 = arith.constant 6.54838705 : f32
    %534 = vector.broadcast %cst_327 : f32 to vector<8x640xf32>
    %535 = arith.cmpf olt, %4, %534 : vector<8x640xf32>
    %cst_328 = arith.constant 1.000000e+00 : f32
    %cst_329 = arith.constant 0.000000e+00 : f32
    %536 = vector.broadcast %cst_328 : f32 to vector<8x640xf32>
    %537 = vector.broadcast %cst_329 : f32 to vector<8x640xf32>
    %538 = arith.select %535, %536, %537 : vector<8x640xi1>, vector<8x640xf32>
    %cst_330 = arith.constant dense<0.000000e+00> : vector<8xf32>
    %539 = vector.multi_reduction <add>, %538, %cst_330 [1] : vector<8x640xf32> to vector<8xf32>
    %540 = vector.shape_cast %539 : vector<8xf32> to vector<8x1xf32>
    %c0_331 = arith.constant 0 : index
    %c29 = arith.constant 29 : index
    %541 = vector.load %arg8[%c0_331, %c29] : memref<8x32xf32, #tpu.memory_space<vmem>>, vector<8x1xf32>
    %542 = arith.subf %533, %540 : vector<8x1xf32>
    %543 = arith.addf %541, %542 : vector<8x1xf32>
    %c0_332 = arith.constant 0 : index
    %c29_333 = arith.constant 29 : index
    %544 = vector.load %arg8[%c0_332, %c29_333] : memref<8x32xf32, #tpu.memory_space<vmem>>, vector<8x1xf32>
    tpu.vector_store %arg8[%c0_332, %c29_333], %543 {strides = array<i32>} : memref<8x32xf32, #tpu.memory_space<vmem>>, vector<8x1xf32>,
    %cst_334 = arith.constant 6.77419376 : f32
    %545 = vector.broadcast %cst_334 : f32 to vector<8x640xf32>
    %546 = arith.cmpf olt, %3, %545 : vector<8x640xf32>
    %cst_335 = arith.constant 1.000000e+00 : f32
    %cst_336 = arith.constant 0.000000e+00 : f32
    %547 = vector.broadcast %cst_335 : f32 to vector<8x640xf32>
    %548 = vector.broadcast %cst_336 : f32 to vector<8x640xf32>
    %549 = arith.select %546, %547, %548 : vector<8x640xi1>, vector<8x640xf32>
    %cst_337 = arith.constant dense<0.000000e+00> : vector<8xf32>
    %550 = vector.multi_reduction <add>, %549, %cst_337 [1] : vector<8x640xf32> to vector<8xf32>
    %551 = vector.shape_cast %550 : vector<8xf32> to vector<8x1xf32>
    %cst_338 = arith.constant 6.77419376 : f32
    %552 = vector.broadcast %cst_338 : f32 to vector<8x640xf32>
    %553 = arith.cmpf olt, %4, %552 : vector<8x640xf32>
    %cst_339 = arith.constant 1.000000e+00 : f32
    %cst_340 = arith.constant 0.000000e+00 : f32
    %554 = vector.broadcast %cst_339 : f32 to vector<8x640xf32>
    %555 = vector.broadcast %cst_340 : f32 to vector<8x640xf32>
    %556 = arith.select %553, %554, %555 : vector<8x640xi1>, vector<8x640xf32>
    %cst_341 = arith.constant dense<0.000000e+00> : vector<8xf32>
    %557 = vector.multi_reduction <add>, %556, %cst_341 [1] : vector<8x640xf32> to vector<8xf32>
    %558 = vector.shape_cast %557 : vector<8xf32> to vector<8x1xf32>
    %c0_342 = arith.constant 0 : index
    %c30 = arith.constant 30 : index
    %559 = vector.load %arg8[%c0_342, %c30] : memref<8x32xf32, #tpu.memory_space<vmem>>, vector<8x1xf32>
    %560 = arith.subf %551, %558 : vector<8x1xf32>
    %561 = arith.addf %559, %560 : vector<8x1xf32>
    %c0_343 = arith.constant 0 : index
    %c30_344 = arith.constant 30 : index
    %562 = vector.load %arg8[%c0_343, %c30_344] : memref<8x32xf32, #tpu.memory_space<vmem>>, vector<8x1xf32>
    tpu.vector_store %arg8[%c0_343, %c30_344], %561 {strides = array<i32>} : memref<8x32xf32, #tpu.memory_space<vmem>>, vector<8x1xf32>,
    %cst_345 = arith.constant 7.000000e+00 : f32
    %563 = vector.broadcast %cst_345 : f32 to vector<8x640xf32>
    %564 = arith.cmpf olt, %3, %563 : vector<8x640xf32>
    %cst_346 = arith.constant 1.000000e+00 : f32
    %cst_347 = arith.constant 0.000000e+00 : f32
    %565 = vector.broadcast %cst_346 : f32 to vector<8x640xf32>
    %566 = vector.broadcast %cst_347 : f32 to vector<8x640xf32>
    %567 = arith.select %564, %565, %566 : vector<8x640xi1>, vector<8x640xf32>
    %cst_348 = arith.constant dense<0.000000e+00> : vector<8xf32>
    %568 = vector.multi_reduction <add>, %567, %cst_348 [1] : vector<8x640xf32> to vector<8xf32>
    %569 = vector.shape_cast %568 : vector<8xf32> to vector<8x1xf32>
    %cst_349 = arith.constant 7.000000e+00 : f32
    %570 = vector.broadcast %cst_349 : f32 to vector<8x640xf32>
    %571 = arith.cmpf olt, %4, %570 : vector<8x640xf32>
    %cst_350 = arith.constant 1.000000e+00 : f32
    %cst_351 = arith.constant 0.000000e+00 : f32
    %572 = vector.broadcast %cst_350 : f32 to vector<8x640xf32>
    %573 = vector.broadcast %cst_351 : f32 to vector<8x640xf32>
    %574 = arith.select %571, %572, %573 : vector<8x640xi1>, vector<8x640xf32>
    %cst_352 = arith.constant dense<0.000000e+00> : vector<8xf32>
    %575 = vector.multi_reduction <add>, %574, %cst_352 [1] : vector<8x640xf32> to vector<8xf32>
    %576 = vector.shape_cast %575 : vector<8xf32> to vector<8x1xf32>
    %c0_353 = arith.constant 0 : index
    %c31 = arith.constant 31 : index
    %577 = vector.load %arg8[%c0_353, %c31] : memref<8x32xf32, #tpu.memory_space<vmem>>, vector<8x1xf32>
    %578 = arith.subf %569, %576 : vector<8x1xf32>
    %579 = arith.addf %577, %578 : vector<8x1xf32>
    %c0_354 = arith.constant 0 : index
    %c31_355 = arith.constant 31 : index
    %580 = vector.load %arg8[%c0_354, %c31_355] : memref<8x32xf32, #tpu.memory_space<vmem>>, vector<8x1xf32>
    tpu.vector_store %arg8[%c0_354, %c31_355], %579 {strides = array<i32>} : memref<8x32xf32, #tpu.memory_space<vmem>>, vector<8x1xf32>,
    %c0_i32_356 = arith.constant 0 : i32
    %581 = arith.cmpi eq, %arg1, %c0_i32_356 : i32
    %582 = arith.extui %581 : i1 to i32
    %c0_i32_357 = arith.constant 0 : i32
    %583 = arith.cmpi ne, %582, %c0_i32_357 : i32
    scf.if %583 {
      %c0_358 = arith.constant 0 : index
      %c0_359 = arith.constant 0 : index
      %584 = vector.load %arg8[%c0_358, %c0_359] : memref<8x32xf32, #tpu.memory_space<vmem>>, vector<2x32xf32>
      %c0_360 = arith.constant 0 : index
      %c0_361 = arith.constant 0 : index
      %c0_362 = arith.constant 0 : index
      %585 = vector.load %arg4[%c0_360, %c0_361, %c0_362] : memref<4x32x128xf32, #tpu.memory_space<vmem>>, vector<1x32x128xf32>
      %586 = vector.shape_cast %585 : vector<1x32x128xf32> to vector<32x128xf32>
      %cst_363 = arith.constant dense<0.000000e+00> : vector<2x128xf32>
      %587 = tpu.matmul %584, %586, %cst_363 {dimension_numbers = #tpu.dot_dimension_numbers<[1], [0], [0], [1], [0, 0, 1, 1], [], []>} : vector<2x32xf32>, vector<32x128xf32>, vector<2x128xf32> -> vector<2x128xf32>
      %c2_364 = arith.constant 2 : index
      %c0_365 = arith.constant 0 : index
      %588 = vector.load %arg8[%c2_364, %c0_365] : memref<8x32xf32, #tpu.memory_space<vmem>>, vector<2x32xf32>
      %c1_366 = arith.constant 1 : index
      %c0_367 = arith.constant 0 : index
      %c0_368 = arith.constant 0 : index
      %589 = vector.load %arg4[%c1_366, %c0_367, %c0_368] : memref<4x32x128xf32, #tpu.memory_space<vmem>>, vector<1x32x128xf32>
      %590 = vector.shape_cast %589 : vector<1x32x128xf32> to vector<32x128xf32>
      %cst_369 = arith.constant dense<0.000000e+00> : vector<2x128xf32>
      %591 = tpu.matmul %588, %590, %cst_369 {dimension_numbers = #tpu.dot_dimension_numbers<[1], [0], [0], [1], [0, 0, 1, 1], [], []>} : vector<2x32xf32>, vector<32x128xf32>, vector<2x128xf32> -> vector<2x128xf32>
      %592 = arith.addf %587, %591 : vector<2x128xf32>
      %c4_370 = arith.constant 4 : index
      %c0_371 = arith.constant 0 : index
      %593 = vector.load %arg8[%c4_370, %c0_371] : memref<8x32xf32, #tpu.memory_space<vmem>>, vector<2x32xf32>
      %c2_372 = arith.constant 2 : index
      %c0_373 = arith.constant 0 : index
      %c0_374 = arith.constant 0 : index
      %594 = vector.load %arg4[%c2_372, %c0_373, %c0_374] : memref<4x32x128xf32, #tpu.memory_space<vmem>>, vector<1x32x128xf32>
      %595 = vector.shape_cast %594 : vector<1x32x128xf32> to vector<32x128xf32>
      %cst_375 = arith.constant dense<0.000000e+00> : vector<2x128xf32>
      %596 = tpu.matmul %593, %595, %cst_375 {dimension_numbers = #tpu.dot_dimension_numbers<[1], [0], [0], [1], [0, 0, 1, 1], [], []>} : vector<2x32xf32>, vector<32x128xf32>, vector<2x128xf32> -> vector<2x128xf32>
      %597 = arith.addf %592, %596 : vector<2x128xf32>
      %c6_376 = arith.constant 6 : index
      %c0_377 = arith.constant 0 : index
      %598 = vector.load %arg8[%c6_376, %c0_377] : memref<8x32xf32, #tpu.memory_space<vmem>>, vector<2x32xf32>
      %c3_378 = arith.constant 3 : index
      %c0_379 = arith.constant 0 : index
      %c0_380 = arith.constant 0 : index
      %599 = vector.load %arg4[%c3_378, %c0_379, %c0_380] : memref<4x32x128xf32, #tpu.memory_space<vmem>>, vector<1x32x128xf32>
      %600 = vector.shape_cast %599 : vector<1x32x128xf32> to vector<32x128xf32>
      %cst_381 = arith.constant dense<0.000000e+00> : vector<2x128xf32>
      %601 = tpu.matmul %598, %600, %cst_381 {dimension_numbers = #tpu.dot_dimension_numbers<[1], [0], [0], [1], [0, 0, 1, 1], [], []>} : vector<2x32xf32>, vector<32x128xf32>, vector<2x128xf32> -> vector<2x128xf32>
      %602 = arith.addf %597, %601 : vector<2x128xf32>
      %c0_382 = arith.constant 0 : index
      %c0_383 = arith.constant 0 : index
      %603 = vector.load %arg5[%c0_382, %c0_383] : memref<1x128xf32, #tpu.memory_space<vmem>>, vector<1x128xf32>
      %604 = vector.broadcast %603 : vector<1x128xf32> to vector<2x128xf32>
      %605 = arith.addf %602, %604 : vector<2x128xf32>
      %cst_384 = arith.constant 0.000000e+00 : f32
      %606 = vector.broadcast %cst_384 : f32 to vector<2x128xf32>
      %607 = arith.maximumf %605, %606 : vector<2x128xf32>
      %c0_385 = arith.constant 0 : index
      %c0_386 = arith.constant 0 : index
      %608 = vector.load %arg6[%c0_385, %c0_386] : memref<128x128xf32, #tpu.memory_space<vmem>>, vector<128x128xf32>
      %cst_387 = arith.constant dense<0.000000e+00> : vector<2x128xf32>
      %609 = tpu.matmul %607, %608, %cst_387 {dimension_numbers = #tpu.dot_dimension_numbers<[1], [0], [0], [1], [0, 0, 1, 1], [], []>} : vector<2x128xf32>, vector<128x128xf32>, vector<2x128xf32> -> vector<2x128xf32>
      %c0_388 = arith.constant 0 : index
      %c0_389 = arith.constant 0 : index
      %610 = vector.load %arg7[%c0_388, %c0_389] : memref<1x128xf32, #tpu.memory_space<vmem>>, vector<1x128xf32>
      %611 = vector.broadcast %610 : vector<1x128xf32> to vector<2x128xf32>
      %612 = arith.addf %609, %611 : vector<2x128xf32>
      %c0_390 = arith.constant 0 : index
      %c0_391 = arith.constant 0 : index
      %613 = vector.load %arg9[%c0_390, %c0_391] : memref<2x128xf32, #tpu.memory_space<vmem>>, vector<2x128xf32>
      tpu.vector_store %arg9[%c0_390, %c0_391], %612 {strides = array<i32>} : memref<2x128xf32, #tpu.memory_space<vmem>>, vector<2x128xf32>,
    } else {
    }
    return
  }
  func.func @transform_0(%arg0: i32, %arg1: i32) -> (i32, i32) {
    %c0_i32 = arith.constant 0 : i32
    return %arg0, %arg1 : i32, i32
  }
  func.func @transform_1(%arg0: i32, %arg1: i32) -> (i32, i32) {
    %c0_i32 = arith.constant 0 : i32
    return %arg0, %arg1 : i32, i32
  }
  func.func @transform_2(%arg0: i32, %arg1: i32) -> (i32, i32, i32) {
    %c0_i32 = arith.constant 0 : i32
    %c0_i32_0 = arith.constant 0 : i32
    %c0_i32_1 = arith.constant 0 : i32
    %c0_i32_2 = arith.constant 0 : i32
    return %c0_i32, %c0_i32_0, %c0_i32_1 : i32, i32, i32
  }
  func.func @transform_3(%arg0: i32, %arg1: i32) -> (i32, i32) {
    %c0_i32 = arith.constant 0 : i32
    %c0_i32_0 = arith.constant 0 : i32
    %c0_i32_1 = arith.constant 0 : i32
    return %c0_i32, %c0_i32_0 : i32, i32
  }
  func.func @transform_4(%arg0: i32, %arg1: i32) -> (i32, i32) {
    %c0_i32 = arith.constant 0 : i32
    %c0_i32_0 = arith.constant 0 : i32
    %c0_i32_1 = arith.constant 0 : i32
    return %c0_i32, %c0_i32_0 : i32, i32
  }
  func.func @transform_5(%arg0: i32, %arg1: i32) -> (i32, i32) {
    %c0_i32 = arith.constant 0 : i32
    %c0_i32_0 = arith.constant 0 : i32
    %c0_i32_1 = arith.constant 0 : i32
    return %c0_i32, %c0_i32_0 : i32, i32
  }
  func.func @transform_6(%arg0: i32, %arg1: i32) -> (i32, i32) {
    %c0_i32 = arith.constant 0 : i32
    %c0_i32_0 = arith.constant 0 : i32
    return %arg0, %c0_i32 : i32, i32
  }
  func.func @transform_7(%arg0: i32, %arg1: i32) -> (i32, i32) {
    %c0_i32 = arith.constant 0 : i32
    %c0_i32_0 = arith.constant 0 : i32
    return %arg0, %c0_i32 : i32, i32
  }
}

</mosaic_0001>

<bundles_post_ra>
// kernel: _lambda_.1
= control target key start
LH: loop header
LB: loop body
LE: loop exit
PB: predicated region body
PF: predicated region fallthrough
CT: control target
= control target key end

     0   :  { %v1480_v5 = vmov 0.0   ;;  %s2612_s0 = inlined_call_operand.vmem [shape: f32[8,640], index: 0, kind: input, shape index: {}]   ;;  %s2613_s1 = inlined_call_operand.vmem [shape: f32[8,640], index: 1, kind: input, shape index: {}]   ;;  %s2614_s2 = inlined_call_operand.vmem [shape: f32[4,32,128], index: 2, kind: input, shape index: {}]   ;;  %s2615_s3 = inlined_call_operand.vmem [shape: f32[1,128], index: 3, kind: input, shape index: {}]   ;;  %s2616_s4 = inlined_call_operand.vmem [shape: f32[128,128], index: 4, kind: input, shape index: {}]   ;;  %s2617_s5 = inlined_call_operand.vmem [shape: f32[1,128], index: 5, kind: input, shape index: {}]   ;;  %s2618_s6 = inlined_call_operand.vmem [shape: f32[8,32], index: 6, kind: output, shape index: {0}]   ;;  %s2619_s7 = inlined_call_operand.hbm [shape: f32[2,128], index: 7, kind: output, shape index: {1}]  }
   0x1   :  { %v1525_v0 = vld [vmem:[%s2612_s0] sm:$0xff]  ;;  %v1530_v1 = vld [vmem:[%s2612_s0 + $0x8] sm:$0xff]  ;;  %v1535_v2 = vld [vmem:[%s2612_s0 + $0x10] sm:$0xff] }
   0x2   :  { %v1540_v3 = vld [vmem:[%s2612_s0 + $0x18] sm:$0xff]  ;;  %v1545_v4 = vld [vmem:[%s2612_s0 + $0x20] sm:$0xff]  ;;  %vm42_vm0 = vcmp.lt.f32.partialorder %v1525_v0, 0.0  ;;  %vm43_vm1 = vcmp.lt.f32.partialorder %v1530_v1, 0.0  ;;  %vm44_vm2 = vcmp.lt.f32.partialorder %v1535_v2, 0.0  ;;  %v1564_v12 = vld [vmem:[%s2613_s1 + $0x8] sm:$0xff] }
   0x3   :  { %vm45_vm3 = vcmp.lt.f32.partialorder %v1540_v3, 0.0  ;;  %v47_v6 = vsel %vm42_vm0, 1.0, %v1480_v5  ;;  %v48_v7 = vsel %vm43_vm1, 1.0, %v1480_v5  ;;  %v1556_v8 = vld [vmem:[%s2613_s1] sm:$0xff]  ;;  %vm46_vm4 = vcmp.lt.f32.partialorder %v1545_v4, 0.0  ;;  %v1569_v13 = vld [vmem:[%s2613_s1 + $0x10] sm:$0xff] }
   0x4   :  { %v49_v9 = vsel %vm44_vm2, 1.0, %v1480_v5  ;;  %v50_v10 = vsel %vm45_vm3, 1.0, %v1480_v5  ;;  %v52_v11 = vadd.f32 %v48_v7, %v47_v6  ;;  %v1574_v14 = vld [vmem:[%s2613_s1 + $0x18] sm:$0xff]  ;;  %vm79_vm5 = vcmp.lt.f32.partialorder %v1525_v0, 0.22580644  ;;  %v1585_v17 = vld [vmem:[%s2613_s1 + $0x20] sm:$0xff] }
   0x5   :  { %vm80_vm6 = vcmp.lt.f32.partialorder %v1530_v1, 0.22580644  ;;  %vm81_vm7 = vcmp.lt.f32.partialorder %v1535_v2, 0.22580644  ;;  %vm82_vm8 = vcmp.lt.f32.partialorder %v1540_v3, 0.22580644 }
   0x6   :  { %v53_v15 = vadd.f32 %v52_v11, %v49_v9  ;;  %vm83_vm9 = vcmp.lt.f32.partialorder %v1545_v4, 0.22580644  ;;  %v84_v16 = vsel %vm79_vm5, 1.0, %v1480_v5  ;;  %v51_v18 = vsel %vm46_vm4, 1.0, %v1480_v5 }
   0x7   :  { %v85_v19 = vsel %vm80_vm6, 1.0, %v1480_v5  ;;  %v86_v20 = vsel %vm81_vm7, 1.0, %v1480_v5  ;;  %v87_v21 = vsel %vm82_vm8, 1.0, %v1480_v5  ;;  %vm58_vm10 = vcmp.lt.f32.partialorder %v1556_v8, 0.0 }
   0x8   :  { %v54_v22 = vadd.f32 %v53_v15, %v50_v10  ;;  %v89_v23 = vadd.f32 %v85_v19, %v84_v16  ;;  %vm59_vm11 = vcmp.lt.f32.partialorder %v1564_v12, 0.0 }
   0x9   :  { %13 = vsyncpa [#allocation3], 0  ;;  %vm60_vm12 = vcmp.lt.f32.partialorder %v1569_v13, 0.0  ;;  %vm61_vm13 = vcmp.lt.f32.partialorder %v1574_v14, 0.0  ;;  %vm62_vm14 = vcmp.lt.f32.partialorder %v1585_v17, 0.0  ;;  %v63_v24 = vsel %vm58_vm10, 1.0, %v1480_v5 }
   0xa   :  { %v55_v25 = vadd.f32 %v54_v22, %v51_v18  ;;  %v90_v26 = vadd.f32 %v89_v23, %v86_v20  ;;  %v64_v27 = vsel %vm59_vm11, 1.0, %v1480_v5  ;;  %v65_v28 = vsel %vm60_vm12, 1.0, %v1480_v5  ;;  %s1403_s25 = sshll.u32 %s2619_s7, 4  ;;  %s1404_s25 = int_to_ptr.hbm [resolvable:$true] %s1403_s25 }
   0xb   :  { %v88_v29 = vsel %vm83_vm9, 1.0, %v1480_v5  ;;  %v66_v30 = vsel %vm61_vm13, 1.0, %v1480_v5  ;;  %v68_v31 = vadd.f32 %v64_v27, %v63_v24  ;;  %vm95_vm15 = vcmp.lt.f32.partialorder %v1556_v8, 0.22580644 }
   0xc   :  { %56 = vadd.xlane.f32.xlu0 %v55_v25  ;;  %v91_v32 = vadd.f32 %v90_v26, %v87_v21  ;;  %vm96_vm0 = vcmp.lt.f32.partialorder %v1564_v12, 0.22580644  ;;  %vm97_vm1 = vcmp.lt.f32.partialorder %v1569_v13, 0.22580644  ;;  %vm98_vm2 = vcmp.lt.f32.partialorder %v1574_v14, 0.22580644 }
   0xd   :  { %v67_v33 = vsel %vm62_vm14, 1.0, %v1480_v5  ;;  %v69_v34 = vadd.f32 %v68_v31, %v65_v28  ;;  %v100_v35 = vsel %vm95_vm15, 1.0, %v1480_v5  ;;  %v101_v36 = vsel %vm96_vm0, 1.0, %v1480_v5 }
   0xe   :  { %v92_v37 = vadd.f32 %v91_v32, %v88_v29  ;;  %vm99_vm3 = vcmp.lt.f32.partialorder %v1585_v17, 0.22580644  ;;  %v102_v38 = vsel %vm97_vm1, 1.0, %v1480_v5  ;;  %v103_v39 = vsel %vm98_vm2, 1.0, %v1480_v5 }
   0xf   :  { %v70_v40 = vadd.f32 %v69_v34, %v66_v30  ;;  %v105_v41 = vadd.f32 %v101_v36, %v100_v35  ;;  %vm116_vm4 = vcmp.lt.f32.partialorder %v1525_v0, 0.4516129  ;;  %vm117_vm5 = vcmp.lt.f32.partialorder %v1530_v1, 0.4516129 }
  0x10   :  { %93 = vadd.xlane.f32.xlu1 %v92_v37  ;;  %vm118_vm6 = vcmp.lt.f32.partialorder %v1535_v2, 0.4516129  ;;  %vm119_vm7 = vcmp.lt.f32.partialorder %v1540_v3, 0.4516129  ;;  %vm120_vm8 = vcmp.lt.f32.partialorder %v1545_v4, 0.4516129 }
  0x11   :  { %v71_v42 = vadd.f32 %v70_v40, %v67_v33  ;;  %v106_v43 = vadd.f32 %v105_v41, %v102_v38  ;;  %v121_v44 = vsel %vm116_vm4, 1.0, %v1480_v5  ;;  %v122_v45 = vsel %vm117_vm5, 1.0, %v1480_v5 }
  0x12   :  { %v104_v46 = vsel %vm99_vm3, 1.0, %v1480_v5  ;;  %v123_v47 = vsel %vm118_vm6, 1.0, %v1480_v5  ;;  %v124_v48 = vsel %vm119_vm7, 1.0, %v1480_v5  ;;  %v126_v49 = vadd.f32 %v122_v45, %v121_v44 }
  0x13   :  { %v107_v50 = vadd.f32 %v106_v43, %v103_v39  ;;  %vm132_vm9 = vcmp.lt.f32.partialorder %v1556_v8, 0.4516129  ;;  %vm133_vm10 = vcmp.lt.f32.partialorder %v1564_v12, 0.4516129  ;;  %vm134_vm11 = vcmp.lt.f32.partialorder %v1569_v13, 0.4516129 }
  0x14   :  { %72 = vadd.xlane.f32.xlu0 %v71_v42  ;;  %v125_v51 = vsel %vm120_vm8, 1.0, %v1480_v5  ;;  %v127_v52 = vadd.f32 %v126_v49, %v123_v47  ;;  %vm135_vm12 = vcmp.lt.f32.partialorder %v1574_v14, 0.4516129  ;;  %v137_v53 = vsel %vm132_vm9, 1.0, %v1480_v5 }
  0x15   :  { %v108_v54 = vadd.f32 %v107_v50, %v104_v46  ;;  %vm136_vm13 = vcmp.lt.f32.partialorder %v1585_v17, 0.4516129  ;;  %v138_v55 = vsel %vm133_vm10, 1.0, %v1480_v5  ;;  %v139_v56 = vsel %vm134_vm11, 1.0, %v1480_v5 }
  0x16   :  { %v128_v57 = vadd.f32 %v127_v52, %v124_v48  ;;  %v140_v58 = vsel %vm135_vm12, 1.0, %v1480_v5  ;;  %v142_v59 = vadd.f32 %v138_v55, %v137_v53  ;;  %vm169_vm14 = vcmp.lt.f32.partialorder %v1556_v8, 0.67741936 }
  0x17   :  { %vm170_vm15 = vcmp.lt.f32.partialorder %v1564_v12, 0.67741936  ;;  %vm171_vm0 = vcmp.lt.f32.partialorder %v1569_v13, 0.67741936  ;;  %vm172_vm1 = vcmp.lt.f32.partialorder %v1574_v14, 0.67741936 }
  0x18   :  { %109 = vadd.xlane.f32.xlu1 %v108_v54  ;;  %v129_v60 = vadd.f32 %v128_v57, %v125_v51  ;;  %v143_v61 = vadd.f32 %v142_v59, %v139_v56  ;;  %vm173_vm2 = vcmp.lt.f32.partialorder %v1585_v17, 0.67741936  ;;  %v174_v62 = vsel %vm169_vm14, 1.0, %v1480_v5 }
  0x19   :  { %v141_v63 = vsel %vm136_vm13, 1.0, %v1480_v5  ;;  %v175_v6 = vsel %vm170_vm15, 1.0, %v1480_v5  ;;  %v176_v7 = vsel %vm171_vm0, 1.0, %v1480_v5  ;;  %vm153_vm3 = vcmp.lt.f32.partialorder %v1525_v0, 0.67741936 }
  0x1a   :  { %130 = vadd.xlane.f32.xlu2 %v129_v60  ;;  %v144_v9 = vadd.f32 %v143_v61, %v140_v58  ;;  %v179_v10 = vadd.f32 %v175_v6, %v174_v62  ;;  %vm154_vm4 = vcmp.lt.f32.partialorder %v1530_v1, 0.67741936  ;;  %v177_v11 = vsel %vm172_vm1, 1.0, %v1480_v5 }
  0x1b   :  { %v178_v15 = vsel %vm173_vm2, 1.0, %v1480_v5  ;;  %vm155_vm5 = vcmp.lt.f32.partialorder %v1535_v2, 0.67741936  ;;  %vm156_vm6 = vcmp.lt.f32.partialorder %v1540_v3, 0.67741936  ;;  %v158_v18 = vsel %vm153_vm3, 1.0, %v1480_v5 }
  0x1c   :  { %v180_v16 = vadd.f32 %v179_v10, %v176_v7  ;;  %vm157_vm7 = vcmp.lt.f32.partialorder %v1545_v4, 0.67741936  ;;  %v159_v19 = vsel %vm154_vm4, 1.0, %v1480_v5  ;;  %v145_v20 = vadd.f32 %v144_v9, %v141_v63 }
  0x1d   :  { %v160_v21 = vsel %vm155_vm5, 1.0, %v1480_v5  ;;  %v161_v22 = vsel %vm156_vm6, 1.0, %v1480_v5  ;;  %v163_v23 = vadd.f32 %v159_v19, %v158_v18  ;;  %vm190_vm8 = vcmp.lt.f32.partialorder %v1525_v0, 0.9032258 }
  0x1e   :  { %v181_v24 = vadd.f32 %v180_v16, %v177_v11  ;;  %vm191_vm9 = vcmp.lt.f32.partialorder %v1530_v1, 0.9032258  ;;  %vm192_vm10 = vcmp.lt.f32.partialorder %v1535_v2, 0.9032258  ;;  %v162_v25 = vsel %vm157_vm7, 1.0, %v1480_v5 }
  0x1f   :  { %v164_v26 = vadd.f32 %v163_v23, %v160_v21  ;;  %vm193_vm11 = vcmp.lt.f32.partialorder %v1540_v3, 0.9032258  ;;  %v195_v27 = vsel %vm190_vm8, 1.0, %v1480_v5  ;;  %vm194_vm12 = vcmp.lt.f32.partialorder %v1545_v4, 0.9032258 }
  0x20   :  { %v182_v28 = vadd.f32 %v181_v24, %v178_v15  ;;  %v196_v29 = vsel %vm191_vm9, 1.0, %v1480_v5  ;;  %v197_v30 = vsel %vm192_vm10, 1.0, %v1480_v5  ;;  %v198_v32 = vsel %vm193_vm11, 1.0, %v1480_v5 }
  0x21   :  { %v165_v31 = vadd.f32 %v164_v26, %v161_v22  ;;  %v200_v33 = vadd.f32 %v196_v29, %v195_v27  ;;  %vm206_vm13 = vcmp.lt.f32.partialorder %v1556_v8, 0.9032258  ;;  %vm207_vm14 = vcmp.lt.f32.partialorder %v1564_v12, 0.9032258 }
  0x22   :  { %146 = vadd.xlane.f32.xlu2 %v145_v20  ;;  %183 = vadd.xlane.f32.xlu1 %v182_v28  ;;  %vm208_vm15 = vcmp.lt.f32.partialorder %v1569_v13, 0.9032258  ;;  %vm209_vm0 = vcmp.lt.f32.partialorder %v1574_v14, 0.9032258  ;;  %vm210_vm1 = vcmp.lt.f32.partialorder %v1585_v17, 0.9032258 }
  0x23   :  { %v166_v34 = vadd.f32 %v165_v31, %v162_v25  ;;  %v201_v35 = vadd.f32 %v200_v33, %v197_v30  ;;  %v211_v36 = vsel %vm206_vm13, 1.0, %v1480_v5  ;;  %v199_v37 = vsel %vm194_vm12, 1.0, %v1480_v5 }
  0x24   :  { %v212_v38 = vsel %vm207_vm14, 1.0, %v1480_v5  ;;  %v213_v39 = vsel %vm208_vm15, 1.0, %v1480_v5  ;;  %vm243_vm2 = vcmp.lt.f32.partialorder %v1556_v8, 1.1290323  ;;  %vm244_vm3 = vcmp.lt.f32.partialorder %v1564_v12, 1.1290323 }
  0x25   :  { %167 = vadd.xlane.f32.xlu0 %v166_v34  ;;  %v202_v40 = vadd.f32 %v201_v35, %v198_v32  ;;  %v216_v41 = vadd.f32 %v212_v38, %v211_v36  ;;  %v214_v42 = vsel %vm209_vm0, 1.0, %v1480_v5  ;;  %v215_v43 = vsel %vm210_vm1, 1.0, %v1480_v5 }
  0x26   :  { %vm245_vm4 = vcmp.lt.f32.partialorder %v1569_v13, 1.1290323  ;;  %vm246_vm5 = vcmp.lt.f32.partialorder %v1574_v14, 1.1290323  ;;  %v248_v46 = vsel %vm243_vm2, 1.0, %v1480_v5  ;;  %v249_v47 = vsel %vm244_vm3, 1.0, %v1480_v5 }
  0x27   :  { %v203_v44 = vadd.f32 %v202_v40, %v199_v37  ;;  %v217_v45 = vadd.f32 %v216_v41, %v213_v39  ;;  %vm247_vm6 = vcmp.lt.f32.partialorder %v1585_v17, 1.1290323  ;;  %v250_v48 = vsel %vm245_vm4, 1.0, %v1480_v5 }
  0x28   :  { %v251_v49 = vsel %vm246_vm5, 1.0, %v1480_v5  ;;  %v253_v50 = vadd.f32 %v249_v47, %v248_v46  ;;  %vm227_vm7 = vcmp.lt.f32.partialorder %v1525_v0, 1.1290323  ;;  %vm228_vm8 = vcmp.lt.f32.partialorder %v1530_v1, 1.1290323 }
  0x29   :  { %v218_v51 = vadd.f32 %v217_v45, %v214_v42  ;;  %vm229_vm9 = vcmp.lt.f32.partialorder %v1535_v2, 1.1290323  ;;  %vm230_vm10 = vcmp.lt.f32.partialorder %v1540_v3, 1.1290323  ;;  %v232_v53 = vsel %vm227_vm7, 1.0, %v1480_v5 }
  0x2a   :  { %204 = vadd.xlane.f32.xlu2 %v203_v44  ;;  %v254_v52 = vadd.f32 %v253_v50, %v250_v48  ;;  %v252_v55 = vsel %vm247_vm6, 1.0, %v1480_v5  ;;  %v233_v56 = vsel %vm228_vm8, 1.0, %v1480_v5  ;;  %v234_v57 = vsel %vm229_vm9, 1.0, %v1480_v5 }
  0x2b   :  { %v219_v54 = vadd.f32 %v218_v51, %v215_v43  ;;  %vm231_vm11 = vcmp.lt.f32.partialorder %v1545_v4, 1.1290323  ;;  %v237_v59 = vadd.f32 %v233_v56, %v232_v53  ;;  %vm280_vm12 = vcmp.lt.f32.partialorder %v1556_v8, 1.3548387 }
  0x2c   :  { %v255_v58 = vadd.f32 %v254_v52, %v251_v49  ;;  %v235_v60 = vsel %vm230_vm10, 1.0, %v1480_v5  ;;  %vm281_vm13 = vcmp.lt.f32.partialorder %v1564_v12, 1.3548387  ;;  %vm282_vm14 = vcmp.lt.f32.partialorder %v1569_v13, 1.3548387 }
  0x2d   :  { %220 = vadd.xlane.f32.xlu0 %v219_v54  ;;  %v238_v62 = vadd.f32 %v237_v59, %v234_v57  ;;  %vm283_vm15 = vcmp.lt.f32.partialorder %v1574_v14, 1.3548387  ;;  %v285_v63 = vsel %vm280_vm12, 1.0, %v1480_v5  ;;  %v236_v6 = vsel %vm231_vm11, 1.0, %v1480_v5 }
  0x2e   :  { %v256_v61 = vadd.f32 %v255_v58, %v252_v55  ;;  %vm284_vm0 = vcmp.lt.f32.partialorder %v1585_v17, 1.3548387  ;;  %v286_v7 = vsel %vm281_vm13, 1.0, %v1480_v5  ;;  %v287_v9 = vsel %vm282_vm14, 1.0, %v1480_v5 }
  0x2f   :  { %v239_v10 = vadd.f32 %v238_v62, %v235_v60  ;;  %v290_v11 = vadd.f32 %v286_v7, %v285_v63  ;;  %vm264_vm1 = vcmp.lt.f32.partialorder %v1525_v0, 1.3548387  ;;  %vm265_vm2 = vcmp.lt.f32.partialorder %v1530_v1, 1.3548387 }
  0x30   :  { %v288_v15 = vsel %vm283_vm15, 1.0, %v1480_v5  ;;  %vm266_vm3 = vcmp.lt.f32.partialorder %v1535_v2, 1.3548387  ;;  %vm267_vm4 = vcmp.lt.f32.partialorder %v1540_v3, 1.3548387  ;;  %v269_v19 = vsel %vm264_vm1, 1.0, %v1480_v5 }
  0x31   :  { %v240_v16 = vadd.f32 %v239_v10, %v236_v6  ;;  %v291_v18 = vadd.f32 %v290_v11, %v287_v9  ;;  %v270_v20 = vsel %vm265_vm2, 1.0, %v1480_v5  ;;  %vm268_vm5 = vcmp.lt.f32.partialorder %v1545_v4, 1.3548387 }
  0x32   :  { %257 = vadd.xlane.f32.xlu2 %v256_v61  ;;  %v271_v21 = vsel %vm266_vm3, 1.0, %v1480_v5  ;;  %v272_v22 = vsel %vm267_vm4, 1.0, %v1480_v5  ;;  %v274_v23 = vadd.f32 %v270_v20, %v269_v19  ;;  %vm301_vm6 = vcmp.lt.f32.partialorder %v1525_v0, 1.5806452 }
  0x33   :  { %241 = vadd.xlane.f32.xlu1 %v240_v16  ;;  %v292_v24 = vadd.f32 %v291_v18, %v288_v15  ;;  %vm302_vm7 = vcmp.lt.f32.partialorder %v1530_v1, 1.5806452  ;;  %vm303_vm8 = vcmp.lt.f32.partialorder %v1535_v2, 1.5806452  ;;  %v289_v25 = vsel %vm284_vm0, 1.0, %v1480_v5 }
  0x34   :  { %v275_v26 = vadd.f32 %v274_v23, %v271_v21  ;;  %vm304_vm9 = vcmp.lt.f32.partialorder %v1540_v3, 1.5806452  ;;  %v306_v27 = vsel %vm301_vm6, 1.0, %v1480_v5  ;;  %v273_v28 = vsel %vm268_vm5, 1.0, %v1480_v5 }
  0x35   :  { %vm305_vm10 = vcmp.lt.f32.partialorder %v1545_v4, 1.5806452  ;;  %v307_v29 = vsel %vm302_vm7, 1.0, %v1480_v5  ;;  %v308_v30 = vsel %vm303_vm8, 1.0, %v1480_v5  ;;  %v309_v32 = vsel %vm304_vm9, 1.0, %v1480_v5 }
  0x36   :  { %v276_v31 = vadd.f32 %v275_v26, %v272_v22  ;;  %v311_v33 = vadd.f32 %v307_v29, %v306_v27  ;;  %vm317_vm11 = vcmp.lt.f32.partialorder %v1556_v8, 1.5806452  ;;  %v293_v34 = vadd.f32 %v292_v24, %v289_v25 }
  0x37   :  { %vm318_vm12 = vcmp.lt.f32.partialorder %v1564_v12, 1.5806452  ;;  %vm319_vm13 = vcmp.lt.f32.partialorder %v1569_v13, 1.5806452  ;;  %vm320_vm14 = vcmp.lt.f32.partialorder %v1574_v14, 1.5806452 }
  0x38   :  { %v277_v35 = vadd.f32 %v276_v31, %v273_v28  ;;  %v312_v36 = vadd.f32 %v311_v33, %v308_v30  ;;  %vm321_vm15 = vcmp.lt.f32.partialorder %v1585_v17, 1.5806452  ;;  %v322_v37 = vsel %vm317_vm11, 1.0, %v1480_v5 }
  0x39   :  { %v310_v38 = vsel %vm305_vm10, 1.0, %v1480_v5  ;;  %v323_v39 = vsel %vm318_vm12, 1.0, %v1480_v5  ;;  %v324_v40 = vsel %vm319_vm13, 1.0, %v1480_v5  ;;  %vm354_vm0 = vcmp.lt.f32.partialorder %v1556_v8, 1.8064516 }
  0x3a   :  { %278 = vadd.xlane.f32.xlu0 %v277_v35  ;;  %v313_v41 = vadd.f32 %v312_v36, %v309_v32  ;;  %v327_v42 = vadd.f32 %v323_v39, %v322_v37  ;;  %vm355_vm1 = vcmp.lt.f32.partialorder %v1564_v12, 1.8064516  ;;  %v325_v43 = vsel %vm320_vm14, 1.0, %v1480_v5 }
  0x3b   :  { %294 = vadd.xlane.f32.xlu1 %v293_v34  ;;  %v326_v44 = vsel %vm321_vm15, 1.0, %v1480_v5  ;;  %vm356_vm2 = vcmp.lt.f32.partialorder %v1569_v13, 1.8064516  ;;  %vm357_vm3 = vcmp.lt.f32.partialorder %v1574_v14, 1.8064516  ;;  %v359_v47 = vsel %vm354_vm0, 1.0, %v1480_v5 }
  0x3c   :  { %v314_v45 = vadd.f32 %v313_v41, %v310_v38  ;;  %v328_v46 = vadd.f32 %v327_v42, %v324_v40  ;;  %v360_v48 = vsel %vm355_vm1, 1.0, %v1480_v5  ;;  %vm358_vm4 = vcmp.lt.f32.partialorder %v1585_v17, 1.8064516 }
  0x3d   :  { %v361_v49 = vsel %vm356_vm2, 1.0, %v1480_v5  ;;  %v362_v50 = vsel %vm357_vm3, 1.0, %v1480_v5  ;;  %v364_v51 = vadd.f32 %v360_v48, %v359_v47  ;;  %vm338_vm5 = vcmp.lt.f32.partialorder %v1525_v0, 1.8064516 }
  0x3e   :  { %315 = vadd.xlane.f32.xlu2 %v314_v45  ;;  %v329_v52 = vadd.f32 %v328_v46, %v325_v43  ;;  %vm339_vm6 = vcmp.lt.f32.partialorder %v1530_v1, 1.8064516  ;;  %vm340_vm7 = vcmp.lt.f32.partialorder %v1535_v2, 1.8064516  ;;  %vm341_vm8 = vcmp.lt.f32.partialorder %v1540_v3, 1.8064516 }
  0x3f   :  { %v365_v53 = vadd.f32 %v364_v51, %v361_v49  ;;  %v343_v54 = vsel %vm338_vm5, 1.0, %v1480_v5  ;;  %v363_v56 = vsel %vm358_vm4, 1.0, %v1480_v5  ;;  %v344_v57 = vsel %vm339_vm6, 1.0, %v1480_v5 }
  0x40   :  { %v330_v55 = vadd.f32 %v329_v52, %v326_v44  ;;  %v345_v58 = vsel %vm340_vm7, 1.0, %v1480_v5  ;;  %vm342_vm9 = vcmp.lt.f32.partialorder %v1545_v4, 1.8064516  ;;  %v348_v60 = vadd.f32 %v344_v57, %v343_v54 }
  0x41   :  { %v366_v59 = vadd.f32 %v365_v53, %v362_v50  ;;  %vm391_vm10 = vcmp.lt.f32.partialorder %v1556_v8, 2.032258  ;;  %v346_v61 = vsel %vm341_vm8, 1.0, %v1480_v5  ;;  %vm392_vm11 = vcmp.lt.f32.partialorder %v1564_v12, 2.032258 }
  0x42   :  { %331 = vadd.xlane.f32.xlu0 %v330_v55  ;;  %vm393_vm12 = vcmp.lt.f32.partialorder %v1569_v13, 2.032258  ;;  %v349_v63 = vadd.f32 %v348_v60, %v345_v58  ;;  %vm394_vm13 = vcmp.lt.f32.partialorder %v1574_v14, 2.032258  ;;  %v396_v6 = vsel %vm391_vm10, 1.0, %v1480_v5 }
  0x43   :  { %v367_v62 = vadd.f32 %v366_v59, %v363_v56  ;;  %v347_v7 = vsel %vm342_vm9, 1.0, %v1480_v5  ;;  %vm395_vm14 = vcmp.lt.f32.partialorder %v1585_v17, 2.032258  ;;  %v397_v9 = vsel %vm392_vm11, 1.0, %v1480_v5 }
  0x44   :  { %v398_v10 = vsel %vm393_vm12, 1.0, %v1480_v5  ;;  %v350_v11 = vadd.f32 %v349_v63, %v346_v61  ;;  %v401_v15 = vadd.f32 %v397_v9, %v396_v6  ;;  %vm375_vm15 = vcmp.lt.f32.partialorder %v1525_v0, 2.032258 }
  0x45   :  { %vm376_vm0 = vcmp.lt.f32.partialorder %v1530_v1, 2.032258  ;;  %v399_v16 = vsel %vm394_vm13, 1.0, %v1480_v5  ;;  %vm377_vm1 = vcmp.lt.f32.partialorder %v1535_v2, 2.032258  ;;  %v380_v20 = vsel %vm375_vm15, 1.0, %v1480_v5 }
  0x46   :  { %368 = vadd.xlane.f32.xlu2 %v367_v62  ;;  %vm378_vm2 = vcmp.lt.f32.partialorder %v1540_v3, 2.032258  ;;  %v351_v18 = vadd.f32 %v350_v11, %v347_v7  ;;  %v402_v19 = vadd.f32 %v401_v15, %v398_v10  ;;  %v381_v21 = vsel %vm376_vm0, 1.0, %v1480_v5 }
  0x47   :  { %vm379_vm3 = vcmp.lt.f32.partialorder %v1545_v4, 2.032258  ;;  %v382_v22 = vsel %vm377_vm1, 1.0, %v1480_v5  ;;  %v383_v23 = vsel %vm378_vm2, 1.0, %v1480_v5  ;;  %v385_v24 = vadd.f32 %v381_v21, %v380_v20 }
  0x48   :  { %352 = vadd.xlane.f32.xlu1 %v351_v18  ;;  %v403_v25 = vadd.f32 %v402_v19, %v399_v16  ;;  %vm412_vm4 = vcmp.lt.f32.partialorder %v1525_v0, 2.2580645  ;;  %vm413_vm5 = vcmp.lt.f32.partialorder %v1530_v1, 2.2580645  ;;  %vm414_vm6 = vcmp.lt.f32.partialorder %v1535_v2, 2.2580645 }
  0x49   :  { %v400_v26 = vsel %vm395_vm14, 1.0, %v1480_v5  ;;  %v386_v27 = vadd.f32 %v385_v24, %v382_v22  ;;  %vm415_vm7 = vcmp.lt.f32.partialorder %v1540_v3, 2.2580645  ;;  %v417_v28 = vsel %vm412_vm4, 1.0, %v1480_v5 }
  0x4a   :  { %v384_v29 = vsel %vm379_vm3, 1.0, %v1480_v5  ;;  %v418_v30 = vsel %vm413_vm5, 1.0, %v1480_v5  ;;  %v419_v31 = vsel %vm414_vm6, 1.0, %v1480_v5  ;;  %vm416_vm8 = vcmp.lt.f32.partialorder %v1545_v4, 2.2580645 }
  0x4b   :  { %v387_v32 = vadd.f32 %v386_v27, %v383_v23  ;;  %v422_v33 = vadd.f32 %v418_v30, %v417_v28  ;;  %vm428_vm9 = vcmp.lt.f32.partialorder %v1556_v8, 2.2580645  ;;  %v404_v34 = vadd.f32 %v403_v25, %v400_v26 }
  0x4c   :  { %v420_v35 = vsel %vm415_vm7, 1.0, %v1480_v5  ;;  %vm429_vm10 = vcmp.lt.f32.partialorder %v1564_v12, 2.2580645  ;;  %vm430_vm11 = vcmp.lt.f32.partialorder %v1569_v13, 2.2580645  ;;  %v433_v38 = vsel %vm428_vm9, 1.0, %v1480_v5 }
  0x4d   :  { %v388_v36 = vadd.f32 %v387_v32, %v384_v29  ;;  %v423_v37 = vadd.f32 %v422_v33, %v419_v31  ;;  %vm431_vm12 = vcmp.lt.f32.partialorder %v1574_v14, 2.2580645  ;;  %v421_v39 = vsel %vm416_vm8, 1.0, %v1480_v5 }
  0x4e   :  { %v434_v40 = vsel %vm429_vm10, 1.0, %v1480_v5  ;;  %v435_v41 = vsel %vm430_vm11, 1.0, %v1480_v5  ;;  %vm432_vm13 = vcmp.lt.f32.partialorder %v1585_v17, 2.2580645  ;;  %v436_v44 = vsel %vm431_vm12, 1.0, %v1480_v5 }
  0x4f   :  { %389 = vadd.xlane.f32.xlu0 %v388_v36  ;;  %v424_v42 = vadd.f32 %v423_v37, %v420_v35  ;;  %v438_v43 = vadd.f32 %v434_v40, %v433_v38  ;;  %v437_v47 = vsel %vm432_vm13, 1.0, %v1480_v5  ;;  %vm465_vm14 = vcmp.lt.f32.partialorder %v1556_v8, 2.483871 }
  0x50   :  { %405 = vadd.xlane.f32.xlu1 %v404_v34  ;;  %vm466_vm15 = vcmp.lt.f32.partialorder %v1564_v12, 2.483871  ;;  %vm449_vm0 = vcmp.lt.f32.partialorder %v1525_v0, 2.483871  ;;  %v470_v50 = vsel %vm465_vm14, 1.0, %v1480_v5  ;;  %vm30_vm8 = vcmask 261120  }
  0x51   :  { %v425_v45 = vadd.f32 %v424_v42, %v421_v39  ;;  %v439_v46 = vadd.f32 %v438_v43, %v435_v41  ;;  %v471_v51 = vsel %vm466_vm15, 1.0, %v1480_v5  ;;  %vm450_vm1 = vcmp.lt.f32.partialorder %v1530_v1, 2.483871  ;;  %31 = vst.msk [vmem:[%s2618_s6] sm:$0xff] %vm30_vm8, %v1480_v5 }
  0x52   :  { %v454_v52 = vsel %vm449_vm0, 1.0, %v1480_v5  ;;  %vm467_vm2 = vcmp.lt.f32.partialorder %v1569_v13, 2.483871  ;;  %v475_v53 = vadd.f32 %v471_v51, %v470_v50  ;;  %vm451_vm3 = vcmp.lt.f32.partialorder %v1535_v2, 2.483871 }
  0x53   :  { %426 = vadd.xlane.f32.xlu2 %v425_v45  ;;  %v440_v48 = vadd.f32 %v439_v46, %v436_v44  ;;  %v455_v54 = vsel %vm450_vm1, 1.0, %v1480_v5  ;;  %v472_v55 = vsel %vm467_vm2, 1.0, %v1480_v5  ;;  %v456_v56 = vsel %vm451_vm3, 1.0, %v1480_v5 }
  0x54   :  { %v459_v57 = vadd.f32 %v455_v54, %v454_v52  ;;  %vm468_vm4 = vcmp.lt.f32.partialorder %v1574_v14, 2.483871  ;;  %v476_v58 = vadd.f32 %v475_v53, %v472_v55  ;;  %vm452_vm5 = vcmp.lt.f32.partialorder %v1540_v3, 2.483871 }
  0x55   :  { %v441_v49 = vadd.f32 %v440_v48, %v437_v47  ;;  %v473_v59 = vsel %vm468_vm4, 1.0, %v1480_v5  ;;  %v457_v60 = vsel %vm452_vm5, 1.0, %v1480_v5  ;;  %vm469_vm6 = vcmp.lt.f32.partialorder %v1585_v17, 2.483871 }
  0x56   :  { %v460_v61 = vadd.f32 %v459_v57, %v456_v56  ;;  %v477_v62 = vadd.f32 %v476_v58, %v473_v59  ;;  %vm453_vm7 = vcmp.lt.f32.partialorder %v1545_v4, 2.483871  ;;  %v474_v63 = vsel %vm469_vm6, 1.0, %v1480_v5 }
  0x57   :  { %442 = vadd.xlane.f32.xlu0 %v441_v49  ;;  %v458_v6 = vsel %vm453_vm7, 1.0, %v1480_v5  ;;  %vm502_vm9 = vcmp.lt.f32.partialorder %v1556_v8, 2.7096775  ;;  %vm503_vm10 = vcmp.lt.f32.partialorder %v1564_v12, 2.7096775 }
  0x58   :  { %v461_v7 = vadd.f32 %v460_v61, %v457_v60  ;;  %v478_v9 = vadd.f32 %v477_v62, %v474_v63  ;;  %v507_v11 = vsel %vm502_vm9, 1.0, %v1480_v5  ;;  %v508_v15 = vsel %vm503_vm10, 1.0, %v1480_v5 }
  0x59   :  { %vm486_vm11 = vcmp.lt.f32.partialorder %v1525_v0, 2.7096775  ;;  %vm487_vm12 = vcmp.lt.f32.partialorder %v1530_v1, 2.7096775  ;;  %vm504_vm13 = vcmp.lt.f32.partialorder %v1569_v13, 2.7096775  ;;  %v512_v16 = vadd.f32 %v508_v15, %v507_v11 }
  0x5a   :  { %v462_v10 = vadd.f32 %v461_v7, %v458_v6  ;;  %vm488_vm14 = vcmp.lt.f32.partialorder %v1535_v2, 2.7096775  ;;  %v491_v18 = vsel %vm486_vm11, 1.0, %v1480_v5  ;;  %v509_v19 = vsel %vm504_vm13, 1.0, %v1480_v5 }
  0x5b   :  { %479 = vadd.xlane.f32.xlu2 %v478_v9  ;;  %v492_v20 = vsel %vm487_vm12, 1.0, %v1480_v5  ;;  %v493_v21 = vsel %vm488_vm14, 1.0, %v1480_v5  ;;  %vm505_vm15 = vcmp.lt.f32.partialorder %v1574_v14, 2.7096775  ;;  %v513_v22 = vadd.f32 %v512_v16, %v509_v19 }
  0x5c   :  { %463 = vadd.xlane.f32.xlu1 %v462_v10  ;;  %vm489_vm0 = vcmp.lt.f32.partialorder %v1540_v3, 2.7096775  ;;  %v496_v23 = vadd.f32 %v492_v20, %v491_v18  ;;  %v510_v24 = vsel %vm505_vm15, 1.0, %v1480_v5  ;;  %vm506_vm1 = vcmp.lt.f32.partialorder %v1585_v17, 2.7096775 }
  0x5d   :  { %v494_v25 = vsel %vm489_vm0, 1.0, %v1480_v5  ;;  %v514_v26 = vadd.f32 %v513_v22, %v510_v24  ;;  %vm490_vm2 = vcmp.lt.f32.partialorder %v1545_v4, 2.7096775  ;;  %v511_v28 = vsel %vm506_vm1, 1.0, %v1480_v5 }
  0x5e   :  { %v497_v27 = vadd.f32 %v496_v23, %v493_v21  ;;  %v495_v29 = vsel %vm490_vm2, 1.0, %v1480_v5  ;;  %vm523_vm3 = vcmp.lt.f32.partialorder %v1525_v0, 2.935484  ;;  %vm524_vm4 = vcmp.lt.f32.partialorder %v1530_v1, 2.935484 }
  0x5f   :  { %v515_v30 = vadd.f32 %v514_v26, %v511_v28  ;;  %vm539_vm5 = vcmp.lt.f32.partialorder %v1556_v8, 2.935484  ;;  %v528_v33 = vsel %vm523_vm3, 1.0, %v1480_v5  ;;  %v529_v34 = vsel %vm524_vm4, 1.0, %v1480_v5  ;;  %v74_v28 = vld [vmem:[%s2618_s6] sm:$0xff] }
  0x60   :  { %v498_v31 = vadd.f32 %v497_v27, %v494_v25  ;;  %vm540_vm6 = vcmp.lt.f32.partialorder %v1564_v12, 2.935484  ;;  %v544_v35 = vsel %vm539_vm5, 1.0, %v1480_v5  ;;  %vm525_vm7 = vcmp.lt.f32.partialorder %v1535_v2, 2.935484 }
  0x61   :  { %v533_v36 = vadd.f32 %v529_v34, %v528_v33  ;;  %vm541_vm9 = vcmp.lt.f32.partialorder %v1569_v13, 2.935484  ;;  %v545_v37 = vsel %vm540_vm6, 1.0, %v1480_v5  ;;  %v530_v38 = vsel %vm525_vm7, 1.0, %v1480_v5 }
  0x62   :  { %v499_v32 = vadd.f32 %v498_v31, %v495_v29  ;;  %v546_v39 = vsel %vm541_vm9, 1.0, %v1480_v5  ;;  %v549_v40 = vadd.f32 %v545_v37, %v544_v35  ;;  %vm526_vm10 = vcmp.lt.f32.partialorder %v1540_v3, 2.935484 }
  0x63   :  { %v534_v41 = vadd.f32 %v533_v36, %v530_v38  ;;  %vm542_vm11 = vcmp.lt.f32.partialorder %v1574_v14, 2.935484  ;;  %v531_v42 = vsel %vm526_vm10, 1.0, %v1480_v5  ;;  %vm527_vm12 = vcmp.lt.f32.partialorder %v1545_v4, 2.935484 }
  0x64   :  { %516 = vadd.xlane.f32.xlu1 %v515_v30  ;;  %500 = vadd.xlane.f32.xlu0 %v499_v32  ;;  %v547_v43 = vsel %vm542_vm11, 1.0, %v1480_v5  ;;  %v550_v44 = vadd.f32 %v549_v40, %v546_v39  ;;  %vm543_vm13 = vcmp.lt.f32.partialorder %v1585_v17, 2.935484  ;;  %v532_v46 = vsel %vm527_vm12, 1.0, %v1480_v5 }
  0x65   :  { %v535_v45 = vadd.f32 %v534_v41, %v531_v42  ;;  %v548_v47 = vsel %vm543_vm13, 1.0, %v1480_v5  ;;  %vm576_vm14 = vcmp.lt.f32.partialorder %v1556_v8, 3.1612904  ;;  %vm577_vm15 = vcmp.lt.f32.partialorder %v1564_v12, 3.1612904 }
  0x66   :  { %v551_v48 = vadd.f32 %v550_v44, %v547_v43  ;;  %vm560_vm0 = vcmp.lt.f32.partialorder %v1525_v0, 3.1612904  ;;  %v581_v51 = vsel %vm576_vm14, 1.0, %v1480_v5  ;;  %v582_v52 = vsel %vm577_vm15, 1.0, %v1480_v5 }
  0x67   :  { %v536_v49 = vadd.f32 %v535_v45, %v532_v46  ;;  %vm561_vm1 = vcmp.lt.f32.partialorder %v1530_v1, 3.1612904  ;;  %v565_v53 = vsel %vm560_vm0, 1.0, %v1480_v5  ;;  %vm578_vm2 = vcmp.lt.f32.partialorder %v1569_v13, 3.1612904 }
  0x68   :  { %v552_v50 = vadd.f32 %v551_v48, %v548_v47  ;;  %v586_v54 = vadd.f32 %v582_v52, %v581_v51  ;;  %vm562_vm3 = vcmp.lt.f32.partialorder %v1535_v2, 3.1612904  ;;  %v566_v55 = vsel %vm561_vm1, 1.0, %v1480_v5  ;;  %v1940_v47 = vld [vmem:[%s2612_s0 + $0x20] sm:$0xff] }
  0x69   :  { %537 = vadd.xlane.f32.xlu2 %v536_v49  ;;  %v583_v56 = vsel %vm578_vm2, 1.0, %v1480_v5  ;;  %v567_v57 = vsel %vm562_vm3, 1.0, %v1480_v5  ;;  %v570_v58 = vadd.f32 %v566_v55, %v565_v53  ;;  %vm579_vm4 = vcmp.lt.f32.partialorder %v1574_v14, 3.1612904 }
  0x6a   :  { %v587_v59 = vadd.f32 %v586_v54, %v583_v56  ;;  %vm563_vm5 = vcmp.lt.f32.partialorder %v1540_v3, 3.1612904  ;;  %v584_v60 = vsel %vm579_vm4, 1.0, %v1480_v5  ;;  %vm580_vm6 = vcmp.lt.f32.partialorder %v1585_v17, 3.1612904  ;;  %v1961_v56 = vld [vmem:[%s2613_s1 + $0x8] sm:$0xff] }
  0x6b   :  { %v568_v61 = vsel %vm563_vm5, 1.0, %v1480_v5  ;;  %v571_v62 = vadd.f32 %v570_v58, %v567_v57  ;;  %vm564_vm7 = vcmp.lt.f32.partialorder %v1545_v4, 3.1612904  ;;  %v585_v7 = vsel %vm580_vm6, 1.0, %v1480_v5 }
  0x6c   :  { %553 = vadd.xlane.f32.xlu0 %v552_v50  ;;  %v588_v63 = vadd.f32 %v587_v59, %v584_v60  ;;  %v569_v9 = vsel %vm564_vm7, 1.0, %v1480_v5  ;;  %vm613_vm9 = vcmp.lt.f32.partialorder %v1556_v8, 3.387097  ;;  %vm614_vm10 = vcmp.lt.f32.partialorder %v1564_v12, 3.387097  ;;  %v1969_v59 = vld [vmem:[%s2612_s0] sm:$0xff] }
  0x6d   :  { %v572_v10 = vadd.f32 %v571_v62, %v568_v61  ;;  %vm597_vm11 = vcmp.lt.f32.partialorder %v1525_v0, 3.387097  ;;  %v618_v16 = vsel %vm613_vm9, 1.0, %v1480_v5  ;;  %v619_v18 = vsel %vm614_vm10, 1.0, %v1480_v5  ;;  %v1975_v60 = vld [vmem:[%s2612_s0 + $0x8] sm:$0xff]  ;;  %v1981_v62 = vld [vmem:[%s2613_s1 + $0x10] sm:$0xff] }
  0x6e   :  { %v589_v11 = vadd.f32 %v588_v63, %v585_v7  ;;  %vm598_vm12 = vcmp.lt.f32.partialorder %v1530_v1, 3.387097  ;;  %v602_v19 = vsel %vm597_vm11, 1.0, %v1480_v5  ;;  %vm615_vm13 = vcmp.lt.f32.partialorder %v1569_v13, 3.387097 }
  0x6f   :  { %v573_v15 = vadd.f32 %v572_v10, %v569_v9  ;;  %v623_v21 = vadd.f32 %v619_v18, %v618_v16  ;;  %vm599_vm14 = vcmp.lt.f32.partialorder %v1535_v2, 3.387097  ;;  %v603_v22 = vsel %vm598_vm12, 1.0, %v1480_v5 }
  0x70   :  { %v620_v23 = vsel %vm615_vm13, 1.0, %v1480_v5  ;;  %v604_v24 = vsel %vm599_vm14, 1.0, %v1480_v5  ;;  %v607_v25 = vadd.f32 %v603_v22, %v602_v19  ;;  %vm616_vm15 = vcmp.lt.f32.partialorder %v1574_v14, 3.387097  ;;  %v2007_v22 = vld [vmem:[%s2613_s1 + $0x20] sm:$0xff] }
  0x71   :  { %590 = vadd.xlane.f32.xlu2 %v589_v11  ;;  %574 = vadd.xlane.f32.xlu1 %v573_v15  ;;  %v624_v26 = vadd.f32 %v623_v21, %v620_v23  ;;  %vm600_vm0 = vcmp.lt.f32.partialorder %v1540_v3, 3.387097  ;;  %v621_v29 = vsel %vm616_vm15, 1.0, %v1480_v5  ;;  %vm617_vm1 = vcmp.lt.f32.partialorder %v1585_v17, 3.387097  ;;  %v1997_v15 = vld [vmem:[%s2613_s1 + $0x18] sm:$0xff] }
  0x72   :  { %v605_v30 = vsel %vm600_vm0, 1.0, %v1480_v5  ;;  %v608_v31 = vadd.f32 %v607_v25, %v604_v24  ;;  %vm601_vm2 = vcmp.lt.f32.partialorder %v1545_v4, 3.387097  ;;  %vm77_vm3 = vcmask 7168  }
  0x73   :  { %v625_v33 = vadd.f32 %v624_v26, %v621_v29  ;;  %v622_v34 = vsel %vm617_vm1, 1.0, %v1480_v5  ;;  %v606_v3 = vsel %vm601_vm2, 1.0, %v1480_v5  ;;  %vm634_vm4 = vcmp.lt.f32.partialorder %v1525_v0, 3.612903 }
  0x74   :  { %v609_v35 = vadd.f32 %v608_v31, %v605_v30  ;;  %vm635_vm5 = vcmp.lt.f32.partialorder %v1530_v1, 3.612903  ;;  %v639_v4 = vsel %vm634_vm4, 1.0, %v1480_v5  ;;  %vm650_vm6 = vcmp.lt.f32.partialorder %v1556_v8, 3.612903  ;;  %v1930_v8 = vld [vmem:[%s2612_s0 + $0x18] sm:$0xff] }
  0x75   :  { %v626_v37 = vadd.f32 %v625_v33, %v622_v34  ;;  %v640_v39 = vsel %vm635_vm5, 1.0, %v1480_v5  ;;  %vm651_vm7 = vcmp.lt.f32.partialorder %v1564_v12, 3.612903  ;;  %vm636_vm9 = vcmp.lt.f32.partialorder %v1535_v2, 3.612903 }
  0x76   :  { %v610_v38 = vadd.f32 %v609_v35, %v606_v3  ;;  %v644_v42 = vadd.f32 %v640_v39, %v639_v4  ;;  %vm652_vm10 = vcmp.lt.f32.partialorder %v1569_v13, 3.612903  ;;  %v655_v0 = vsel %vm650_vm6, 1.0, %v1480_v5 }
  0x77   :  { %v641_v1 = vsel %vm636_vm9, 1.0, %v1480_v5  ;;  %v656_v43 = vsel %vm651_vm7, 1.0, %v1480_v5  ;;  %v657_v44 = vsel %vm652_vm10, 1.0, %v1480_v5  ;;  %vm637_vm11 = vcmp.lt.f32.partialorder %v1930_v8, 3.612903 }
  0x78   :  { %611 = vadd.xlane.f32.xlu0 %v610_v38  ;;  %v645_v12 = vadd.f32 %v644_v42, %v641_v1  ;;  %vm653_vm12 = vcmp.lt.f32.partialorder %v1574_v14, 3.612903  ;;  %v660_v2 = vadd.f32 %v656_v43, %v655_v0  ;;  %v642_v45 = vsel %vm637_vm11, 1.0, %v1480_v5 }
  0x79   :  { %627 = vadd.xlane.f32.xlu1 %v626_v37  ;;  %v658_v46 = vsel %vm653_vm12, 1.0, %v1480_v5  ;;  %vm638_vm13 = vcmp.lt.f32.partialorder %v1940_v47, 3.612903  ;;  %vm654_vm14 = vcmp.lt.f32.partialorder %v1585_v17, 3.612903  ;;  %vm114_vm15 = vcmask 15368  }
  0x7a   :  { %v646_v48 = vadd.f32 %v645_v12, %v642_v45  ;;  %v661_v49 = vadd.f32 %v660_v2, %v657_v44  ;;  %v643_v50 = vsel %vm638_vm13, 1.0, %v1480_v5  ;;  %v659_v51 = vsel %vm654_vm14, 1.0, %v1480_v5  ;;  %v1955_v17 = vld [vmem:[%s2613_s1] sm:$0xff] }
  0x7b   :  { %vm687_vm0 = vcmp.lt.f32.partialorder %v1955_v17, 3.8387096  ;;  %vm688_vm1 = vcmp.lt.f32.partialorder %v1961_v56, 3.8387096  ;;  %vm671_vm2 = vcmp.lt.f32.partialorder %v1969_v59, 3.8387096 }
  0x7c   :  { %v647_v53 = vadd.f32 %v646_v48, %v643_v50  ;;  %v662_v54 = vadd.f32 %v661_v49, %v658_v46  ;;  %v692_v57 = vsel %vm687_vm0, 1.0, %v1480_v5  ;;  %v693_v58 = vsel %vm688_vm1, 1.0, %v1480_v5 }
  0x7d   :  { %vm689_vm4 = vcmp.lt.f32.partialorder %v1981_v62, 3.8387096  ;;  %v697_v63 = vadd.f32 %v693_v58, %v692_v57  ;;  %v676_v7 = vsel %vm671_vm2, 1.0, %v1480_v5  ;;  %vm690_vm6 = vcmp.lt.f32.partialorder %v1997_v15, 3.8387096 }
  0x7e   :  { %648 = vadd.xlane.f32.xlu2 %v647_v53  ;;  %v663_v55 = vadd.f32 %v662_v54, %v659_v51  ;;  %v694_v9 = vsel %vm689_vm4, 1.0, %v1480_v5  ;;  %vm674_vm7 = vcmp.lt.f32.partialorder %v1930_v8, 3.8387096  ;;  %vm691_vm9 = vcmp.lt.f32.partialorder %v2007_v22, 3.8387096 }
  0x7f   :  { %v57_v6 = vpop.xlane.xlu0 %56  ;;  %v698_v16 = vadd.f32 %v697_v63, %v694_v9  ;;  %v679_v21 = vsel %vm674_vm7, 1.0, %v1480_v5  ;;  %vm675_vm10 = vcmp.lt.f32.partialorder %v1940_v47, 3.8387096  ;;  %vm151_vm11 = vcmask 23568  }
  0x80   :  { %664 = vadd.xlane.f32.xlu0 %v663_v55  ;;  %v696_v26 = vsel %vm691_vm9, 1.0, %v1480_v5  ;;  %vm724_vm12 = vcmp.lt.f32.partialorder %v1955_v17, 4.064516  ;;  %vm725_vm13 = vcmp.lt.f32.partialorder %v1961_v56, 4.064516 }
  0x81   :  { %v729_v3 = vsel %vm724_vm12, 1.0, %v1480_v5  ;;  %v730_v35 = vsel %vm725_vm13, 1.0, %v1480_v5  ;;  %vm708_vm14 = vcmp.lt.f32.partialorder %v1969_v59, 4.064516  ;;  %vm709_vm0 = vcmp.lt.f32.partialorder %v1975_v60, 4.064516 }
  0x82   :  { %v713_v38 = vsel %vm708_vm14, 1.0, %v1480_v5  ;;  %v714_v4 = vsel %vm709_vm0, 1.0, %v1480_v5  ;;  %vm727_vm2 = vcmp.lt.f32.partialorder %v1997_v15, 4.064516  ;;  %vm728_vm4 = vcmp.lt.f32.partialorder %v2007_v22, 4.064516 }
  0x83   :  { %v1892_v20 = vpop.xlane.xlu1 %93  ;;  %v732_v42 = vsel %vm727_vm2, 1.0, %v1480_v5  ;;  %v733_v12 = vsel %vm728_vm4, 1.0, %v1480_v5  ;;  %vm745_vm7 = vcmp.lt.f32.partialorder %v1969_v59, 4.290323  ;;  %vm746_vm9 = vcmp.lt.f32.partialorder %v1975_v60, 4.290323 }
  0x84   :  { %v750_v50 = vsel %vm745_vm7, 1.0, %v1480_v5  ;;  %v751_v51 = vsel %vm746_vm9, 1.0, %v1480_v5  ;;  %vm763_vm13 = vcmp.lt.f32.partialorder %v1981_v62, 4.290323  ;;  %vm748_vm14 = vcmp.lt.f32.partialorder %v1930_v8, 4.290323 }
  0x85   :  { %v768_v58 = vsel %vm763_vm13, 1.0, %v1480_v5  ;;  %vm749_vm0 = vcmp.lt.f32.partialorder %v1940_v47, 4.290323  ;;  %vm225_vm2 = vcmask 39968   ;;  %vm799_vm4 = vcmp.lt.f32.partialorder %v1961_v56, 4.516129 }
  0x86   :  { %vm783_vm7 = vcmp.lt.f32.partialorder %v1975_v60, 4.516129  ;;  %vm786_vm13 = vcmp.lt.f32.partialorder %v1940_v47, 4.516129 }
  0x87   :  { %v73_v27 = vpop.xlane.xlu0 %72 }
  0x88   :  { %v75_v32 = vsub.f32 %v57_v6, %v73_v27  ;;  %v1987_v6 = vld [vmem:[%s2612_s0 + $0x10] sm:$0xff]  ;;  %v680_v27 = vsel %vm675_vm10, 1.0, %v1480_v5  ;;  %vm761_vm10 = vcmp.lt.f32.partialorder %v1955_v17, 4.290323 }
  0x89   :  { %vm673_vm5 = vcmp.lt.f32.partialorder %v1987_v6, 3.8387096  ;;  %vm710_vm1 = vcmp.lt.f32.partialorder %v1987_v6, 4.064516  ;;  %vm747_vm12 = vcmp.lt.f32.partialorder %v1987_v6, 4.290323 }
  0x8a   :  { %v76_v36 = vadd.f32 %v75_v32, %v74_v28  ;;  %v678_v11 = vsel %vm673_vm5, 1.0, %v1480_v5  ;;  %v715_v39 = vsel %vm710_vm1, 1.0, %v1480_v5  ;;  %vm712_vm5 = vcmp.lt.f32.partialorder %v1940_v47, 4.064516 }
  0x8b   :  { %v110_v40 = vpop.xlane.xlu1 %109  ;;  %v717_v2 = vsel %vm712_vm5, 1.0, %v1480_v5  ;;  %v766_v53 = vsel %vm761_vm10, 1.0, %v1480_v5  ;;  %v752_v55 = vsel %vm747_vm12, 1.0, %v1480_v5  ;;  %vm765_vm1 = vcmp.lt.f32.partialorder %v2007_v22, 4.290323 }
  0x8c   :  { %78 = vst.msk [vmem:[%s2618_s6] sm:$0xff] %vm77_vm3, %v76_v36  ;;  %v112_v13 = vsub.f32 %v1892_v20, %v110_v40  ;;  %vm672_vm3 = vcmp.lt.f32.partialorder %v1975_v60, 3.8387096  ;;  %v695_v20 = vsel %vm690_vm6, 1.0, %v1480_v5  ;;  %v734_v36 = vadd.f32 %v730_v35, %v729_v3 }
  0x8d   :  { %v1919_v41 = vpop.xlane.xlu2 %130  ;;  %v677_v10 = vsel %vm672_vm3, 1.0, %v1480_v5  ;;  %v699_v23 = vadd.f32 %v698_v16, %v695_v20  ;;  %vm711_vm3 = vcmp.lt.f32.partialorder %v1930_v8, 4.064516  ;;  %vm188_vm6 = vcmask 31768  }
  0x8e   :  { %v681_v18 = vadd.f32 %v677_v10, %v676_v7  ;;  %v716_v0 = vsel %vm711_vm3, 1.0, %v1480_v5  ;;  %v753_v7 = vsel %vm748_vm14, 1.0, %v1480_v5  ;;  %v754_v16 = vsel %vm749_vm0, 1.0, %v1480_v5 }
  0x8f   :  { %v700_v31 = vadd.f32 %v699_v23, %v696_v26  ;;  %vm798_vm3 = vcmp.lt.f32.partialorder %v1955_v17, 4.516129  ;;  %vm782_vm5 = vcmp.lt.f32.partialorder %v1969_v59, 4.516129  ;;  %vm784_vm9 = vcmp.lt.f32.partialorder %v1987_v6, 4.516129 }
  0x90   :  { %v682_v24 = vadd.f32 %v681_v18, %v678_v11  ;;  %vm801_vm10 = vcmp.lt.f32.partialorder %v1997_v15, 4.516129  ;;  %v789_v3 = vsel %vm784_vm9, 1.0, %v1480_v5  ;;  %vm802_vm12 = vcmp.lt.f32.partialorder %v2007_v22, 4.516129 }
  0x91   :  { %701 = vadd.xlane.f32.xlu2 %v700_v31  ;;  %v806_v35 = vsel %vm801_vm10, 1.0, %v1480_v5  ;;  %vm262_vm14 = vcmask 48168   ;;  %vm836_vm0 = vcmp.lt.f32.partialorder %v1961_v56, 4.7419353  ;;  %vm823_vm9 = vcmp.lt.f32.partialorder %v1940_v47, 4.7419353 }
  0x92   :  { %v683_v32 = vadd.f32 %v682_v24, %v679_v21  ;;  %v770_v21 = vsel %vm765_vm1, 1.0, %v1480_v5  ;;  %vm819_vm1 = vcmp.lt.f32.partialorder %v1969_v59, 4.7419353  ;;  %vm299_vm10 = vcmask 56368  }
  0x93   :  { %v111_v14 = vld [vmem:[%s2618_s6] sm:$0xff] }
  0x94   :  { %v113_v52 = vadd.f32 %v112_v13, %v111_v14  ;;  %v684_v33 = vadd.f32 %v683_v32, %v680_v27  ;;  %v803_v27 = vsel %vm798_vm3, 1.0, %v1480_v5  ;;  %v787_v32 = vsel %vm782_vm5, 1.0, %v1480_v5 }
  0x95   :  { %v147_v61 = vpop.xlane.xlu2 %146  ;;  %v184_v29 = vpop.xlane.xlu1 %183  ;;  %vm820_vm3 = vcmp.lt.f32.partialorder %v1975_v60, 4.7419353  ;;  %vm838_vm5 = vcmp.lt.f32.partialorder %v1997_v15, 4.7419353 }
  0x96   :  { %115 = vst.msk [vmem:[%s2618_s6] sm:$0xff] %vm114_vm15, %v113_v52  ;;  %v149_v19 = vsub.f32 %v1919_v41, %v147_v61  ;;  %685 = vadd.xlane.f32.xlu1 %v684_v33  ;;  %vm726_vm15 = vcmp.lt.f32.partialorder %v1981_v62, 4.064516  ;;  %v718_v41 = vadd.f32 %v714_v4, %v713_v38  ;;  %v755_v52 = vadd.f32 %v751_v51, %v750_v50 }
  0x97   :  { %v731_v37 = vsel %vm726_vm15, 1.0, %v1480_v5  ;;  %vm764_vm15 = vcmp.lt.f32.partialorder %v1997_v15, 4.290323  ;;  %v788_v33 = vsel %vm783_vm7, 1.0, %v1480_v5  ;;  %vm839_vm7 = vcmp.lt.f32.partialorder %v2007_v22, 4.7419353 }
  0x98   :  { %v168_v30 = vpop.xlane.xlu0 %167  ;;  %v735_v40 = vadd.f32 %v734_v36, %v731_v37  ;;  %v719_v43 = vadd.f32 %v718_v41, %v715_v39  ;;  %v756_v61 = vadd.f32 %v755_v52, %v752_v55  ;;  %v769_v10 = vsel %vm764_vm15, 1.0, %v1480_v5 }
  0x99   :  { %v186_v34 = vsub.f32 %v168_v30, %v184_v29  ;;  %v792_v36 = vadd.f32 %v788_v33, %v787_v32  ;;  %v807_v41 = vsel %vm802_vm12, 1.0, %v1480_v5  ;;  %vm835_vm15 = vcmp.lt.f32.partialorder %v1955_v17, 4.7419353 }
  0x9a   :  { %v736_v1 = vadd.f32 %v735_v40, %v732_v42  ;;  %v720_v46 = vadd.f32 %v719_v43, %v716_v0  ;;  %v757_v9 = vadd.f32 %v756_v61, %v753_v7  ;;  %v791_v43 = vsel %vm786_vm13, 1.0, %v1480_v5 }
  0x9b   :  { %v793_v42 = vadd.f32 %v792_v36, %v789_v3  ;;  %v844_v61 = vsel %vm839_vm7, 1.0, %v1480_v5  ;;  %vm857_vm12 = vcmp.lt.f32.partialorder %v1975_v60, 4.967742  ;;  %vm872_vm13 = vcmp.lt.f32.partialorder %v1955_v17, 4.967742 }
  0x9c   :  { %v737_v45 = vadd.f32 %v736_v1, %v733_v12  ;;  %v721_v14 = vadd.f32 %v720_v46, %v717_v2  ;;  %v758_v20 = vadd.f32 %v757_v9, %v754_v16  ;;  %vm910_vm7 = vcmp.lt.f32.partialorder %v1961_v56, 5.193548 }
  0x9d   :  { %v148_v25 = vld [vmem:[%s2618_s6] sm:$0xff]  ;;  %v205_v48 = vpop.xlane.xlu2 %204 }
  0x9e   :  { %v150_v28 = vadd.f32 %v149_v19, %v148_v25  ;;  %738 = vadd.xlane.f32.xlu1 %v737_v45  ;;  %722 = vadd.xlane.f32.xlu0 %v721_v14  ;;  %v841_v45 = vsel %vm836_vm0, 1.0, %v1480_v5  ;;  %v825_v14 = vsel %vm820_vm3, 1.0, %v1480_v5  ;;  %vm874_vm0 = vcmp.lt.f32.partialorder %v1981_v62, 4.967742 }
  0x9f   :  { %759 = vadd.xlane.f32.xlu2 %v758_v20  ;;  %v862_v20 = vsel %vm857_vm12, 1.0, %v1480_v5  ;;  %vm860_vm3 = vcmp.lt.f32.partialorder %v1940_v47, 4.967742  ;;  %vm895_vm12 = vcmp.lt.f32.partialorder %v1987_v6, 5.193548 }
  0xa0   :  { %152 = vst.msk [vmem:[%s2618_s6] sm:$0xff] %vm151_vm11, %v150_v28  ;;  %v221_v49 = vpop.xlane.xlu0 %220  ;;  %vm762_vm11 = vcmp.lt.f32.partialorder %v1961_v56, 4.290323  ;;  %v804_v28 = vsel %vm799_vm4, 1.0, %v1480_v5  ;;  %vm821_vm4 = vcmp.lt.f32.partialorder %v1987_v6, 4.7419353 }
  0xa1   :  { %v223_v54 = vsub.f32 %v205_v48, %v221_v49  ;;  %v767_v57 = vsel %vm762_vm11, 1.0, %v1480_v5  ;;  %v808_v29 = vadd.f32 %v804_v28, %v803_v27  ;;  %vm785_vm11 = vcmp.lt.f32.partialorder %v1930_v8, 4.516129 }
  0xa2   :  { %v771_v63 = vadd.f32 %v767_v57, %v766_v53  ;;  %v790_v38 = vsel %vm785_vm11, 1.0, %v1480_v5  ;;  %v824_v49 = vsel %vm819_vm1, 1.0, %v1480_v5  ;;  %v826_v50 = vsel %vm821_vm4, 1.0, %v1480_v5 }
  0xa3   :  { %v829_v52 = vadd.f32 %v825_v14, %v824_v49  ;;  %v843_v53 = vsel %vm838_vm5, 1.0, %v1480_v5  ;;  %vm856_vm11 = vcmp.lt.f32.partialorder %v1969_v59, 4.967742  ;;  %v879_v27 = vsel %vm874_vm0, 1.0, %v1480_v5 }
  0xa4   :  { %v772_v18 = vadd.f32 %v771_v63, %v768_v58  ;;  %v828_v63 = vsel %vm823_vm9, 1.0, %v1480_v5  ;;  %vm859_vm1 = vcmp.lt.f32.partialorder %v1930_v8, 4.967742  ;;  %vm876_vm4 = vcmp.lt.f32.partialorder %v2007_v22, 4.967742 }
  0xa5   :  { %v258_v25 = vpop.xlane.xlu2 %257  ;;  %v830_v57 = vadd.f32 %v829_v52, %v826_v50  ;;  %vm336_vm5 = vcmask 64568   ;;  %v865_v3 = vsel %vm860_vm3, 1.0, %v1480_v5  ;;  %vm893_vm9 = vcmp.lt.f32.partialorder %v1969_v59, 5.193548 }
  0xa6   :  { %v242_v23 = vpop.xlane.xlu1 %241  ;;  %v773_v24 = vadd.f32 %v772_v18, %v769_v10  ;;  %vm897_vm0 = vcmp.lt.f32.partialorder %v1940_v47, 5.193548  ;;  %vm947_vm3 = vcmp.lt.f32.partialorder %v1961_v56, 5.419355 }
  0xa7   :  { %v185_v44 = vld [vmem:[%s2618_s6] sm:$0xff]  ;;  %v260_v30 = vsub.f32 %v242_v23, %v258_v25  ;;  %v877_v23 = vsel %vm872_vm13, 1.0, %v1480_v5  ;;  %vm912_vm13 = vcmp.lt.f32.partialorder %v1997_v15, 5.193548  ;;  %v902_v52 = vsel %vm897_vm0, 1.0, %v1480_v5 }
  0xa8   :  { %v187_v13 = vadd.f32 %v186_v34, %v185_v44  ;;  %v774_v26 = vadd.f32 %v773_v24, %v770_v21  ;;  %v794_v44 = vadd.f32 %v793_v42, %v790_v38  ;;  %v915_v42 = vsel %vm910_vm7, 1.0, %v1480_v5 }
  0xa9   :  { %vm932_vm7 = vcmp.lt.f32.partialorder %v1987_v6, 5.419355  ;;  %vm983_vm0 = vcmp.lt.f32.partialorder %v1955_v17, 5.645161 }
  0xaa   :  { %189 = vst.msk [vmem:[%s2618_s6] sm:$0xff] %vm188_vm6, %v187_v13  ;;  %vm800_vm6 = vcmp.lt.f32.partialorder %v1981_v62, 4.516129  ;;  %775 = vadd.xlane.f32.xlu0 %v774_v26  ;;  %v795_v2 = vadd.f32 %v794_v44, %v791_v43  ;;  %v840_v13 = vsel %vm835_vm15, 1.0, %v1480_v5  ;;  %vm858_vm15 = vcmp.lt.f32.partialorder %v1987_v6, 4.967742 }
  0xab   :  { %v805_v31 = vsel %vm800_vm6, 1.0, %v1480_v5  ;;  %v845_v46 = vadd.f32 %v841_v45, %v840_v13  ;;  %vm822_vm6 = vcmp.lt.f32.partialorder %v1930_v8, 4.7419353  ;;  %v863_v25 = vsel %vm858_vm15, 1.0, %v1480_v5 }
  0xac   :  { %v809_v34 = vadd.f32 %v808_v29, %v805_v31  ;;  %796 = vadd.xlane.f32.xlu1 %v795_v2  ;;  %v900_v2 = vsel %vm895_vm12, 1.0, %v1480_v5  ;;  %vm913_vm15 = vcmp.lt.f32.partialorder %v2007_v22, 5.193548  ;;  %vm934_vm12 = vcmp.lt.f32.partialorder %v1940_v47, 5.419355 }
  0xad   :  { %v279_v40 = vpop.xlane.xlu0 %278 }
  0xae   :  { %v810_v37 = vadd.f32 %v809_v34, %v806_v35  ;;  %v295_v39 = vpop.xlane.xlu1 %294  ;;  %v881_v35 = vsel %vm876_vm4, 1.0, %v1480_v5  ;;  %vm930_vm4 = vcmp.lt.f32.partialorder %v1969_v59, 5.419355 }
  0xaf   :  { %v297_v12 = vsub.f32 %v279_v40, %v295_v39 }
  0xb0   :  { %v811_v1 = vadd.f32 %v810_v37, %v807_v41 }
  0xb1   :  { %v222_v11 = vld [vmem:[%s2618_s6] sm:$0xff] }
  0xb2   :  { %v224_v19 = vadd.f32 %v223_v54, %v222_v11  ;;  %812 = vadd.xlane.f32.xlu2 %v811_v1  ;;  %v827_v54 = vsel %vm822_vm6, 1.0, %v1480_v5  ;;  %v316_v11 = vpop.xlane.xlu2 %315  ;;  %vm909_vm6 = vcmp.lt.f32.partialorder %v1955_v17, 5.193548  ;;  %v898_v1 = vsel %vm893_vm9, 1.0, %v1480_v5 }
  0xb3   :  { %v831_v10 = vadd.f32 %v830_v57, %v827_v54  ;;  %v914_v41 = vsel %vm909_vm6, 1.0, %v1480_v5  ;;  %vm948_vm6 = vcmp.lt.f32.partialorder %v1981_v62, 5.419355  ;;  %vm949_vm9 = vcmp.lt.f32.partialorder %v1997_v15, 5.419355 }
  0xb4   :  { %226 = vst.msk [vmem:[%s2618_s6] sm:$0xff] %vm225_vm2, %v224_v19  ;;  %vm837_vm2 = vcmp.lt.f32.partialorder %v1981_v62, 4.7419353  ;;  %v861_v19 = vsel %vm856_vm11, 1.0, %v1480_v5  ;;  %vm911_vm11 = vcmp.lt.f32.partialorder %v1981_v62, 5.193548 }
  0xb5   :  { %v842_v48 = vsel %vm837_vm2, 1.0, %v1480_v5  ;;  %v332_v16 = vpop.xlane.xlu0 %331  ;;  %v832_v18 = vadd.f32 %v831_v10, %v828_v63  ;;  %v866_v21 = vadd.f32 %v862_v20, %v861_v19  ;;  %vm875_vm2 = vcmp.lt.f32.partialorder %v1997_v15, 4.967742 }
  0xb6   :  { %v846_v51 = vadd.f32 %v845_v46, %v842_v48  ;;  %v334_v24 = vsub.f32 %v316_v11, %v332_v16  ;;  %v880_v31 = vsel %vm875_vm2, 1.0, %v1480_v5  ;;  %v916_v44 = vsel %vm911_vm11, 1.0, %v1480_v5 }
  0xb7   :  { %833 = vadd.xlane.f32.xlu0 %v832_v18  ;;  %v867_v28 = vadd.f32 %v866_v21, %v863_v25  ;;  %v917_v46 = vsel %vm912_vm13, 1.0, %v1480_v5  ;;  %vm946_vm2 = vcmp.lt.f32.partialorder %v1955_v17, 5.419355  ;;  %v935_v10 = vsel %vm930_vm4, 1.0, %v1480_v5 }
  0xb8   :  { %v847_v55 = vadd.f32 %v846_v51, %v843_v53  ;;  %v918_v51 = vsel %vm913_vm15, 1.0, %v1480_v5  ;;  %v951_v63 = vsel %vm946_vm2, 1.0, %v1480_v5  ;;  %v953_v16 = vsel %vm948_vm6, 1.0, %v1480_v5 }
  0xb9   :  { %v937_v19 = vsel %vm932_vm7, 1.0, %v1480_v5  ;;  %vm950_vm11 = vcmp.lt.f32.partialorder %v2007_v22, 5.419355  ;;  %vm410_vm13 = vcmask 80968   ;;  %vm968_vm15 = vcmp.lt.f32.partialorder %v1975_v60, 5.645161 }
  0xba   :  { %v848_v9 = vadd.f32 %v847_v55, %v844_v61  ;;  %vm969_vm2 = vcmp.lt.f32.partialorder %v1987_v6, 5.645161  ;;  %vm970_vm4 = vcmp.lt.f32.partialorder %v1930_v8, 5.645161  ;;  %vm971_vm6 = vcmp.lt.f32.partialorder %v1940_v47, 5.645161 }
  0xbb   :  { %v259_v4 = vld [vmem:[%s2618_s6] sm:$0xff]  ;;  %v353_v39 = vpop.xlane.xlu1 %352  ;;  %vm987_vm7 = vcmp.lt.f32.partialorder %v2007_v22, 5.645161 }
  0xbc   :  { %v261_v0 = vadd.f32 %v260_v30, %v259_v4  ;;  %849 = vadd.xlane.f32.xlu1 %v848_v9  ;;  %v864_v30 = vsel %vm859_vm1, 1.0, %v1480_v5  ;;  %v369_v4 = vpop.xlane.xlu2 %368  ;;  %vm373_vm1 = vcmask 72768  }
  0xbd   :  { %v868_v32 = vadd.f32 %v867_v28, %v864_v30  ;;  %v371_v43 = vsub.f32 %v353_v39, %v369_v4  ;;  %v955_v28 = vsel %vm950_vm11, 1.0, %v1480_v5  ;;  %v974_v39 = vsel %vm969_vm2, 1.0, %v1480_v5 }
  0xbe   :  { %263 = vst.msk [vmem:[%s2618_s6] sm:$0xff] %vm262_vm14, %v261_v0  ;;  %vm873_vm14 = vcmp.lt.f32.partialorder %v1961_v56, 4.967742  ;;  %v919_v0 = vadd.f32 %v915_v42, %v914_v41  ;;  %vm1021_vm11 = vcmp.lt.f32.partialorder %v1961_v56, 5.870968 }
  0xbf   :  { %v878_v26 = vsel %vm873_vm14, 1.0, %v1480_v5  ;;  %v869_v37 = vadd.f32 %v868_v32, %v865_v3  ;;  %vm896_vm14 = vcmp.lt.f32.partialorder %v1930_v8, 5.193548  ;;  %vm1024_vm2 = vcmp.lt.f32.partialorder %v2007_v22, 5.870968 }
  0xc0   :  { %v882_v29 = vadd.f32 %v878_v26, %v877_v23  ;;  %v920_v13 = vadd.f32 %v919_v0, %v916_v44  ;;  %v901_v48 = vsel %vm896_vm14, 1.0, %v1480_v5  ;;  %v954_v23 = vsel %vm949_vm9, 1.0, %v1480_v5 }
  0xc1   :  { %870 = vadd.xlane.f32.xlu2 %v869_v37  ;;  %vm967_vm14 = vcmp.lt.f32.partialorder %v1969_v59, 5.645161  ;;  %vm447_vm9 = vcmask 89168  }
  0xc2   :  { %v883_v33 = vadd.f32 %v882_v29, %v879_v27  ;;  %v921_v49 = vadd.f32 %v920_v13, %v917_v46  ;;  %v939_v29 = vsel %vm934_vm12, 1.0, %v1480_v5  ;;  %v976_v13 = vsel %vm971_vm6, 1.0, %v1480_v5 }
  0xc3   :  { %v406_v57 = vpop.xlane.xlu1 %405  ;;  %vm1004_vm12 = vcmp.lt.f32.partialorder %v1969_v59, 5.870968  ;;  %vm1058_vm6 = vcmp.lt.f32.partialorder %v1961_v56, 6.096774 }
  0xc4   :  { %v884_v38 = vadd.f32 %v883_v33, %v880_v31  ;;  %v922_v54 = vadd.f32 %v921_v49, %v918_v51 }
  0xc5   :  { %v296_v58 = vld [vmem:[%s2618_s6] sm:$0xff] }
  0xc6   :  { %v298_v7 = vadd.f32 %v297_v12, %v296_v58  ;;  %v885_v40 = vadd.f32 %v884_v38, %v881_v35  ;;  %v390_v58 = vpop.xlane.xlu0 %389  ;;  %v427_v33 = vpop.xlane.xlu2 %426  ;;  %v972_v35 = vsel %vm967_vm14, 1.0, %v1480_v5  ;;  %v988_v38 = vsel %vm983_vm0, 1.0, %v1480_v5 }
  0xc7   :  { %v408_v11 = vsub.f32 %v390_v58, %v406_v57  ;;  %vm1022_vm14 = vcmp.lt.f32.partialorder %v1981_v62, 5.870968  ;;  %vm1023_vm0 = vcmp.lt.f32.partialorder %v1997_v15, 5.870968 }
  0xc8   :  { %300 = vst.msk [vmem:[%s2618_s6] sm:$0xff] %vm299_vm10, %v298_v7  ;;  %vm894_vm10 = vcmp.lt.f32.partialorder %v1975_v60, 5.193548  ;;  %886 = vadd.xlane.f32.xlu0 %v885_v40  ;;  %v952_v7 = vsel %vm947_vm3, 1.0, %v1480_v5  ;;  %vm985_vm3 = vcmp.lt.f32.partialorder %v1981_v62, 5.645161 }
  0xc9   :  { %v899_v12 = vsel %vm894_vm10, 1.0, %v1480_v5  ;;  %923 = vadd.xlane.f32.xlu2 %v922_v54  ;;  %v956_v9 = vadd.f32 %v952_v7, %v951_v63  ;;  %vm933_vm10 = vcmp.lt.f32.partialorder %v1930_v8, 5.419355  ;;  %v990_v41 = vsel %vm985_vm3, 1.0, %v1480_v5 }
  0xca   :  { %v903_v45 = vadd.f32 %v899_v12, %v898_v1  ;;  %v975_v1 = vsel %vm970_vm4, 1.0, %v1480_v5  ;;  %v1027_v58 = vsel %vm1022_vm14, 1.0, %v1480_v5  ;;  %vm1008_vm3 = vcmp.lt.f32.partialorder %v1940_v47, 5.870968 }
  0xcb   :  { %v957_v20 = vadd.f32 %v956_v9, %v953_v16  ;;  %vm484_vm4 = vcmask 97368   ;;  %vm1061_vm14 = vcmp.lt.f32.partialorder %v2007_v22, 6.096774 }
  0xcc   :  { %v904_v14 = vadd.f32 %v903_v45, %v900_v2  ;;  %v992_v45 = vsel %vm987_vm7, 1.0, %v1480_v5  ;;  %vm1041_vm7 = vcmp.lt.f32.partialorder %v1969_v59, 6.096774 }
  0xcd   :  { %v958_v25 = vadd.f32 %v957_v20, %v954_v23  ;;  %v1029_v20 = vsel %vm1024_vm2, 1.0, %v1480_v5  ;;  %vm1079_vm2 = vcmp.lt.f32.partialorder %v1975_v60, 6.322581 }
  0xce   :  { %v905_v55 = vadd.f32 %v904_v14, %v901_v48  ;;  %v480_v14 = vpop.xlane.xlu2 %479 }
  0xcf   :  { %v333_v34 = vld [vmem:[%s2618_s6] sm:$0xff]  ;;  %v959_v31 = vadd.f32 %v958_v25, %v955_v28 }
  0xd0   :  { %v335_v36 = vadd.f32 %v334_v24, %v333_v34  ;;  %v906_v61 = vadd.f32 %v905_v55, %v902_v52  ;;  %v938_v24 = vsel %vm933_vm10, 1.0, %v1480_v5  ;;  %v443_v34 = vpop.xlane.xlu0 %442  ;;  %vm1020_vm10 = vcmp.lt.f32.partialorder %v1955_v17, 5.870968 }
  0xd1   :  { %v445_v4 = vsub.f32 %v427_v33, %v443_v34  ;;  %v1025_v52 = vsel %vm1020_vm10, 1.0, %v1480_v5  ;;  %v1009_v55 = vsel %vm1004_vm12, 1.0, %v1480_v5  ;;  %vm1059_vm10 = vcmp.lt.f32.partialorder %v1981_v62, 6.096774 }
  0xd2   :  { %337 = vst.msk [vmem:[%s2618_s6] sm:$0xff] %vm336_vm5, %v335_v36  ;;  %vm931_vm5 = vcmp.lt.f32.partialorder %v1975_v60, 5.419355  ;;  %907 = vadd.xlane.f32.xlu1 %v906_v61  ;;  %v973_v36 = vsel %vm968_vm15, 1.0, %v1480_v5  ;;  %vm1006_vm15 = vcmp.lt.f32.partialorder %v1987_v6, 5.870968 }
  0xd3   :  { %v936_v18 = vsel %vm931_vm5, 1.0, %v1480_v5  ;;  %v977_v37 = vadd.f32 %v973_v36, %v972_v35  ;;  %vm986_vm5 = vcmp.lt.f32.partialorder %v1997_v15, 5.645161  ;;  %v1011_v63 = vsel %vm1006_vm15, 1.0, %v1480_v5 }
  0xd4   :  { %v940_v21 = vadd.f32 %v936_v18, %v935_v10  ;;  %v1028_v10 = vsel %vm1023_vm0, 1.0, %v1480_v5  ;;  %v1064_v34 = vsel %vm1059_vm10, 1.0, %v1480_v5  ;;  %vm1060_vm12 = vcmp.lt.f32.partialorder %v1997_v15, 6.096774 }
  0xd5   :  { %v978_v42 = vadd.f32 %v977_v37, %v974_v39  ;;  %vm1045_vm15 = vcmp.lt.f32.partialorder %v1940_v47, 6.096774  ;;  %vm521_vm0 = vcmask 105568   ;;  %vm1082_vm10 = vcmp.lt.f32.partialorder %v1940_v47, 6.322581 }
  0xd6   :  { %v941_v26 = vadd.f32 %v940_v21, %v937_v19  ;;  %v1013_v21 = vsel %vm1008_vm3, 1.0, %v1480_v5  ;;  %vm1094_vm3 = vcmp.lt.f32.partialorder %v1955_v17, 6.322581 }
  0xd7   :  { %v979_v44 = vadd.f32 %v978_v42, %v975_v1  ;;  %v1066_v42 = vsel %vm1061_vm14, 1.0, %v1480_v5  ;;  %vm1132_vm14 = vcmp.lt.f32.partialorder %v1961_v56, 6.548387 }
  0xd8   :  { %v942_v32 = vadd.f32 %v941_v26, %v938_v24 }
  0xd9   :  { %v370_v50 = vld [vmem:[%s2618_s6] sm:$0xff]  ;;  %v980_v48 = vadd.f32 %v979_v44, %v976_v13 }
  0xda   :  { %v372_v53 = vadd.f32 %v371_v43, %v370_v50  ;;  %960 = vadd.xlane.f32.xlu1 %v959_v31  ;;  %v943_v3 = vadd.f32 %v942_v32, %v939_v29  ;;  %v991_v43 = vsel %vm986_vm5, 1.0, %v1480_v5  ;;  %v464_v50 = vpop.xlane.xlu1 %463  ;;  %vm1057_vm5 = vcmp.lt.f32.partialorder %v1955_v17, 6.096774 }
  0xdb   :  { %981 = vadd.xlane.f32.xlu2 %v980_v48  ;;  %v482_v57 = vsub.f32 %v464_v50, %v480_v14  ;;  %v1062_v29 = vsel %vm1057_vm5, 1.0, %v1480_v5  ;;  %v1046_v32 = vsel %vm1041_vm7, 1.0, %v1480_v5  ;;  %vm1080_vm5 = vcmp.lt.f32.partialorder %v1987_v6, 6.322581 }
  0xdc   :  { %374 = vst.msk [vmem:[%s2618_s6] sm:$0xff] %vm373_vm1, %v372_v53  ;;  %vm984_vm1 = vcmp.lt.f32.partialorder %v1961_v56, 5.645161  ;;  %944 = vadd.xlane.f32.xlu0 %v943_v3  ;;  %v1026_v53 = vsel %vm1021_vm11, 1.0, %v1480_v5  ;;  %vm1043_vm11 = vcmp.lt.f32.partialorder %v1987_v6, 6.096774 }
  0xdd   :  { %v989_v40 = vsel %vm984_vm1, 1.0, %v1480_v5  ;;  %v1030_v54 = vadd.f32 %v1026_v53, %v1025_v52  ;;  %vm1007_vm1 = vcmp.lt.f32.partialorder %v1930_v8, 5.870968  ;;  %v1048_v35 = vsel %vm1043_vm11, 1.0, %v1480_v5 }
  0xde   :  { %v993_v0 = vadd.f32 %v989_v40, %v988_v38  ;;  %v1065_v38 = vsel %vm1060_vm12, 1.0, %v1480_v5  ;;  %v1085_v50 = vsel %vm1080_vm5, 1.0, %v1480_v5  ;;  %vm1081_vm7 = vcmp.lt.f32.partialorder %v1930_v8, 6.322581 }
  0xdf   :  { %v1031_v7 = vadd.f32 %v1030_v54, %v1027_v58  ;;  %vm1098_vm11 = vcmp.lt.f32.partialorder %v2007_v22, 6.322581  ;;  %vm558_vm12 = vcmask 113768   ;;  %vm1135_vm5 = vcmp.lt.f32.partialorder %v2007_v22, 6.548387 }
  0xe0   :  { %v994_v12 = vadd.f32 %v993_v0, %v990_v41  ;;  %v1050_v0 = vsel %vm1045_vm15, 1.0, %v1480_v5  ;;  %vm1115_vm15 = vcmp.lt.f32.partialorder %v1969_v59, 6.548387 }
  0xe1   :  { %v1032_v16 = vadd.f32 %v1031_v7, %v1028_v10  ;;  %v1087_v7 = vsel %vm1082_vm10, 1.0, %v1480_v5  ;;  %vm1169_vm10 = vcmp.lt.f32.partialorder %v1961_v56, 6.774194 }
  0xe2   :  { %v995_v49 = vadd.f32 %v994_v12, %v991_v43  ;;  %v517_v26 = vpop.xlane.xlu1 %516  ;;  %v538_v12 = vpop.xlane.xlu2 %537 }
  0xe3   :  { %v407_v27 = vld [vmem:[%s2618_s6] sm:$0xff]  ;;  %v1033_v24 = vadd.f32 %v1032_v16, %v1029_v20 }
  0xe4   :  { %v409_v30 = vadd.f32 %v408_v11, %v407_v27  ;;  %v996_v51 = vadd.f32 %v995_v49, %v992_v45  ;;  %v1012_v11 = vsel %vm1007_vm1, 1.0, %v1480_v5  ;;  %v501_v27 = vpop.xlane.xlu0 %500  ;;  %vm1078_vm1 = vcmp.lt.f32.partialorder %v1969_v59, 6.322581 }
  0xe5   :  { %1034 = vadd.xlane.f32.xlu2 %v1033_v24  ;;  %v519_v33 = vsub.f32 %v501_v27, %v517_v26  ;;  %v1083_v45 = vsel %vm1078_vm1, 1.0, %v1480_v5  ;;  %v1099_v49 = vsel %vm1094_vm3, 1.0, %v1480_v5  ;;  %vm1133_vm1 = vcmp.lt.f32.partialorder %v1981_v62, 6.548387 }
  0xe6   :  { %411 = vst.msk [vmem:[%s2618_s6] sm:$0xff] %vm410_vm13, %v409_v30  ;;  %vm1005_vm13 = vcmp.lt.f32.partialorder %v1975_v60, 5.870968  ;;  %997 = vadd.xlane.f32.xlu0 %v996_v51  ;;  %v1063_v30 = vsel %vm1058_vm6, 1.0, %v1480_v5  ;;  %vm1096_vm6 = vcmp.lt.f32.partialorder %v1981_v62, 6.322581 }
  0xe7   :  { %v1010_v61 = vsel %vm1005_vm13, 1.0, %v1480_v5  ;;  %v1067_v31 = vadd.f32 %v1063_v30, %v1062_v29  ;;  %vm1044_vm13 = vcmp.lt.f32.partialorder %v1930_v8, 6.096774  ;;  %v1101_v52 = vsel %vm1096_vm6, 1.0, %v1480_v5 }
  0xe8   :  { %v1014_v9 = vadd.f32 %v1010_v61, %v1009_v55  ;;  %v1086_v55 = vsel %vm1081_vm7, 1.0, %v1480_v5  ;;  %v1138_v27 = vsel %vm1133_vm1, 1.0, %v1480_v5  ;;  %vm1134_vm3 = vcmp.lt.f32.partialorder %v1997_v15, 6.548387 }
  0xe9   :  { %v1068_v36 = vadd.f32 %v1067_v31, %v1064_v34  ;;  %vm1119_vm6 = vcmp.lt.f32.partialorder %v1940_v47, 6.548387  ;;  %vm595_vm7 = vcmask 121968   ;;  %vm1172_vm1 = vcmp.lt.f32.partialorder %v2007_v22, 6.774194 }
  0xea   :  { %v1015_v18 = vadd.f32 %v1014_v9, %v1011_v63  ;;  %v1103_v9 = vsel %vm1098_vm11, 1.0, %v1480_v5  ;;  %vm1152_vm11 = vcmp.lt.f32.partialorder %v1969_v59, 6.774194 }
  0xeb   :  { %v1069_v39 = vadd.f32 %v1068_v36, %v1065_v38  ;;  %v1140_v36 = vsel %vm1135_vm5, 1.0, %v1480_v5 }
  0xec   :  { %v1016_v25 = vadd.f32 %v1015_v18, %v1012_v11  ;;  %v591_v18 = vpop.xlane.xlu2 %590 }
  0xed   :  { %v444_v2 = vld [vmem:[%s2618_s6] sm:$0xff]  ;;  %v1070_v43 = vadd.f32 %v1069_v39, %v1066_v42  ;;  %v1174_v42 = vsel %vm1169_vm10, 1.0, %v1480_v5 }
  0xee   :  { %v446_v46 = vadd.f32 %v445_v4, %v444_v2  ;;  %v1017_v28 = vadd.f32 %v1016_v25, %v1013_v21  ;;  %v1049_v4 = vsel %vm1044_vm13, 1.0, %v1480_v5  ;;  %v554_v2 = vpop.xlane.xlu0 %553  ;;  %vm1131_vm13 = vcmp.lt.f32.partialorder %v1955_v17, 6.548387 }
  0xef   :  { %v556_v14 = vsub.f32 %v538_v12, %v554_v2  ;;  %v1136_v21 = vsel %vm1131_vm13, 1.0, %v1480_v5  ;;  %v1120_v25 = vsel %vm1115_vm15, 1.0, %v1480_v5  ;;  %vm1170_vm13 = vcmp.lt.f32.partialorder %v1981_v62, 6.774194 }
  0xf0   :  { %448 = vst.msk [vmem:[%s2618_s6] sm:$0xff] %vm447_vm9, %v446_v46  ;;  %vm1042_vm9 = vcmp.lt.f32.partialorder %v1975_v60, 6.096774  ;;  %1018 = vadd.xlane.f32.xlu1 %v1017_v28  ;;  %v1084_v46 = vsel %vm1079_vm2, 1.0, %v1480_v5  ;;  %vm1117_vm2 = vcmp.lt.f32.partialorder %v1987_v6, 6.548387 }
  0xf1   :  { %v1047_v3 = vsel %vm1042_vm9, 1.0, %v1480_v5  ;;  %v1088_v48 = vadd.f32 %v1084_v46, %v1083_v45  ;;  %vm1097_vm9 = vcmp.lt.f32.partialorder %v1997_v15, 6.322581  ;;  %v1122_v29 = vsel %vm1117_vm2, 1.0, %v1480_v5 }
  0xf2   :  { %v1051_v37 = vadd.f32 %v1047_v3, %v1046_v32  ;;  %v1139_v32 = vsel %vm1134_vm3, 1.0, %v1480_v5  ;;  %vm1171_vm15 = vcmp.lt.f32.partialorder %v1997_v15, 6.774194  ;;  %vm632_vm3 = vcmask 130168  }
  0xf3   :  { %v1089_v53 = vadd.f32 %v1088_v48, %v1085_v50  ;;  %v1177_v46 = vsel %vm1172_vm1, 1.0, %v1480_v5  ;;  %vm743_vm1 = vcmask 154768  }
  0xf4   :  { %v1052_v40 = vadd.f32 %v1051_v37, %v1048_v35 }
  0xf5   :  { %v1090_v58 = vadd.f32 %v1089_v53, %v1086_v55  ;;  %v1448_v53 = vld [vmem:[%s2613_s1] sm:$0xff] }
  0xf6   :  { %v1053_v44 = vadd.f32 %v1052_v40, %v1049_v4  ;;  %v612_v40 = vpop.xlane.xlu0 %611 }
  0xf7   :  { %v481_v19 = vld [vmem:[%s2618_s6] sm:$0xff]  ;;  %v1091_v11 = vadd.f32 %v1090_v58, %v1087_v7  ;;  %v1450_v7 = vld [vmem:[%s2612_s0 + $0x10] sm:$0xff] }
  0xf8   :  { %v483_v23 = vadd.f32 %v482_v57, %v481_v19  ;;  %1071 = vadd.xlane.f32.xlu1 %v1070_v43  ;;  %v1054_v13 = vadd.f32 %v1053_v44, %v1050_v0  ;;  %v1102_v57 = vsel %vm1097_vm9, 1.0, %v1480_v5  ;;  %v575_v19 = vpop.xlane.xlu1 %574  ;;  %vm1168_vm9 = vcmp.lt.f32.partialorder %v1955_v17, 6.774194 }
  0xf9   :  { %1092 = vadd.xlane.f32.xlu2 %v1091_v11  ;;  %v593_v26 = vsub.f32 %v575_v19, %v591_v18  ;;  %v1175_v17 = vsel %vm1170_vm13, 1.0, %v1480_v5 }
  0xfa   :  { %485 = vst.msk [vmem:[%s2618_s6] sm:$0xff] %vm484_vm4, %v483_v23  ;;  %vm1095_vm4 = vcmp.lt.f32.partialorder %v1961_v56, 6.322581  ;;  %1055 = vadd.xlane.f32.xlu0 %v1054_v13  ;;  %v1137_v23 = vsel %vm1132_vm14, 1.0, %v1480_v5  ;;  %vm1154_vm14 = vcmp.lt.f32.partialorder %v1987_v6, 6.774194 }
  0xfb   :  { %v1100_v51 = vsel %vm1095_vm4, 1.0, %v1480_v5  ;;  %v1141_v24 = vadd.f32 %v1137_v23, %v1136_v21  ;;  %vm1118_vm4 = vcmp.lt.f32.partialorder %v1930_v8, 6.548387  ;;  %v1124_v8 = vsel %vm1119_vm6, 1.0, %v1480_v5  ;;  %v1445_v13 = vld [vmem:[%s2612_s0 + $0x20] sm:$0xff]  ;;  %v1452_v23 = vld [vmem:[%s2613_s1 + $0x18] sm:$0xff] }
  0xfc   :  { %v1104_v54 = vadd.f32 %v1100_v51, %v1099_v49  ;;  %v1159_v44 = vsel %vm1154_vm14, 1.0, %v1480_v5  ;;  %v1176_v6 = vsel %vm1171_vm15, 1.0, %v1480_v5  ;;  %vm1156_vm2 = vcmp.lt.f32.partialorder %v1445_v13, 6.774194  ;;  %v1446_v51 = vld [vmem:[%s2612_s0] sm:$0xff] }
  0xfd   :  { %v1142_v30 = vadd.f32 %v1141_v24, %v1138_v27  ;;  %v1161_v48 = vsel %vm1156_vm2, 1.0, %v1480_v5  ;;  %vm1205_vm6 = vcmp.lt.f32.partialorder %v1448_v53, 7.0  ;;  %vm1193_vm13 = vcmp.lt.f32.partialorder %v1445_v13, 7.0 }
  0xfe   :  { %v1105_v61 = vadd.f32 %v1104_v54, %v1101_v52  ;;  %v1447_v52 = vld [vmem:[%s2612_s0 + $0x8] sm:$0xff]  ;;  %v649_v54 = vpop.xlane.xlu2 %648  ;;  %v665_v55 = vpop.xlane.xlu0 %664  ;;  %vm669_vm15 = vcmask 138368   ;;  %vm780_vm2 = vcmask 162968  }
  0xff   :  { %v1143_v34 = vadd.f32 %v1142_v30, %v1139_v32  ;;  %vm1190_vm5 = vcmp.lt.f32.partialorder %v1447_v52, 7.0  ;;  %v1198_v30 = vsel %vm1193_vm13, 1.0, %v1480_v5  ;;  %vm1150_vm13 = vcmask 244968  }
 0x100   :  { %v1106_v16 = vadd.f32 %v1105_v61, %v1102_v57  ;;  %v628_v39 = vpop.xlane.xlu1 %627  ;;  %v1195_v58 = vsel %vm1190_vm5, 1.0, %v1480_v5  ;;  %v1449_v61 = vld [vmem:[%s2613_s1 + $0x8] sm:$0xff]  ;;  %vm891_vm5 = vcmask 187568  }
 0x101   :  { %v518_v41 = vld [vmem:[%s2618_s6] sm:$0xff]  ;;  %v1144_v38 = vadd.f32 %v1143_v34, %v1140_v36  ;;  %v630_v43 = vsub.f32 %v612_v40, %v628_v39 }
 0x102   :  { %v520_v1 = vadd.f32 %v519_v33, %v518_v41  ;;  %v1107_v20 = vadd.f32 %v1106_v16, %v1103_v9  ;;  %v1123_v33 = vsel %vm1118_vm4, 1.0, %v1480_v5  ;;  %v1173_v41 = vsel %vm1168_vm9, 1.0, %v1480_v5 }
 0x103   :  { %1145 = vadd.xlane.f32.xlu2 %v1144_v38  ;;  %v1178_v0 = vadd.f32 %v1174_v42, %v1173_v41  ;;  %vm1189_vm4 = vcmp.lt.f32.partialorder %v1446_v51, 7.0  ;;  %vm1191_vm9 = vcmp.lt.f32.partialorder %v1450_v7, 7.0 }
 0x104   :  { %522 = vst.msk [vmem:[%s2618_s6] sm:$0xff] %vm521_vm0, %v520_v1  ;;  %vm1116_vm0 = vcmp.lt.f32.partialorder %v1975_v60, 6.548387  ;;  %1108 = vadd.xlane.f32.xlu0 %v1107_v20  ;;  %v1157_v1 = vsel %vm1152_vm11, 1.0, %v1480_v5  ;;  %v1194_v57 = vsel %vm1189_vm4, 1.0, %v1480_v5  ;;  %v1196_v16 = vsel %vm1191_vm9, 1.0, %v1480_v5 }
 0x105   :  { %v1121_v28 = vsel %vm1116_vm0, 1.0, %v1480_v5  ;;  %v1179_v59 = vadd.f32 %v1178_v0, %v1175_v17  ;;  %v1199_v9 = vadd.f32 %v1195_v58, %v1194_v57  ;;  %v667_v20 = vsub.f32 %v649_v54, %v665_v55 }
 0x106   :  { %v1125_v31 = vadd.f32 %v1121_v28, %v1120_v25  ;;  %v1453_v28 = vld [vmem:[%s2613_s1 + $0x20] sm:$0xff]  ;;  %vm854_vm4 = vcmask 179368   ;;  %vm1002_vm9 = vcmask 212168  }
 0x107   :  { %v1180_v2 = vadd.f32 %v1179_v59, %v1176_v6  ;;  %v1200_v21 = vadd.f32 %v1199_v9, %v1196_v16  ;;  %vm1209_vm14 = vcmp.lt.f32.partialorder %v1453_v28, 7.0 }
 0x108   :  { %v1126_v3 = vadd.f32 %v1125_v31, %v1122_v29  ;;  %v1214_v31 = vsel %vm1209_vm14, 1.0, %v1480_v5  ;;  %vm1187_vm14 = vcmask 253168  }
 0x109   :  { %v686_v36 = vpop.xlane.xlu1 %685 }
 0x10a   :  { %v1127_v4 = vadd.f32 %v1126_v3, %v1123_v33 }
 0x10b   :  { %v555_v63 = vld [vmem:[%s2618_s6] sm:$0xff] }
 0x10c   :  { %v557_v10 = vadd.f32 %v556_v14, %v555_v63  ;;  %v1128_v47 = vadd.f32 %v1127_v4, %v1124_v8  ;;  %v1181_v14 = vadd.f32 %v1180_v2, %v1177_v46  ;;  %v1210_v63 = vsel %vm1205_vm6, 1.0, %v1480_v5 }
 0x10d   :  { %vm928_vm6 = vcmask 195768  }
 0x10e   :  { %559 = vst.msk [vmem:[%s2618_s6] sm:$0xff] %vm558_vm12, %v557_v10  ;;  %vm1153_vm12 = vcmp.lt.f32.partialorder %v1975_v60, 6.774194  ;;  %1129 = vadd.xlane.f32.xlu1 %v1128_v47  ;;  %v1444_v60 = vld [vmem:[%s2612_s0 + $0x18] sm:$0xff]  ;;  %v1451_v10 = vld [vmem:[%s2613_s1 + $0x10] sm:$0xff] }
 0x10f   :  { %v1158_v56 = vsel %vm1153_vm12, 1.0, %v1480_v5  ;;  %vm1155_vm0 = vcmp.lt.f32.partialorder %v1444_v60, 6.774194  ;;  %vm1207_vm10 = vcmp.lt.f32.partialorder %v1451_v10, 7.0  ;;  %vm1192_vm11 = vcmp.lt.f32.partialorder %v1444_v60, 7.0 }
 0x110   :  { %v1162_v62 = vadd.f32 %v1158_v56, %v1157_v1  ;;  %v1160_v12 = vsel %vm1155_vm0, 1.0, %v1480_v5  ;;  %v1212_v18 = vsel %vm1207_vm10, 1.0, %v1480_v5  ;;  %vm1208_vm12 = vcmp.lt.f32.partialorder %v1452_v23, 7.0 }
 0x111   :  { %v1197_v24 = vsel %vm1192_vm11, 1.0, %v1480_v5  ;;  %v1213_v25 = vsel %vm1208_vm12, 1.0, %v1480_v5  ;;  %vm706_vm0 = vcmask 146568   ;;  %v723_v4 = vpop.xlane.xlu0 %722  ;;  %vm1039_vm10 = vcmask 220368  }
 0x112   :  { %v1163_v15 = vadd.f32 %v1162_v62, %v1159_v44  ;;  %v1201_v27 = vadd.f32 %v1200_v21, %v1197_v24  ;;  %vm1076_vm11 = vcmask 228568   ;;  %vm1113_vm12 = vcmask 236768  }
 0x114   :  { %v1164_v50 = vadd.f32 %v1163_v15, %v1160_v12  ;;  %v1202_v34 = vadd.f32 %v1201_v27, %v1198_v30 }
 0x115   :  { %v592_v35 = vld [vmem:[%s2618_s6] sm:$0xff] }
 0x116   :  { %v594_v37 = vadd.f32 %v593_v26, %v592_v35  ;;  %1182 = vadd.xlane.f32.xlu1 %v1181_v14  ;;  %v1165_v22 = vadd.f32 %v1164_v50, %v1161_v48  ;;  %1203 = vadd.xlane.f32.xlu2 %v1202_v34  ;;  %v702_v35 = vpop.xlane.xlu2 %701  ;;  %v1428_v34 = vld [vmem:[%s2614_s2 + $0x78] sm:$0xff] }
 0x117   :  { %v704_v8 = vsub.f32 %v686_v36, %v702_v35  ;;  %v1422_v35 = vld [vmem:[%s2614_s2 + $0x50] sm:$0xff]  ;;  %1338 = vmatpush.msra.mxu3 %v1428_v34 }
 0x118   :  { %596 = vst.msk [vmem:[%s2618_s6] sm:$0xff] %vm595_vm7, %v594_v37  ;;  %vm1206_vm7 = vcmp.lt.f32.partialorder %v1449_v61, 7.0  ;;  %1166 = vadd.xlane.f32.xlu0 %v1165_v22  ;;  %v1427_v36 = vld [vmem:[%s2614_s2 + $0x70] sm:$0xff] }
 0x119   :  { %v1211_v11 = vsel %vm1206_vm7, 1.0, %v1480_v5  ;;  %v739_v5 = vpop.xlane.xlu1 %738  ;;  %vm965_vm7 = vcmask 203968   ;;  %1339 = vmatpush.msra.mxu3 %v1427_v36 }
 0x11a   :  { %v1215_v19 = vadd.f32 %v1211_v11, %v1210_v63  ;;  %v741_v39 = vsub.f32 %v723_v4, %v739_v5  ;;  %v1426_v4 = vld [vmem:[%s2614_s2 + $0x68] sm:$0xff] }
 0x11b   :  { %1340 = vmatpush.msra.mxu3 %v1426_v4 }
 0x11c   :  { %v1216_v26 = vadd.f32 %v1215_v19, %v1212_v18 }
 0x11d   :  { %v776_v42 = vpop.xlane.xlu0 %775 }
 0x11e   :  { %v1217_v32 = vadd.f32 %v1216_v26, %v1213_v25  ;;  %v760_v41 = vpop.xlane.xlu2 %759 }
 0x11f   :  { %v629_v45 = vld [vmem:[%s2618_s6] sm:$0xff]  ;;  %v778_v0 = vsub.f32 %v760_v41, %v776_v42  ;;  %v1233_v42 = vld [vmem:[%s2614_s2 + $0x18] sm:$0xff] }
 0x120   :  { %v631_v49 = vadd.f32 %v630_v43, %v629_v45  ;;  %v1218_v3 = vadd.f32 %v1217_v32, %v1214_v31  ;;  %v1417_v32 = vld [vmem:[%s2614_s2 + $0x38] sm:$0xff] }
 0x121   :  { %v797_v56 = vpop.xlane.xlu1 %796  ;;  %1256 = vmatpush.msra.mxu1 %v1417_v32 }
 0x122   :  { %633 = vst.msk [vmem:[%s2618_s6] sm:$0xff] %vm632_vm3, %v631_v49  ;;  %1219 = vadd.xlane.f32.xlu0 %v1218_v3  ;;  %vm817_vm3 = vcmask 171168   ;;  %v1416_v3 = vld [vmem:[%s2614_s2 + $0x30] sm:$0xff] }
 0x123   :  { %1257 = vmatpush.msra.mxu1 %v1416_v3 }
 0x126   :  { %v813_v17 = vpop.xlane.xlu2 %812 }
 0x127   :  { %v815_v44 = vsub.f32 %v797_v56, %v813_v17  ;;  %v1231_v17 = vld [vmem:[%s2614_s2 + $0x8] sm:$0xff]  ;;  %v1230_v56 = vld [vmem:[%s2614_s2] sm:$0xff] }
 0x129   :  { %v666_v29 = vld [vmem:[%s2618_s6] sm:$0xff] }
 0x12a   :  { %v668_v33 = vadd.f32 %v667_v20, %v666_v29  ;;  %v834_v6 = vpop.xlane.xlu0 %833 }
 0x12c   :  { %670 = vst.msk [vmem:[%s2618_s6] sm:$0xff] %vm669_vm15, %v668_v33  ;;  %v1423_v33 = vld [vmem:[%s2614_s2 + $0x58] sm:$0xff]  ;;  %vm1224_vm15 = vcmask 261368  }
 0x12d   :  { %1308 = vmatpush.msra.mxu2 %v1423_v33 }
 0x12f   :  { %v850_v62 = vpop.xlane.xlu1 %849  ;;  %1309 = vmatpush.msra.mxu2 %v1422_v35 }
 0x130   :  { %v852_v12 = vsub.f32 %v834_v6, %v850_v62  ;;  %v1368_v62 = vld [vmem:[%s2616_s4 + $0x78] sm:$0xff]  ;;  %v1367_v6 = vld [vmem:[%s2616_s4 + $0x70] sm:$0xff] }
 0x131   :  { %1373 = vmatpush.msra.mxu0 %v1368_v62 }
 0x133   :  { %v703_v37 = vld [vmem:[%s2618_s6] sm:$0xff]  ;;  %1374 = vmatpush.msra.mxu0 %v1367_v6 }
 0x134   :  { %v705_v38 = vadd.f32 %v704_v8, %v703_v37  ;;  %v871_v15 = vpop.xlane.xlu2 %870  ;;  %v1415_v8 = vld [vmem:[%s2614_s2 + $0x28] sm:$0xff] }
 0x135   :  { %v1421_v37 = vld [vmem:[%s2614_s2 + $0x48] sm:$0xff]  ;;  %1258 = vmatpush.msra.mxu1 %v1415_v8 }
 0x136   :  { %707 = vst.msk [vmem:[%s2618_s6] sm:$0xff] %vm706_vm0, %v705_v38  ;;  %1310 = vmatpush.msra.mxu2 %v1421_v37 }
 0x13b   :  { %v887_v45 = vpop.xlane.xlu0 %886 }
 0x13c   :  { %v889_v46 = vsub.f32 %v871_v15, %v887_v45  ;;  %v924_v14 = vpop.xlane.xlu2 %923  ;;  %v1365_v15 = vld [vmem:[%s2616_s4 + $0x60] sm:$0xff]  ;;  %v1364_v45 = vld [vmem:[%s2616_s4 + $0x58] sm:$0xff] }
 0x13d   :  { %v740_v40 = vld [vmem:[%s2618_s6] sm:$0xff] }
 0x13e   :  { %v742_v47 = vadd.f32 %v741_v39, %v740_v40  ;;  %v1414_v39 = vld [vmem:[%s2614_s2 + $0x20] sm:$0xff] }
 0x13f   :  { %v1420_v40 = vld [vmem:[%s2614_s2 + $0x40] sm:$0xff]  ;;  %1259 = vmatpush.msra.mxu1 %v1414_v39 }
 0x140   :  { %744 = vst.msk [vmem:[%s2618_s6] sm:$0xff] %vm743_vm1, %v742_v47  ;;  %v1425_v47 = vld [vmem:[%s2614_s2 + $0x60] sm:$0xff]  ;;  %1311 = vmatpush.msra.mxu2 %v1420_v40 }
 0x141   :  { %1341 = vmatpush.msra.mxu3 %v1425_v47  ;;  %1279 = vmatpush.msrb.mxu1 %v1233_v42 }
 0x145   :  { %v908_v50 = vpop.xlane.xlu1 %907 }
 0x146   :  { %v926_v22 = vsub.f32 %v908_v50, %v924_v14 }
 0x147   :  { %v777_v1 = vld [vmem:[%s2618_s6] sm:$0xff] }
 0x148   :  { %v779_v43 = vadd.f32 %v778_v0, %v777_v1  ;;  %v1232_v1 = vld [vmem:[%s2614_s2 + $0x10] sm:$0xff] }
 0x149   :  { %1280 = vmatpush.msrb.mxu1 %v1232_v1 }
 0x14a   :  { %781 = vst.msk [vmem:[%s2618_s6] sm:$0xff] %vm780_vm2, %v779_v43 }
 0x14b   :  { %1281 = vmatpush.msrb.mxu1 %v1231_v17 }
 0x14d   :  { %v961_v53 = vpop.xlane.xlu1 %960  ;;  %1282 = vmatpush.msrb.mxu1 %v1230_v56 }
 0x14e   :  { %v982_v61 = vpop.xlane.xlu2 %981 }
 0x14f   :  { %v945_v54 = vpop.xlane.xlu0 %944 }
 0x150   :  { %v963_v55 = vsub.f32 %v945_v54, %v961_v53 }
 0x151   :  { %v814_v59 = vld [vmem:[%s2618_s6] sm:$0xff] }
 0x152   :  { %v816_v60 = vadd.f32 %v815_v44, %v814_v59 }
 0x154   :  { %818 = vst.msk [vmem:[%s2618_s6] sm:$0xff] %vm817_vm3, %v816_v60 }
 0x158   :  { %v1035_v11 = vpop.xlane.xlu2 %1034 }
 0x159   :  { %v998_v63 = vpop.xlane.xlu0 %997 }
 0x15a   :  { %v1000_v7 = vsub.f32 %v982_v61, %v998_v63  ;;  %v1359_v61 = vld [vmem:[%s2616_s4 + $0x30] sm:$0xff]  ;;  %v1358_v63 = vld [vmem:[%s2616_s4 + $0x28] sm:$0xff] }
 0x15b   :  { %v851_v2 = vld [vmem:[%s2618_s6] sm:$0xff] }
 0x15c   :  { %v853_v13 = vadd.f32 %v852_v12, %v851_v2  ;;  %v1366_v12 = vld [vmem:[%s2616_s4 + $0x68] sm:$0xff] }
 0x15d   :  { %1375 = vmatpush.msra.mxu0 %v1366_v12 }
 0x15e   :  { %855 = vst.msk [vmem:[%s2618_s6] sm:$0xff] %vm854_vm4, %v853_v13 }
 0x15f   :  { %1376 = vmatpush.msra.mxu0 %v1365_v15 }
 0x161   :  { %1377 = vmatpush.msra.mxu0 %v1364_v45 }
 0x163   :  { %v1019_v16 = vpop.xlane.xlu1 %1018 }
 0x164   :  { %v1037_v18 = vsub.f32 %v1019_v16, %v1035_v11  ;;  %v1354_v11 = vld [vmem:[%s2616_s4 + $0x8] sm:$0xff]  ;;  %v1353_v16 = vld [vmem:[%s2616_s4] sm:$0xff] }
 0x165   :  { %v888_v48 = vld [vmem:[%s2618_s6] sm:$0xff] }
 0x166   :  { %v890_v49 = vadd.f32 %v889_v46, %v888_v48 }
 0x168   :  { %892 = vst.msk [vmem:[%s2618_s6] sm:$0xff] %vm891_vm5, %v890_v49  ;;  %v1363_v49 = vld [vmem:[%s2616_s4 + $0x50] sm:$0xff] }
 0x169   :  { %1378 = vmatpush.msra.mxu0 %v1363_v49 }
 0x16b   :  { %v1072_v21 = vpop.xlane.xlu1 %1071 }
 0x16c   :  { %v1093_v27 = vpop.xlane.xlu2 %1092 }
 0x16d   :  { %v1056_v23 = vpop.xlane.xlu0 %1055 }
 0x16e   :  { %v1074_v24 = vsub.f32 %v1056_v23, %v1072_v21 }
 0x16f   :  { %v925_v51 = vld [vmem:[%s2618_s6] sm:$0xff] }
 0x170   :  { %v927_v52 = vadd.f32 %v926_v22, %v925_v51 }
 0x172   :  { %929 = vst.msk [vmem:[%s2618_s6] sm:$0xff] %vm928_vm6, %v927_v52 }
 0x176   :  { %v1146_v38 = vpop.xlane.xlu2 %1145 }
 0x177   :  { %v1109_v28 = vpop.xlane.xlu0 %1108 }
 0x178   :  { %v1111_v29 = vsub.f32 %v1093_v27, %v1109_v28 }
 0x179   :  { %v962_v57 = vld [vmem:[%s2618_s6] sm:$0xff] }
 0x17a   :  { %v964_v58 = vadd.f32 %v963_v55, %v962_v57  ;;  %v1362_v55 = vld [vmem:[%s2616_s4 + $0x48] sm:$0xff]  ;;  %v1361_v57 = vld [vmem:[%s2616_s4 + $0x40] sm:$0xff] }
 0x17b   :  { %1379 = vmatpush.msra.mxu0 %v1362_v55 }
 0x17c   :  { %966 = vst.msk [vmem:[%s2618_s6] sm:$0xff] %vm965_vm7, %v964_v58  ;;  %v1360_v58 = vld [vmem:[%s2616_s4 + $0x38] sm:$0xff] }
 0x17d   :  { %1380 = vmatpush.msra.mxu0 %v1361_v57 }
 0x17f   :  { %1381 = vmatpush.msra.mxu0 %v1360_v58 }
 0x181   :  { %v1130_v5 = vpop.xlane.xlu1 %1129  ;;  %1382 = vmatpush.msra.mxu0 %v1359_v61 }
 0x182   :  { %v1148_v41 = vsub.f32 %v1130_v5, %v1146_v38 }
 0x183   :  { %v999_v9 = vld [vmem:[%s2618_s6] sm:$0xff]  ;;  %1383 = vmatpush.msra.mxu0 %v1358_v63 }
 0x184   :  { %v1001_v10 = vadd.f32 %v1000_v7, %v999_v9  ;;  %v1357_v7 = vld [vmem:[%s2616_s4 + $0x20] sm:$0xff]  ;;  %v1356_v9 = vld [vmem:[%s2616_s4 + $0x18] sm:$0xff] }
 0x185   :  { %1384 = vmatpush.msra.mxu0 %v1357_v7 }
 0x186   :  { %1003 = vst.msk [vmem:[%s2618_s6] sm:$0xff] %vm1002_vm9, %v1001_v10  ;;  %v1355_v10 = vld [vmem:[%s2616_s4 + $0x10] sm:$0xff]  ;;  %s1481_s4 = smov [#allocation2]  }
 0x187   :  { %1385 = vmatpush.msra.mxu0 %v1356_v9  ;;  %s1401_s22 = sshll.u32 %s1481_s4, 4  ;;  %s1402_s22 = int_to_ptr.vmem [resolvable:$true] %s1401_s22 }
 0x189   :  { %v1183_v44 = vpop.xlane.xlu1 %1182  ;;  %v1204_v46 = vpop.xlane.xlu2 %1203  ;;  %1386 = vmatpush.msra.mxu0 %v1355_v10 }
 0x18b   :  { %v1167_v59 = vpop.xlane.xlu0 %1166  ;;  %1387 = vmatpush.msra.mxu0 %v1354_v11 }
 0x18c   :  { %v1185_v60 = vsub.f32 %v1167_v59, %v1183_v44 }
 0x18d   :  { %v1036_v19 = vld [vmem:[%s2618_s6] sm:$0xff]  ;;  %1388 = vmatpush.msra.mxu0 %v1353_v16 }
 0x18e   :  { %v1038_v20 = vadd.f32 %v1037_v18, %v1036_v19 }
 0x190   :  { %1040 = vst.msk [vmem:[%s2618_s6] sm:$0xff] %vm1039_vm10, %v1038_v20 }
 0x195   :  { %v1220_v48 = vpop.xlane.xlu0 %1219 }
 0x196   :  { %v1222_v14 = vsub.f32 %v1204_v46, %v1220_v48 }
 0x197   :  { %v1073_v25 = vld [vmem:[%s2618_s6] sm:$0xff] }
 0x198   :  { %v1075_v26 = vadd.f32 %v1074_v24, %v1073_v25  ;;  %v1432_v24 = vld [vmem:[%s2615_s3] ss:$0 sm:$0xff] }
 0x19a   :  { %1077 = vst.msk [vmem:[%s2618_s6] sm:$0xff] %vm1076_vm11, %v1075_v26 }
 0x1a1   :  { %v1110_v30 = vld [vmem:[%s2618_s6] sm:$0xff] }
 0x1a2   :  { %v1112_v31 = vadd.f32 %v1111_v29, %v1110_v30  ;;  %v1433_v29 = vld [vmem:[%s2617_s5] ss:$0 sm:$0xff] }
 0x1a4   :  { %1114 = vst.msk [vmem:[%s2618_s6] sm:$0xff] %vm1113_vm12, %v1112_v31 }
 0x1ab   :  { %v1147_v0 = vld [vmem:[%s2618_s6] sm:$0xff] }
 0x1ac   :  { %v1149_v43 = vadd.f32 %v1148_v41, %v1147_v0 }
 0x1ae   :  { %1151 = vst.msk [vmem:[%s2618_s6] sm:$0xff] %vm1150_vm13, %v1149_v43 }
 0x1b5   :  { %v1184_v2 = vld [vmem:[%s2618_s6] sm:$0xff] }
 0x1b6   :  { %v1186_v13 = vadd.f32 %v1185_v60, %v1184_v2 }
 0x1b8   :  { %1188 = vst.msk [vmem:[%s2618_s6] sm:$0xff] %vm1187_vm14, %v1186_v13 }
 0x1bf   :  { %v1221_v50 = vld [vmem:[%s2618_s6] sm:$0xff] }
 0x1c0   :  { %v1223_v22 = vadd.f32 %v1222_v14, %v1221_v50 }
 0x1c2   :  { %1225 = vst.msk [vmem:[%s2618_s6] sm:$0xff] %vm1224_vm15, %v1223_v22 }
 0x1c9   :  { %v1234_v51 = vld [vmem:[%s2618_s6 + $0x2] sm:$0x3]  ;;  %v1287_v52 = vld [vmem:[%s2618_s6 + $0x4] sm:$0x3]  ;;  %v1317_v53 = vld [vmem:[%s2618_s6 + $0x6] sm:$0x3] }
 0x1ca   :  { %1418 = vmatmul.msk.f32.vlgmr.msra.gmra.mxu1 %vm30_vm8, %v1234_v51  ;;  %1424 = vmatmul.msk.f32.vlgmr.msra.gmra.mxu2 %vm30_vm8, %v1287_v52  ;;  %v1229_v54 = vld [vmem:[%s2618_s6] sm:$0x3] }
 0x1cb   :  { %1429 = vmatmul.msk.f32.vlgmr.msra.gmra.mxu3 %vm30_vm8, %v1317_v53 }
 0x1d2   :  { %1419 = vmatmul.msk.f32.vlgmr.msrb.gmra.mxu1 %vm30_vm8, %v1229_v54 }
 0x247   :  { %v1261_v18 = vpop.f32.mrf.mxu1 }
 0x24d   :  { %v1313_v21 = vpop.f32.mrf.mxu2 }
 0x24e   :  { %v1343_v25 = vpop.f32.mrf.mxu3 }
 0x24f   :  { %v1284_v19 = vpop.f32.mrf.mxu1 }
 0x250   :  { %v1285_v20 = vadd.f32 %v1284_v19, %v1261_v18 }
 0x252   :  { %v1316_v23 = vadd.f32 %v1313_v21, %v1285_v20 }
 0x254   :  { %v1346_v26 = vadd.f32 %v1343_v25, %v1316_v23 }
 0x256   :  { %v1351_v27 = vadd.f32 %v1432_v24, %v1346_v26 }
 0x258   :  { %v1352_v28 = vmax.f32 %v1351_v27, 0.0 }
 0x25a   :  { %1389 = vmatmul.f32.vlgmr.msra.gmra.mxu0 %v1352_v28 }
 0x2d7   :  { %v1390_v30 = vpop.f32.mrf.mxu0 }
 0x2d8   :  { %v1391_v31 = vadd.f32 %v1433_v29, %v1390_v30 }
 0x2da   :  { %1393 = vst [vmem:[#allocation2] sm:$0x3] %v1391_v31 }
 0x2db   :  { %1406 = dma.vmem_to_hbm [thread:$0]  %s1402_s22, 32, %s1404_s25, [#allocation3]  }
 0x2dc   :  { %1478 = dma.done.wait [#allocation3], 32  }
 0x2dd   :  { %1479 = vsyncadd [#allocation3], 4294967264 }
 0x2de   :  { %1413 = vsyncpa [#allocation3], 1 }

</bundles_post_ra>
